<compile_context>
chip_gen: v7x
topology: tpu7x:2x2x1
jax: 0.10.0
libtpu: 0.0.40
codegen_flags: <defaults>
</compile_context>

<pallas_src>
import functools

import jax
import jax.numpy as jnp
from jax.experimental import pallas as pl
from jax.experimental.pallas import tpu as pltpu

BN_EPS = 1e-5


# --------------------------------------------------------------------------
# Kernel
# --------------------------------------------------------------------------
def encoder_kernel(x_ref,
                   w1_ref, b1_ref,
                   w2_ref, b2_ref,
                   w3_ref, b3_ref,
                   w4_ref, b4_ref,
                   o_ref,
                   *, p_real):
    """One grid step == B batch elements (B*P rows).

    x_ref : (B, P, Cin) f32   raw input channels (no padding)
    w1    : (Cin, 128)  f32   layer-1 weight (VPU path), BN scale folded in
    w2..4 : (Cin, Cout) bf16  conv weights (MXU path), BN scale folded in
    b*    : (1, Cout)   f32   conv bias + BN shift folded together
    o_ref : (B, zdim)   f32   per-element max-pooled features
    """
    B, P, cin = x_ref.shape
    zdim = o_ref.shape[-1]
    rows = B * P

    x = x_ref[...].reshape(rows, cin)                  # (rows, Cin) f32

    # ---- Layer 1 on the VPU: K=Cin is tiny, so skip the MXU entirely.
    w1 = w1_ref[...]                                   # (Cin, 128) f32
    h = jnp.broadcast_to(b1_ref[...], (rows, w1.shape[1]))
    for c in range(cin):                               # Cin is static & tiny
        h = h + x[:, c:c + 1] * w1[c, :][None, :]
    h = jnp.maximum(h, 0.0).astype(jnp.bfloat16)       # (rows, 128) bf16

    # ---- Layers 2-4 on the MXU (bf16 in, f32 accumulate, f32 epilogue).
    def mxu_layer(h, w_ref, b_ref, relu, out_bf16):
        acc = jnp.dot(h, w_ref[...], preferred_element_type=jnp.float32)
        acc = acc + b_ref[...]                         # fused conv-bias + BN shift
        if relu:
            acc = jnp.maximum(acc, 0.0)
        if out_bf16:
            acc = acc.astype(jnp.bfloat16)             # cheap inter-layer slab
        return acc

    h = mxu_layer(h, w2_ref, b2_ref, relu=True,  out_bf16=True)   # (rows, 128)
    h = mxu_layer(h, w3_ref, b3_ref, relu=True,  out_bf16=True)   # (rows, 256)
    h = mxu_layer(h, w4_ref, b4_ref, relu=False, out_bf16=False)  # (rows, zdim) f32

    # torch.max(x, 2): max over the points axis, per batch element.
    h = h.reshape(B, P, zdim)
    if p_real != P:
        # Padded point rows must never win the max.
        pid = jax.lax.broadcasted_iota(jnp.int32, (B, P, zdim), 1)
        h = jnp.where(pid < p_real, h, -jnp.inf)
    o_ref[...] = jnp.max(h, axis=1)                    # (B, zdim)


# --------------------------------------------------------------------------
# Wrapper
# --------------------------------------------------------------------------
def encoder_forward(x, kernel_params, *, rows_per_step=2048):
    """x: (N, P, Cin) float32.  Returns (N, zdim) float32."""
    N, P, Cin = x.shape
    zdim = kernel_params[-2].shape[1]     # w4: (256, zdim)

    # Points padded (if needed) to a sublane multiple so in-kernel reshapes are
    # free leading-dim relayouts.
    P_pad = ((P + 7) // 8) * 8

    # Batch elements per grid step: always a multiple of 8 (full-sublane,
    # unmasked output store), targeting ~rows_per_step rows per step.
    B = 8 * max(1, rows_per_step // (8 * P_pad))
    B = min(B, ((N + 7) // 8) * 8)        # don't pad tiny batches excessively
    n_steps = pl.cdiv(N, B)
    if n_steps < 2 and N > 8:
        # Keep >= 2 grid steps when there's enough work so v7x's 2nd TC helps.
        B = max(8, (((N + 1) // 2 + 7) // 8) * 8)
        n_steps = pl.cdiv(N, B)
    n_pad = n_steps * B

    # Single pad pass (batch + optional point padding); NO channel padding.
    if n_pad != N or P_pad != P:
        # Padded (zero) batch elements produce finite garbage rows that are
        # sliced off below; padded point rows are -inf-masked in the kernel.
        x = jnp.pad(x, ((0, n_pad - N), (0, P_pad - P), (0, 0)))

    def param_spec(p):
        # Untiled parameter: full block, constant index map (no re-DMA across
        # grid steps).
        return pl.BlockSpec(p.shape, lambda i, nd=p.ndim: (0,) * nd)

    in_specs = [pl.BlockSpec((B, P_pad, Cin), lambda i: (i, 0, 0))]
    in_specs += [param_spec(p) for p in kernel_params]

    kern = functools.partial(encoder_kernel, p_real=P)

    out = pl.pallas_call(
        kern,
        out_shape=jax.ShapeDtypeStruct((n_pad, zdim), jnp.float32),
        grid_spec=pltpu.PrefetchScalarGridSpec(
            num_scalar_prefetch=0,
            grid=(n_steps,),
            in_specs=in_specs,
            out_specs=pl.BlockSpec((B, zdim), lambda i: (i, 0)),
        ),
        compiler_params=pltpu.CompilerParams(
            dimension_semantics=("parallel",),
            # Actual need is a few MiB; 32 MiB leaves headroom within v7x's
            # 64 MiB physical VMEM and is harmless on v5e/v6e.
            vmem_limit_bytes=32 * 1024 * 1024,
        ),
    )(x, *kernel_params)
    return out[:N]


# --------------------------------------------------------------------------
# Parameters: raw (PyTorch-like) + folding for the kernel
# --------------------------------------------------------------------------
def make_raw_params(key, input_dim, zdim):
    """Synthetic per-layer (w, b, gamma, beta, running_mean, running_var)."""
    dims = [(input_dim, 128), (128, 128), (128, 256), (256, zdim)]
    keys = jax.random.split(key, 4 * 6)
    layers = []
    k = 0
    for cin, cout in dims:
        w = jax.random.normal(keys[k], (cin, cout), jnp.float32) * 0.05; k += 1
        b = jax.random.normal(keys[k], (cout,), jnp.float32) * 0.05;     k += 1
        gamma = 1.0 + 0.1 * jax.random.normal(keys[k], (cout,), jnp.float32); k += 1
        beta  = 0.1 * jax.random.normal(keys[k], (cout,), jnp.float32);       k += 1
        rmean = 0.1 * jax.random.normal(keys[k], (cout,), jnp.float32);       k += 1
        rvar  = 1.0 + 0.1 * jax.random.uniform(keys[k], (cout,), jnp.float32); k += 1
        layers.append((w, b, gamma, beta, rmean, rvar))
    return layers


def fold_params(layers):
    """Fold conv bias + eval-mode BN into (w', b') per layer for the kernel.

    Layer 1 weight stays f32 (VPU path); layers 2-4 go to bf16 (MXU operands).
    """
    folded = []
    for li, (w, b, gamma, beta, rmean, rvar) in enumerate(layers):
        scale = gamma / jnp.sqrt(rvar + BN_EPS)        # (cout,)
        w_f = w * scale[None, :]                       # BN scale folded into W
        b_f = (b - rmean) * scale + beta               # bias + BN shift
        wdtype = jnp.float32 if li == 0 else jnp.bfloat16
        folded.append(w_f.astype(wdtype))
        folded.append(b_f[None, :].astype(jnp.float32))   # (1, cout)
    return tuple(folded)


# --------------------------------------------------------------------------
# Plain-JAX f32 reference (eval-mode BN), for the sanity check
# --------------------------------------------------------------------------
def encoder_reference(x, layers):
    h = x                                              # (N, P, Cin)
    n_layers = len(layers)
    for li, (w, b, gamma, beta, rmean, rvar) in enumerate(layers):
        scale = gamma / jnp.sqrt(rvar + BN_EPS)
        h = jnp.einsum('npc,cd->npd', h, w) + b[None, None, :]
        h = (h - rmean[None, None, :]) * scale[None, None, :] + beta[None, None, :]
        if li < n_layers - 1:
            h = jnp.maximum(h, 0.0)
    return jnp.max(h, axis=1)                          # (N, zdim)


# --------------------------------------------------------------------------
if __name__ == "__main__":
    key = jax.random.PRNGKey(0)
    kx, kp = jax.random.split(key)

    N, P, input_dim, zdim = 2, 64, 3, 128
    x = jax.random.normal(kx, (N, P, input_dim), jnp.float32)   # N x #pts x 3

    raw_layers = make_raw_params(kp, input_dim, zdim)
    kernel_params = fold_params(raw_layers)

    out = encoder_forward(x, kernel_params)
    out = jax.block_until_ready(out)
    assert out.shape == (N, zdim), out.shape

    ref = encoder_reference(x, raw_layers)
    max_err = float(jnp.max(jnp.abs(out - ref)))
    # Tolerance covers bf16 MXU operands and bf16 inter-layer activations.
    assert jnp.allclose(out, ref, atol=2e-2, rtol=2e-2), max_err

    print("KERNEL_OK")
</pallas_src>

<mosaic_0001>
module attributes {stable_mosaic.version = 11 : i64} {
  func.func @encoder_kernel(%arg0: i32, %arg1: memref<8x64x3xf32, #tpu.memory_space<vmem>>, %arg2: memref<3x128xf32, #tpu.memory_space<vmem>>, %arg3: memref<1x128xf32, #tpu.memory_space<vmem>>, %arg4: memref<128x128xbf16, #tpu.memory_space<vmem>>, %arg5: memref<1x128xf32, #tpu.memory_space<vmem>>, %arg6: memref<128x256xbf16, #tpu.memory_space<vmem>>, %arg7: memref<1x256xf32, #tpu.memory_space<vmem>>, %arg8: memref<256x128xbf16, #tpu.memory_space<vmem>>, %arg9: memref<1x128xf32, #tpu.memory_space<vmem>>, %arg10: memref<8x128xf32, #tpu.memory_space<vmem>>) attributes {dimension_semantics = [#tpu.dimension_semantics<parallel>], iteration_bounds = array<i64: 1>, scalar_prefetch = 0 : i64, scratch_operands = 0 : i64, tpu.core_type = #tpu.core_type<tc>, window_params = [{transform_indices = @transform_0, window_bounds = array<i64: 8, 64, 3>}, {pipeline_mode = #tpu.pipeline_mode<synchronous>, transform_indices = @transform_1, window_bounds = array<i64: 3, 128>}, {pipeline_mode = #tpu.pipeline_mode<synchronous>, transform_indices = @transform_2, window_bounds = array<i64: 1, 128>}, {pipeline_mode = #tpu.pipeline_mode<synchronous>, transform_indices = @transform_3, window_bounds = array<i64: 128, 128>}, {pipeline_mode = #tpu.pipeline_mode<synchronous>, transform_indices = @transform_4, window_bounds = array<i64: 1, 128>}, {pipeline_mode = #tpu.pipeline_mode<synchronous>, transform_indices = @transform_5, window_bounds = array<i64: 128, 256>}, {pipeline_mode = #tpu.pipeline_mode<synchronous>, transform_indices = @transform_6, window_bounds = array<i64: 1, 256>}, {pipeline_mode = #tpu.pipeline_mode<synchronous>, transform_indices = @transform_7, window_bounds = array<i64: 256, 128>}, {pipeline_mode = #tpu.pipeline_mode<synchronous>, transform_indices = @transform_8, window_bounds = array<i64: 1, 128>}, {transform_indices = @transform_9, window_bounds = array<i64: 8, 128>}]} {
    %c0 = arith.constant 0 : index
    %c0_0 = arith.constant 0 : index
    %c0_1 = arith.constant 0 : index
    %0 = vector.load %arg1[%c0, %c0_0, %c0_1] : memref<8x64x3xf32, #tpu.memory_space<vmem>>, vector<8x64x3xf32>
    %1 = vector.shape_cast %0 : vector<8x64x3xf32> to vector<512x3xf32>
    %c0_2 = arith.constant 0 : index
    %c0_3 = arith.constant 0 : index
    %2 = vector.load %arg2[%c0_2, %c0_3] : memref<3x128xf32, #tpu.memory_space<vmem>>, vector<3x128xf32>
    %c0_4 = arith.constant 0 : index
    %c0_5 = arith.constant 0 : index
    %3 = vector.load %arg3[%c0_4, %c0_5] : memref<1x128xf32, #tpu.memory_space<vmem>>, vector<1x128xf32>
    %4 = vector.shape_cast %3 : vector<1x128xf32> to vector<1x128xf32>
    %5 = vector.broadcast %4 : vector<1x128xf32> to vector<512x128xf32>
    %6 = vector.extract_strided_slice %1 {offsets = [0, 0], sizes = [512, 1], strides = [1, 1]} : vector<512x3xf32> to vector<512x1xf32>
    %7 = vector.extract_strided_slice %2 {offsets = [0, 0], sizes = [1, 128], strides = [1, 1]} : vector<3x128xf32> to vector<1x128xf32>
    %8 = vector.shape_cast %7 : vector<1x128xf32> to vector<128xf32>
    %9 = vector.shape_cast %8 : vector<128xf32> to vector<1x128xf32>
    %10 = vector.broadcast %6 : vector<512x1xf32> to vector<512x128xf32>
    %11 = vector.broadcast %9 : vector<1x128xf32> to vector<512x128xf32>
    %12 = arith.mulf %10, %11 : vector<512x128xf32>
    %13 = arith.addf %5, %12 : vector<512x128xf32>
    %14 = vector.extract_strided_slice %1 {offsets = [0, 1], sizes = [512, 1], strides = [1, 1]} : vector<512x3xf32> to vector<512x1xf32>
    %15 = vector.extract_strided_slice %2 {offsets = [1, 0], sizes = [1, 128], strides = [1, 1]} : vector<3x128xf32> to vector<1x128xf32>
    %16 = vector.shape_cast %15 : vector<1x128xf32> to vector<128xf32>
    %17 = vector.shape_cast %16 : vector<128xf32> to vector<1x128xf32>
    %18 = vector.broadcast %14 : vector<512x1xf32> to vector<512x128xf32>
    %19 = vector.broadcast %17 : vector<1x128xf32> to vector<512x128xf32>
    %20 = arith.mulf %18, %19 : vector<512x128xf32>
    %21 = arith.addf %13, %20 : vector<512x128xf32>
    %22 = vector.extract_strided_slice %1 {offsets = [0, 2], sizes = [512, 1], strides = [1, 1]} : vector<512x3xf32> to vector<512x1xf32>
    %23 = vector.extract_strided_slice %2 {offsets = [2, 0], sizes = [1, 128], strides = [1, 1]} : vector<3x128xf32> to vector<1x128xf32>
    %24 = vector.shape_cast %23 : vector<1x128xf32> to vector<128xf32>
    %25 = vector.shape_cast %24 : vector<128xf32> to vector<1x128xf32>
    %26 = vector.broadcast %22 : vector<512x1xf32> to vector<512x128xf32>
    %27 = vector.broadcast %25 : vector<1x128xf32> to vector<512x128xf32>
    %28 = arith.mulf %26, %27 : vector<512x128xf32>
    %29 = arith.addf %21, %28 : vector<512x128xf32>
    %cst = arith.constant 0.000000e+00 : f32
    %30 = vector.broadcast %cst : f32 to vector<512x128xf32>
    %31 = arith.maximumf %29, %30 : vector<512x128xf32>
    %32 = arith.truncf %31 : vector<512x128xf32> to vector<512x128xbf16>
    %c0_6 = arith.constant 0 : index
    %c0_7 = arith.constant 0 : index
    %33 = vector.load %arg4[%c0_6, %c0_7] : memref<128x128xbf16, #tpu.memory_space<vmem>>, vector<128x128xbf16>
    %cst_8 = arith.constant dense<0.000000e+00> : vector<512x128xf32>
    %34 = tpu.matmul %32, %33, %cst_8 {dimension_numbers = #tpu.dot_dimension_numbers<[1], [0], [0], [1], [0, 0, 1, 1], [], []>} : vector<512x128xbf16>, vector<128x128xbf16>, vector<512x128xf32> -> vector<512x128xf32>
    %c0_9 = arith.constant 0 : index
    %c0_10 = arith.constant 0 : index
    %35 = vector.load %arg5[%c0_9, %c0_10] : memref<1x128xf32, #tpu.memory_space<vmem>>, vector<1x128xf32>
    %36 = vector.broadcast %35 : vector<1x128xf32> to vector<512x128xf32>
    %37 = arith.addf %34, %36 : vector<512x128xf32>
    %cst_11 = arith.constant 0.000000e+00 : f32
    %38 = vector.broadcast %cst_11 : f32 to vector<512x128xf32>
    %39 = arith.maximumf %37, %38 : vector<512x128xf32>
    %40 = arith.truncf %39 : vector<512x128xf32> to vector<512x128xbf16>
    %c0_12 = arith.constant 0 : index
    %c0_13 = arith.constant 0 : index
    %41 = vector.load %arg6[%c0_12, %c0_13] : memref<128x256xbf16, #tpu.memory_space<vmem>>, vector<128x256xbf16>
    %cst_14 = arith.constant dense<0.000000e+00> : vector<512x256xf32>
    %42 = tpu.matmul %40, %41, %cst_14 {dimension_numbers = #tpu.dot_dimension_numbers<[1], [0], [0], [1], [0, 0, 1, 1], [], []>} : vector<512x128xbf16>, vector<128x256xbf16>, vector<512x256xf32> -> vector<512x256xf32>
    %c0_15 = arith.constant 0 : index
    %c0_16 = arith.constant 0 : index
    %43 = vector.load %arg7[%c0_15, %c0_16] : memref<1x256xf32, #tpu.memory_space<vmem>>, vector<1x256xf32>
    %44 = vector.broadcast %43 : vector<1x256xf32> to vector<512x256xf32>
    %45 = arith.addf %42, %44 : vector<512x256xf32>
    %cst_17 = arith.constant 0.000000e+00 : f32
    %46 = vector.broadcast %cst_17 : f32 to vector<512x256xf32>
    %47 = arith.maximumf %45, %46 : vector<512x256xf32>
    %48 = arith.truncf %47 : vector<512x256xf32> to vector<512x256xbf16>
    %c0_18 = arith.constant 0 : index
    %c0_19 = arith.constant 0 : index
    %49 = vector.load %arg8[%c0_18, %c0_19] : memref<256x128xbf16, #tpu.memory_space<vmem>>, vector<256x128xbf16>
    %cst_20 = arith.constant dense<0.000000e+00> : vector<512x128xf32>
    %50 = tpu.matmul %48, %49, %cst_20 {dimension_numbers = #tpu.dot_dimension_numbers<[1], [0], [0], [1], [0, 0, 1, 1], [], []>} : vector<512x256xbf16>, vector<256x128xbf16>, vector<512x128xf32> -> vector<512x128xf32>
    %c0_21 = arith.constant 0 : index
    %c0_22 = arith.constant 0 : index
    %51 = vector.load %arg9[%c0_21, %c0_22] : memref<1x128xf32, #tpu.memory_space<vmem>>, vector<1x128xf32>
    %52 = vector.broadcast %51 : vector<1x128xf32> to vector<512x128xf32>
    %53 = arith.addf %50, %52 : vector<512x128xf32>
    %54 = vector.shape_cast %53 : vector<512x128xf32> to vector<8x64x128xf32>
    %cst_23 = arith.constant dense<0xFF800000> : vector<8x128xf32>
    %55 = vector.multi_reduction <maximumf>, %54, %cst_23 [1] : vector<8x64x128xf32> to vector<8x128xf32>
    %c0_24 = arith.constant 0 : index
    %c0_25 = arith.constant 0 : index
    %56 = vector.load %arg10[%c0_24, %c0_25] : memref<8x128xf32, #tpu.memory_space<vmem>>, vector<8x128xf32>
    tpu.vector_store %arg10[%c0_24, %c0_25], %55 {strides = array<i32>} : memref<8x128xf32, #tpu.memory_space<vmem>>, vector<8x128xf32>,
    return
  }
  func.func @transform_0(%arg0: i32) -> (i32, i32, i32) {
    %c0_i32 = arith.constant 0 : i32
    %c0_i32_0 = arith.constant 0 : i32
    %c0_i32_1 = arith.constant 0 : i32
    return %arg0, %c0_i32, %c0_i32_0 : i32, i32, i32
  }
  func.func @transform_1(%arg0: i32) -> (i32, i32) {
    %c0_i32 = arith.constant 0 : i32
    %c0_i32_0 = arith.constant 0 : i32
    %c0_i32_1 = arith.constant 0 : i32
    return %c0_i32, %c0_i32_0 : i32, i32
  }
  func.func @transform_2(%arg0: i32) -> (i32, i32) {
    %c0_i32 = arith.constant 0 : i32
    %c0_i32_0 = arith.constant 0 : i32
    %c0_i32_1 = arith.constant 0 : i32
    return %c0_i32, %c0_i32_0 : i32, i32
  }
  func.func @transform_3(%arg0: i32) -> (i32, i32) {
    %c0_i32 = arith.constant 0 : i32
    %c0_i32_0 = arith.constant 0 : i32
    %c0_i32_1 = arith.constant 0 : i32
    return %c0_i32, %c0_i32_0 : i32, i32
  }
  func.func @transform_4(%arg0: i32) -> (i32, i32) {
    %c0_i32 = arith.constant 0 : i32
    %c0_i32_0 = arith.constant 0 : i32
    %c0_i32_1 = arith.constant 0 : i32
    return %c0_i32, %c0_i32_0 : i32, i32
  }
  func.func @transform_5(%arg0: i32) -> (i32, i32) {
    %c0_i32 = arith.constant 0 : i32
    %c0_i32_0 = arith.constant 0 : i32
    %c0_i32_1 = arith.constant 0 : i32
    return %c0_i32, %c0_i32_0 : i32, i32
  }
  func.func @transform_6(%arg0: i32) -> (i32, i32) {
    %c0_i32 = arith.constant 0 : i32
    %c0_i32_0 = arith.constant 0 : i32
    %c0_i32_1 = arith.constant 0 : i32
    return %c0_i32, %c0_i32_0 : i32, i32
  }
  func.func @transform_7(%arg0: i32) -> (i32, i32) {
    %c0_i32 = arith.constant 0 : i32
    %c0_i32_0 = arith.constant 0 : i32
    %c0_i32_1 = arith.constant 0 : i32
    return %c0_i32, %c0_i32_0 : i32, i32
  }
  func.func @transform_8(%arg0: i32) -> (i32, i32) {
    %c0_i32 = arith.constant 0 : i32
    %c0_i32_0 = arith.constant 0 : i32
    %c0_i32_1 = arith.constant 0 : i32
    return %c0_i32, %c0_i32_0 : i32, i32
  }
  func.func @transform_9(%arg0: i32) -> (i32, i32) {
    %c0_i32 = arith.constant 0 : i32
    %c0_i32_0 = arith.constant 0 : i32
    return %arg0, %c0_i32 : i32, i32
  }
}

</mosaic_0001>

<bundles_post_ra>
// kernel: tpu_custom_call.1
= control target key start
LH: loop header
LB: loop body
LE: loop exit
PB: predicated region body
PF: predicated region fallthrough
CT: control target
= control target key end

     0   :  { %v5005_v2 = vmov 2   ;;  %v5003_v3 = vmov 0   ;;  %v5007_v7 = vmov 1   ;;  %s4993_s0 = inlined_call_operand.vmem [shape: f32[8,64,3], index: 0, kind: input, shape index: {}]   ;;  %s4994_s1 = inlined_call_operand.vmem [shape: f32[3,128], index: 1, kind: input, shape index: {}]   ;;  %s4995_s2 = inlined_call_operand.vmem [shape: f32[1,128], index: 2, kind: input, shape index: {}]   ;;  %s4996_s3 = inlined_call_operand.vmem [shape: bf16[128,128], index: 3, kind: input, shape index: {}]   ;;  %s4997_s4 = inlined_call_operand.vmem [shape: f32[1,128], index: 4, kind: input, shape index: {}]   ;;  %s4998_s5 = inlined_call_operand.vmem [shape: bf16[128,256], index: 5, kind: input, shape index: {}]   ;;  %s4999_s6 = inlined_call_operand.vmem [shape: f32[1,256], index: 6, kind: input, shape index: {}]   ;;  %s5000_s7 = inlined_call_operand.vmem [shape: bf16[256,128], index: 7, kind: input, shape index: {}]   ;;  %s5001_s8 = inlined_call_operand.vmem [shape: f32[1,128], index: 8, kind: input, shape index: {}]   ;;  %s5002_s9 = inlined_call_operand.hbm [shape: f32[8,128], index: 9, kind: output, shape index: {}]  }
   0x1   :  { %v36_v0 = vld [vmem:[%s4993_s0 + $0x10] sm:$0xff]  ;;  %v35_v1 = vld [vmem:[%s4993_s0 + $0x8] sm:$0xff]  ;;  %3291 = vset.pattern.permute.xlu0 %v5005_v2  ;;  %3288 = vset.pattern.permute.xlu1 %v5003_v3  ;;  %v3485_v4 = vld [vmem:[%s4993_s0 + $0x18] sm:$0xff] }
   0x2   :  { %118 = vperm.xlu1 %3288, %v36_v0   ;;  %951 = vperm.xlu0 %3291, %v35_v1   ;;  %v38_v5 = vld [vmem:[%s4993_s0 + $0x20] sm:$0xff]  ;;  %v41_v6 = vld [vmem:[%s4993_s0 + $0x38] sm:$0xff]  ;;  %v3498_v8 = vld [vmem:[%s4993_s0 + $0x48] sm:$0xff] }
   0x3   :  { %v3504_v9 = vld [vmem:[%s4993_s0 + $0x60] sm:$0xff]  ;;  %v3515_v11 = vld [vmem:[%s4993_s0 + $0x78] sm:$0xff]  ;;  %v3523_v12 = vld [vmem:[%s4993_s0 + $0x88] sm:$0xff] }
   0x4   :  { %v3509_v10 = vld [vmem:[%s4993_s0] sm:$0xff]  ;;  %v3531_v13 = vld [vmem:[%s4993_s0 + $0x28] sm:$0xff] }
   0x6   :  { %123 = vperm.xlu1 %3288, %v3485_v4   ;;  %963 = vperm.xlu0 %3291, %v38_v5  }
   0xa   :  { %3289 = vset.pattern.permute.xlu1 %v5007_v7  ;;  %975 = vperm.xlu0 %3291, %v41_v6  }
   0xb   :  { %563 = vperm.xlu1 %3289, %v35_v1  }
   0xe   :  { %983 = vperm.xlu0 %3291, %v3498_v8  }
   0xf   :  { %567 = vperm.xlu1 %3289, %v36_v0  }
  0x12   :  { %995 = vperm.xlu0 %3291, %v3504_v9  }
  0x13   :  { %3290 = vset.pattern.permute.xlu1 %v5005_v2 }
  0x14   :  { %947 = vperm.xlu1 %3290, %v3509_v10  }
  0x16   :  { %1007 = vperm.xlu0 %3291, %v3515_v11  }
  0x18   :  { %955 = vperm.xlu1 %3290, %v36_v0  }
  0x1a   :  { %1015 = vperm.xlu0 %3291, %v3523_v12  }
  0x1c   :  { %959 = vperm.xlu1 %3290, %v3485_v4  }
  0x1e   :  { %3304 = vset.pattern.permute.xlu0 %v5003_v3 }
  0x1f   :  { %108 = vperm.xlu0 %3304, %v3509_v10  }
  0x20   :  { %3292 = vset.pattern.permute.xlu1 %v5003_v3 }
  0x21   :  { %133 = vperm.xlu1 %3292, %v3531_v13  }
  0x22   :  { %14 = vsyncpa [#allocation3], 0  ;;  %v40_v14 = vld [vmem:[%s4993_s0 + $0x30] sm:$0xff]  ;;  %v3549_v15 = vld [vmem:[%s4993_s0 + $0xa0] sm:$0xff]  ;;  %vm3075_vm0 = vcmask 1041409   ;;  %vm3077_vm1 = vcmask 1042434  }
  0x23   :  { %113 = vperm.xlu0 %3304, %v35_v1   ;;  %v3554_v16 = vld [vmem:[%s4993_s0 + $0x40] sm:$0xff]  ;;  %v3562_v17 = vld [vmem:[%s4993_s0 + $0xb8] sm:$0xff]  ;;  %v44_v18 = vld [vmem:[%s4993_s0 + $0x50] sm:$0xff]  ;;  %vm3079_vm2 = vcmask 1043459   ;;  %vm3081_vm3 = vcmask 1044484   ;;  %vm3083_vm4 = vcmask 1045509  }
  0x24   :  { %v3571_v19 = vld [vmem:[%s4993_s0 + $0xc8] sm:$0xff]  ;;  %v3343_v20 = vld [vmem:[%s4996_s3] sm:$0xff]   ;;  %v3579_v21 = vld [vmem:[%s4993_s0 + $0x58] sm:$0xff]  ;;  %vm3085_vm5 = vcmask 1046534   ;;  %vm3087_vm6 = vcmask 1047559  }
  0x25   :  { %138 = vperm.xlu1 %3292, %v40_v14   ;;  %3188 = vmatprep.subr.bf16.mxu0 %v3343_v20  ;;  %v3586_v22 = vld [vmem:[%s4993_s0 + $0xe0] sm:$0xff]  ;;  %v3344_v23 = vld [vmem:[%s4996_s3 + $0x8] sm:$0xff]   ;;  %v3596_v24 = vld [vmem:[%s4993_s0 + $0xf8] sm:$0xff] }
  0x26   :  { %3268 = vmatprep.subr.bf16.mxu1 %v3343_v20  ;;  %3189 = vmatpush3.bf16.msra.mxu0 %v3343_v20  ;;  %v3345_v25 = vld [vmem:[%s4996_s3 + $0x10] sm:$0xff]   ;;  %v3606_v26 = vld [vmem:[%s4993_s0 + $0x108] sm:$0xff]  ;;  %v3346_v27 = vld [vmem:[%s4996_s3 + $0x18] sm:$0xff]  }
  0x27   :  { %128 = vperm.xlu0 %3304, %v38_v5   ;;  %3276 = vmatpush3.bf16.msra.mxu1 %v3343_v20  ;;  %5025 = vst [vmem:[#allocation5_spill] sm:$0xff] %v3606_v26  ;;  %v3347_v28 = vld [vmem:[%s4996_s3 + $0x20] sm:$0xff]   ;;  %v3348_v29 = vld [vmem:[%s4996_s3 + $0x28] sm:$0xff]   ;;  %v3349_v30 = vld [vmem:[%s4996_s3 + $0x30] sm:$0xff]  }
  0x28   :  { %3190 = vmatprep.subr.bf16.mxu0 %v3344_v23  ;;  %3269 = vmatprep.subr.bf16.mxu1 %v3344_v23  ;;  %v47_v31 = vld [vmem:[%s4993_s0 + $0x68] sm:$0xff]  ;;  %v3350_v32 = vld [vmem:[%s4996_s3 + $0x38] sm:$0xff]   ;;  %v48_v33 = vld [vmem:[%s4993_s0 + $0x70] sm:$0xff] }
  0x29   :  { %3293 = vset.pattern.permute.xlu1 %v5007_v7  ;;  %v50_v34 = vld [vmem:[%s4993_s0 + $0x80] sm:$0xff]  ;;  %v53_v35 = vld [vmem:[%s4993_s0 + $0x98] sm:$0xff]  ;;  %v3653_v36 = vld [vmem:[%s4993_s0 + $0xa8] sm:$0xff] }
  0x2a   :  { %575 = vperm.xlu1 %3293, %v38_v5   ;;  %3191 = vmatpush3.bf16.msra.mxu0 %v3344_v23  ;;  %v3660_v37 = vld [vmem:[%s4993_s0 + $0xc0] sm:$0xff]  ;;  %v3666_v38 = vld [vmem:[%s4993_s0 + $0xd8] sm:$0xff]  ;;  %v3677_v41 = vld [vmem:[%s4993_s0 + $0xe8] sm:$0xff] }
  0x2b   :  { %143 = vperm.xlu0 %3304, %v41_v6   ;;  %3277 = vmatpush3.bf16.msra.mxu1 %v3344_v23  ;;  %v52_v42 = vld [vmem:[%s4993_s0 + $0x90] sm:$0xff]  ;;  %v3690_v45 = vld [vmem:[%s4993_s0 + $0x100] sm:$0xff]  ;;  %v3698_v47 = vld [vmem:[%s4993_s0 + $0x118] sm:$0xff]  ;;  %v426_v23 = vlaneseq }
  0x2c   :  { %3192 = vmatprep.subr.bf16.mxu0 %v3345_v25  ;;  %3270 = vmatprep.subr.bf16.mxu1 %v3345_v25  ;;  %5026 = vst [vmem:[#allocation6_spill] sm:$0xff] %v3698_v47  ;;  %v3708_v50 = vld [vmem:[%s4993_s0 + $0x128] sm:$0xff]  ;;  %v3720_v53 = vld [vmem:[%s4993_s0 + $0x140] sm:$0xff]  ;;  %v3730_v56 = vld [vmem:[%s4993_s0 + $0x158] sm:$0xff] }
  0x2d   :  { %5027 = vst [vmem:[#allocation7_spill] sm:$0xff] %v3708_v50  ;;  %5028 = vst [vmem:[#allocation8_spill] sm:$0xff] %v3720_v53  ;;  %v3741_v59 = vld [vmem:[%s4993_s0 + $0x168] sm:$0xff] }
  0x2e   :  { %583 = vperm.xlu1 %3293, %v40_v14   ;;  %3193 = vmatpush3.bf16.msra.mxu0 %v3345_v25  ;;  %5029 = vst [vmem:[#allocation9_spill] sm:$0xff] %v3730_v56  ;;  %5031 = vst [vmem:[#allocation11_spill] sm:$0xff] %v3741_v59  ;;  %v3808_v20 = vld [vmem:[%s4993_s0 + $0x148] sm:$0xff] }
  0x2f   :  { %153 = vperm.xlu0 %3304, %v3498_v8   ;;  %3278 = vmatpush3.bf16.msra.mxu1 %v3345_v25 }
  0x30   :  { %3194 = vmatprep.subr.bf16.mxu0 %v3346_v27  ;;  %3271 = vmatprep.subr.bf16.mxu1 %v3346_v27 }
  0x32   :  { %587 = vperm.xlu1 %3293, %v41_v6   ;;  %3195 = vmatpush3.bf16.msra.mxu0 %v3346_v27 }
  0x33   :  { %168 = vperm.xlu0 %3304, %v3504_v9   ;;  %3279 = vmatpush3.bf16.msra.mxu1 %v3346_v27  ;;  %v3818_v27 = vld [vmem:[%s4993_s0 + $0x160] sm:$0xff] }
  0x34   :  { %3196 = vmatprep.subr.bf16.mxu0 %v3347_v28  ;;  %3272 = vmatprep.subr.bf16.mxu1 %v3347_v28 }
  0x36   :  { %3294 = vset.pattern.permute.xlu1 %v5005_v2  ;;  %3197 = vmatpush3.bf16.msra.mxu0 %v3347_v28 }
  0x37   :  { %183 = vperm.xlu0 %3304, %v3515_v11   ;;  %967 = vperm.xlu1 %3294, %v3531_v13  }
  0x38   :  { %3280 = vmatpush3.bf16.msra.mxu1 %v3347_v28  ;;  %3198 = vmatprep.subr.bf16.mxu0 %v3348_v29 }
  0x39   :  { %3273 = vmatprep.subr.bf16.mxu1 %v3348_v29 }
  0x3a   :  { %3199 = vmatpush3.bf16.msra.mxu0 %v3348_v29 }
  0x3b   :  { %193 = vperm.xlu0 %3304, %v3523_v12   ;;  %971 = vperm.xlu1 %3294, %v40_v14   ;;  %v3788_v14 = vld [vmem:[%s4993_s0 + $0x120] sm:$0xff] }
  0x3c   :  { %3281 = vmatpush3.bf16.msra.mxu1 %v3348_v29  ;;  %3200 = vmatprep.subr.bf16.mxu0 %v3349_v30  ;;  %5032 = vst [vmem:[#allocation12_spill] sm:$0xff] %v3788_v14  ;;  %v3823_v29 = vshrl.u32 %v426_v23, 7 }
  0x3d   :  { %3274 = vmatprep.subr.bf16.mxu1 %v3349_v30 }
  0x3e   :  { %3201 = vmatpush3.bf16.msra.mxu0 %v3349_v30  ;;  %5036 = vst [vmem:[#allocation16_spill] sm:$0xff] %v3823_v29  ;;  %v5016_v23 = vsub.s32 1, %v3823_v29 }
  0x3f   :  { %208 = vperm.xlu0 %3304, %v3549_v15   ;;  %3295 = vset.pattern.permute.xlu1 %v5003_v3 }
  0x40   :  { %148 = vperm.xlu1 %3295, %v3554_v16   ;;  %3282 = vmatpush3.bf16.msra.mxu1 %v3349_v30  ;;  %v3829_v30 = vld [vmem:[%s4993_s0 + $0xd0] sm:$0xff] }
  0x41   :  { %3202 = vmatprep.subr.bf16.mxu0 %v3350_v32  ;;  %3275 = vmatprep.subr.bf16.mxu1 %v3350_v32 }
  0x42   :  { %3203 = vmatpush3.bf16.msra.mxu0 %v3350_v32 }
  0x43   :  { %223 = vperm.xlu0 %3304, %v3562_v17   ;;  %2674 = vmatprep.subr.bf16.mxu0 %v5003_v3 }
  0x44   :  { %158 = vperm.xlu1 %3295, %v44_v18   ;;  %3283 = vmatpush3.bf16.msra.mxu1 %v3350_v32  ;;  %v3837_v32 = vld [vmem:[%s4993_s0 + $0x178] sm:$0xff] }
  0x47   :  { %233 = vperm.xlu0 %3304, %v3571_v19  }
  0x48   :  { %163 = vperm.xlu1 %3295, %v3579_v21  }
  0x4b   :  { %248 = vperm.xlu0 %3304, %v3586_v22  }
  0x4c   :  { %3296 = vset.pattern.permute.xlu1 %v5007_v7 }
  0x4d   :  { %595 = vperm.xlu1 %3296, %v3498_v8  }
  0x4f   :  { %263 = vperm.xlu0 %3304, %v3596_v24  }
  0x51   :  { %599 = vperm.xlu1 %3296, %v44_v18  }
  0x53   :  { %273 = vperm.xlu0 %3304, %v3606_v26  }
  0x55   :  { %3297 = vset.pattern.permute.xlu1 %v5005_v2 }
  0x56   :  { %979 = vperm.xlu1 %3297, %v3554_v16  }
  0x57   :  { %3315 = vset.pattern.permute.xlu0 %v5007_v7 }
  0x58   :  { %559 = vperm.xlu0 %3315, %v3509_v10  }
  0x5a   :  { %987 = vperm.xlu1 %3297, %v44_v18  }
  0x5c   :  { %571 = vperm.xlu0 %3315, %v3485_v4   ;;  %v56_v4 = vld [vmem:[%s4993_s0 + $0xb0] sm:$0xff] }
  0x5e   :  { %991 = vperm.xlu1 %3297, %v3579_v21  }
  0x60   :  { %579 = vperm.xlu0 %3315, %v3531_v13  }
  0x62   :  { %3298 = vset.pattern.permute.xlu1 %v5003_v3 }
  0x63   :  { %173 = vperm.xlu1 %3298, %v47_v31  }
  0x64   :  { %591 = vperm.xlu0 %3315, %v3554_v16  }
  0x67   :  { %178 = vperm.xlu1 %3298, %v48_v33  }
  0x68   :  { %603 = vperm.xlu0 %3315, %v3579_v21  }
  0x6b   :  { %3299 = vset.pattern.permute.xlu1 %v5007_v7 }
  0x6c   :  { %611 = vperm.xlu0 %3315, %v47_v31   ;;  %607 = vperm.xlu1 %3299, %v3504_v9  }
  0x70   :  { %615 = vperm.xlu1 %3299, %v48_v33   ;;  %623 = vperm.xlu0 %3315, %v50_v34  }
  0x74   :  { %619 = vperm.xlu1 %3299, %v3515_v11   ;;  %635 = vperm.xlu0 %3315, %v53_v35  }
  0x78   :  { %3300 = vset.pattern.permute.xlu1 %v5005_v2  ;;  %643 = vperm.xlu0 %3315, %v3653_v36  }
  0x79   :  { %999 = vperm.xlu1 %3300, %v47_v31  }
  0x7c   :  { %655 = vperm.xlu0 %3315, %v3660_v37  }
  0x7d   :  { %1003 = vperm.xlu1 %3300, %v48_v33  }
  0x80   :  { %667 = vperm.xlu0 %3315, %v3666_v38  }
  0x81   :  { %v3669_v39 = vpop.permute.xlu1 %118  ;;  %3301 = vset.pattern.permute.xlu1 %v5003_v3  ;;  %v3672_v40 = vpop.permute.xlu0 %951 }
  0x82   :  { %188 = vperm.xlu1 %3301, %v50_v34  }
  0x84   :  { %675 = vperm.xlu0 %3315, %v3677_v41  }
  0x85   :  { %v3683_v43 = vpop.permute.xlu1 %123  ;;  %v3685_v44 = vpop.permute.xlu0 %963 }
  0x86   :  { %198 = vperm.xlu1 %3301, %v52_v42  }
  0x88   :  { %687 = vperm.xlu0 %3315, %v3690_v45  }
  0x89   :  { %v3693_v46 = vpop.permute.xlu0 %975 }
  0x8a   :  { %v3700_v48 = vpop.permute.xlu1 %563  ;;  %203 = vperm.xlu1 %3301, %v53_v35  }
  0x8c   :  { %699 = vperm.xlu0 %3315, %v3698_v47   ;;  %v5042_v47 = vmov 2  }
  0x8d   :  { %v3703_v49 = vpop.permute.xlu0 %983 }
  0x8e   :  { %v3710_v51 = vpop.permute.xlu1 %567  ;;  %3302 = vset.pattern.permute.xlu1 %v5007_v7 }
  0x8f   :  { %627 = vperm.xlu1 %3302, %v3523_v12  }
  0x90   :  { %707 = vperm.xlu0 %3315, %v3708_v50  }
  0x91   :  { %v3715_v52 = vpop.permute.xlu0 %995 }
  0x93   :  { %631 = vperm.xlu1 %3302, %v52_v42   ;;  %v3722_v54 = vpop.permute.xlu1 %947 }
  0x94   :  { %719 = vperm.xlu0 %3315, %v3720_v53   ;;  %v3892_v53 = vld [vmem:[%s4993_s0 + $0x1b8] sm:$0xff] }
  0x95   :  { %v3725_v55 = vpop.permute.xlu0 %1007 }
  0x97   :  { %3303 = vset.pattern.permute.xlu1 %v5005_v2  ;;  %v3733_v57 = vpop.permute.xlu1 %955 }
  0x98   :  { %1011 = vperm.xlu1 %3303, %v50_v34   ;;  %731 = vperm.xlu0 %3315, %v3730_v56   ;;  %v5011_v34 = vsub.s32 0, %v3823_v29  ;;  %v5040_v56 = vmov 1  }
  0x99   :  { %v3736_v58 = vpop.permute.xlu0 %1015 }
  0x9a   :  { %5030 = vst [vmem:[#allocation10_spill] sm:$0xff] %v3736_v58 }
  0x9b   :  { %v3743_v60 = vpop.permute.xlu1 %959 }
  0x9c   :  { %1019 = vperm.xlu1 %3303, %v52_v42   ;;  %739 = vperm.xlu0 %3315, %v3741_v59   ;;  %v3852_v42 = vld [vmem:[%s4993_s0 + $0x188] sm:$0xff]  ;;  %v1204_v59 = vsub.s32 2, %v3823_v29 }
  0x9e   :  { %v3746_v61 = vpop.permute.xlu0 %108 }
  0xa0   :  { %1023 = vperm.xlu1 %3303, %v53_v35   ;;  %v3748_v62 = vpop.permute.xlu1 %133  ;;  %3326 = vset.pattern.permute.xlu0 %v5005_v2  ;;  %v98_v35 = vld [vmem:[%s4994_s1] sm:$0x7] }
  0xa1   :  { %1027 = vperm.xlu0 %3326, %v3549_v15  }
  0xa2   :  { %v114_v63 = vpop.permute.xlu0 %113 }
  0xa4   :  { %3305 = vset.pattern.permute.xlu1 %v5003_v3  ;;  %v3753_v0 = vpop.permute.xlu1 %138 }
  0xa5   :  { %213 = vperm.xlu1 %3305, %v3653_v36   ;;  %1039 = vperm.xlu0 %3326, %v3562_v17  }
  0xa6   :  { %v3757_v1 = vpop.permute.xlu0 %128 }
  0xa9   :  { %218 = vperm.xlu1 %3305, %v56_v4   ;;  %v3762_v5 = vpop.permute.xlu1 %575  ;;  %1047 = vperm.xlu0 %3326, %v3571_v19  }
  0xaa   :  { %v3765_v6 = vpop.permute.xlu0 %143 }
  0xad   :  { %3306 = vset.pattern.permute.xlu1 %v5007_v7  ;;  %v3768_v8 = vpop.permute.xlu1 %583  ;;  %1059 = vperm.xlu0 %3326, %v3586_v22  }
  0xae   :  { %639 = vperm.xlu1 %3306, %v3549_v15   ;;  %v3772_v9 = vpop.permute.xlu0 %153 }
  0xb1   :  { %v3774_v10 = vpop.permute.xlu1 %587  ;;  %1071 = vperm.xlu0 %3326, %v3596_v24  }
  0xb2   :  { %647 = vperm.xlu1 %3306, %v56_v4   ;;  %v3777_v11 = vpop.permute.xlu0 %168 }
  0xb5   :  { %1079 = vperm.xlu0 %3326, %v3606_v26  }
  0xb6   :  { %651 = vperm.xlu1 %3306, %v3562_v17   ;;  %v3781_v12 = vpop.permute.xlu1 %967  ;;  %v3783_v13 = vpop.permute.xlu0 %183  ;;  %v3799_v17 = vld [vmem:[%s4993_s0 + $0x138] sm:$0xff] }
  0xb9   :  { %1091 = vperm.xlu0 %3326, %v3788_v14  }
  0xba   :  { %3307 = vset.pattern.permute.xlu1 %v5005_v2  ;;  %v3792_v15 = vpop.permute.xlu1 %971  ;;  %v3794_v16 = vpop.permute.xlu0 %193 }
  0xbb   :  { %5033 = vst [vmem:[#allocation13_spill] sm:$0xff] %v3794_v16  ;;  %1031 = vperm.xlu1 %3307, %v3653_v36  }
  0xbd   :  { %1103 = vperm.xlu0 %3326, %v3799_v17  }
  0xbe   :  { %v3803_v18 = vpop.permute.xlu0 %208 }
  0xbf   :  { %5034 = vst [vmem:[#allocation14_spill] sm:$0xff] %v3803_v18  ;;  %1035 = vperm.xlu1 %3307, %v56_v4   ;;  %v3810_v21 = vpop.permute.xlu1 %148  ;;  %v3856_v4 = vrot.slane %v98_v35, %v5011_v34  ;;  %v3872_v34 = vrot.slane %v98_v35, %v5016_v23  ;;  %v3896_v18 = vrot.slane %v98_v35, %v1204_v59 }
  0xc1   :  { %1111 = vperm.xlu0 %3326, %v3808_v20   ;;  %v431_v2 = vmul.f32 %v3856_v4, %v114_v63  ;;  %v3880_v63 = vld [vmem:[%s4995_s2] ss:$0 sm:$0xff]  ;;  %v1208_v50 = vmul.f32 %v3896_v18, %v3733_v57 }
  0xc2   :  { %v3813_v25 = vpop.permute.xlu0 %223 }
  0xc3   :  { %5035 = vst [vmem:[#allocation15_spill] sm:$0xff] %v3813_v25  ;;  %3308 = vset.pattern.permute.xlu1 %v5003_v3  ;;  %v3821_v28 = vpop.permute.xlu1 %158  ;;  %v495_v29 = vadd.f32 %v3880_v63, %v431_v2  ;;  %v432_v25 = vmul.f32 %v3856_v4, %v3669_v39  ;;  %v820_v2 = vmul.f32 %v3872_v34, %v3710_v51 }
  0xc4   :  { %228 = vperm.xlu1 %3308, %v3660_v37   ;;  %v1207_v39 = vmul.f32 %v3896_v18, %v3672_v40  ;;  %v437_v40 = vmul.f32 %v3856_v4, %v3765_v6  ;;  %v822_v6 = vmul.f32 %v3872_v34, %v3762_v5 }
  0xc5   :  { %1123 = vperm.xlu0 %3326, %v3818_v27   ;;  %v496_v51 = vadd.f32 %v3880_v63, %v432_v25  ;;  %v439_v25 = vmul.f32 %v3856_v4, %v3772_v9  ;;  %v435_v9 = vmul.f32 %v3856_v4, %v3748_v62 }
  0xc6   :  { %v3832_v31 = vpop.permute.xlu0 %233  ;;  %v501_v5 = vadd.f32 %v3880_v63, %v437_v40 }
  0xc7   :  { %5037 = vst [vmem:[#allocation17_spill] sm:$0xff] %v3832_v31  ;;  %v3839_v33 = vpop.permute.xlu1 %163 }
  0xc8   :  { %238 = vperm.xlu1 %3308, %v3829_v30  }
  0xc9   :  { %1135 = vperm.xlu0 %3326, %v3837_v32  }
  0xca   :  { %v3847_v36 = vpop.permute.xlu0 %248 }
  0xcb   :  { %5038 = vst [vmem:[#allocation18_spill] sm:$0xff] %v3847_v36  ;;  %v3867_v36 = vld [vmem:[%s4993_s0 + $0x1a0] sm:$0xff] }
  0xcc   :  { %243 = vperm.xlu1 %3308, %v3666_v38   ;;  %v596_v3 = vpop.permute.xlu1 %595 }
  0xcd   :  { %1143 = vperm.xlu0 %3326, %v3852_v42   ;;  %v827_v62 = vmul.f32 %v3872_v34, %v596_v3  ;;  %v1212_v3 = vmul.f32 %v3896_v18, %v3792_v15 }
  0xce   :  { %v3862_v7 = vpop.permute.xlu0 %263 }
  0xcf   :  { %5039 = vst [vmem:[#allocation19_spill] sm:$0xff] %v3862_v7  ;;  %v430_v7 = vmul.f32 %v3856_v4, %v3746_v61  ;;  %v819_v61 = vmul.f32 %v3872_v34, %v3700_v48  ;;  %v3916_v48 = vld [vmem:[%s4993_s0 + $0x1c8] sm:$0xff] }
  0xd0   :  { %3309 = vset.pattern.permute.xlu1 %v5040_v56  ;;  %v3875_v31 = vpop.permute.xlu1 %599 }
  0xd1   :  { %659 = vperm.xlu1 %3309, %v3571_v19   ;;  %1155 = vperm.xlu0 %3326, %v3867_v36   ;;  %v433_v19 = vmul.f32 %v3856_v4, %v3683_v43  ;;  %v494_v59 = vadd.f32 %v3880_v63, %v430_v7  ;;  %v434_v43 = vmul.f32 %v3856_v4, %v3757_v1 }
  0xd2   :  { %v3887_v23 = vpop.permute.xlu0 %273  ;;  %v883_v35 = vadd.f32 %v819_v61, %v495_v29  ;;  %v1210_v7 = vmul.f32 %v3896_v18, %v3685_v44  ;;  %v884_v29 = vadd.f32 %v820_v2, %v496_v51  ;;  %v1206_v61 = vmul.f32 %v3896_v18, %v3722_v54 }
  0xd3   :  { %5041 = vst [vmem:[#allocation20_spill] sm:$0xff] %v3887_v23  ;;  %v497_v26 = vadd.f32 %v3880_v63, %v433_v19  ;;  %v498_v44 = vadd.f32 %v3880_v63, %v434_v43  ;;  %v1213_v54 = vmul.f32 %v3896_v18, %v3693_v46  ;;  %v436_v51 = vmul.f32 %v3856_v4, %v3753_v0 }
  0xd4   :  { %v1272_v2 = vadd.f32 %v1208_v50, %v884_v29  ;;  %v1209_v43 = vmul.f32 %v3896_v18, %v3743_v60  ;;  %v503_v46 = vadd.f32 %v3880_v63, %v439_v25  ;;  %v825_v50 = vmul.f32 %v3872_v34, %v3774_v10 }
  0xd5   :  { %663 = vperm.xlu1 %3309, %v3829_v30   ;;  %v3905_v23 = vpop.permute.xlu1 %979  ;;  %1167 = vperm.xlu0 %3326, %v3892_v53   ;;  %v499_v29 = vadd.f32 %v3880_v63, %v435_v9  ;;  %v500_v10 = vadd.f32 %v3880_v63, %v436_v51  ;;  %v1211_v9 = vmul.f32 %v3896_v18, %v3781_v12 }
  0xd7   :  { %v560_v58 = vpop.permute.xlu0 %559 }
  0xd8   :  { %v818_v1 = vmul.f32 %v3872_v34, %v560_v58  ;;  %v1271_v58 = vadd.f32 %v1207_v39, %v883_v35  ;;  %v824_v39 = vmul.f32 %v3872_v34, %v3768_v8  ;;  %v5043_v35 = vmov 0  }
  0xd9   :  { %3310 = vset.pattern.permute.xlu1 %v5042_v47  ;;  %v3932_v57 = vpop.permute.xlu1 %987  ;;  %1175 = vperm.xlu0 %3326, %v3916_v48   ;;  %v1215_v8 = vmul.f32 %v3896_v18, %v3703_v49 }
  0xda   :  { %v882_v19 = vadd.f32 %v818_v1, %v494_v59  ;;  %1043 = vperm.xlu1 %3310, %v3660_v37   ;;  %v886_v1 = vadd.f32 %v822_v6, %v498_v44  ;;  %v1336_v6 = vmax.f32 %v1272_v2, 0.0 }
  0xdb   :  { %v572_v16 = vpop.permute.xlu0 %571 }
  0xdc   :  { %v821_v59 = vmul.f32 %v3872_v34, %v572_v16  ;;  %v1270_v37 = vadd.f32 %v1206_v61, %v882_v19  ;;  %v1335_v16 = vmax.f32 %v1271_v58, 0.0  ;;  %v888_v19 = vadd.f32 %v824_v39, %v500_v10  ;;  %v3989_v10 = vld [vmem:[%s4993_s0 + $0xf0] sm:$0xff] }
  0xdd   :  { %v992_v0 = vpop.permute.xlu1 %991  ;;  %3337 = vset.pattern.permute.xlu0 %v5043_v35  ;;  %v889_v58 = vadd.f32 %v825_v50, %v501_v5  ;;  %v1274_v49 = vadd.f32 %v1210_v7, %v886_v1  ;;  %v1214_v50 = vmul.f32 %v3896_v18, %v3905_v23 }
  0xde   :  { %v885_v60 = vadd.f32 %v821_v59, %v497_v26  ;;  %1051 = vperm.xlu1 %3310, %v3829_v30   ;;  %v1334_v40 = vmax.f32 %v1270_v37, 0.0  ;;  %288 = vperm.xlu0 %3337, %v3788_v14   ;;  %v438_v26 = vmul.f32 %v3856_v4, %v3810_v21  ;;  %v891_v59 = vadd.f32 %v827_v62, %v503_v46 }
  0xdf   :  { %v580_v61 = vpop.permute.xlu0 %579  ;;  %v1276_v14 = vadd.f32 %v1212_v3, %v888_v19  ;;  %v441_v21 = vmul.f32 %v3856_v4, %v3839_v33  ;;  %v1277_v12 = vadd.f32 %v1213_v54, %v889_v58  ;;  %v1338_v1 = vmax.f32 %v1274_v49, 0.0 }
  0xe0   :  { %v1273_v25 = vadd.f32 %v1209_v43, %v885_v60  ;;  %v823_v30 = vmul.f32 %v3872_v34, %v580_v61  ;;  %v1398_v44 = vpack.c.bf16 %v1335_v16, %v1334_v40  ;;  %v502_v2 = vadd.f32 %v3880_v63, %v438_v26 }
  0xe1   :  { %v1279_v46 = vadd.f32 %v1215_v8, %v891_v59  ;;  %v1340_v40 = vmax.f32 %v1276_v14, 0.0  ;;  %v505_v16 = vadd.f32 %v3880_v63, %v441_v21  ;;  %v1341_v3 = vmax.f32 %v1277_v12, 0.0 }
  0xe2   :  { %v887_v51 = vadd.f32 %v823_v30, %v499_v29  ;;  %1055 = vperm.xlu1 %3310, %v3666_v38   ;;  %3204 = vmatprep.mubr.bf16.mxu0 %v1398_v44  ;;  %v174_v15 = vpop.permute.xlu1 %173  ;;  %v1337_v37 = vmax.f32 %v1273_v25, 0.0  ;;  %v440_v38 = vmul.f32 %v3856_v4, %v3821_v28  ;;  %v828_v28 = vmul.f32 %v3872_v34, %v3875_v31 }
  0xe3   :  { %v592_v43 = vpop.permute.xlu0 %591  ;;  %303 = vperm.xlu0 %3337, %v3799_v17   ;;  %v1343_v61 = vmax.f32 %v1279_v46, 0.0  ;;  %v1216_v26 = vmul.f32 %v3896_v18, %v3932_v57  ;;  %v1217_v25 = vmul.f32 %v3896_v18, %v992_v0  ;;  %v1401_v59 = vpack.c.bf16 %v1341_v3, %v1340_v40 }
  0xe4   :  { %v1275_v5 = vadd.f32 %v1211_v9, %v887_v51  ;;  %v826_v7 = vmul.f32 %v3872_v34, %v592_v43  ;;  %v1399_v39 = vpack.c.bf16 %v1337_v37, %v1336_v6  ;;  %v504_v14 = vadd.f32 %v3880_v63, %v440_v38 }
  0xe5   :  { %v442_v9 = vmul.f32 %v3856_v4, %v3777_v11  ;;  %v445_v43 = vmul.f32 %v3856_v4, %v3783_v13  ;;  %v1218_v12 = vmul.f32 %v3896_v18, %v3715_v52  ;;  %v1221_v52 = vmul.f32 %v3896_v18, %v3725_v55 }
  0xe6   :  { %v890_v62 = vadd.f32 %v826_v7, %v502_v2  ;;  %3311 = vset.pattern.permute.xlu1 %v5043_v35  ;;  %3205 = vmatmul.mubr.bf16.vlgmr.msra.gmra.mrb[0].mxu0 %v1399_v39  ;;  %v179_v33 = vpop.permute.xlu1 %178  ;;  %v1339_v60 = vmax.f32 %v1275_v5, 0.0  ;;  %v892_v19 = vadd.f32 %v828_v28, %v504_v14  ;;  %v443_v5 = vmul.f32 %v3856_v4, %v174_v15 }
  0xe7   :  { %v604_v29 = vpop.permute.xlu0 %603  ;;  %253 = vperm.xlu1 %3311, %v3677_v41   ;;  %313 = vperm.xlu0 %3337, %v3808_v20   ;;  %v506_v21 = vadd.f32 %v3880_v63, %v442_v9  ;;  %v509_v38 = vadd.f32 %v3880_v63, %v445_v43  ;;  %v444_v15 = vmul.f32 %v3856_v4, %v179_v33  ;;  %v5044_v9 = vld [vmem:[#allocation13_spill] sm:$0xff] }
  0xe8   :  { %v1278_v54 = vadd.f32 %v1214_v50, %v890_v62  ;;  %v829_v23 = vmul.f32 %v3872_v34, %v604_v29  ;;  %v1400_v8 = vpack.c.bf16 %v1339_v60, %v1338_v1  ;;  %v1280_v51 = vadd.f32 %v1216_v26, %v892_v19 }
  0xe9   :  { %v507_v62 = vadd.f32 %v3880_v63, %v443_v5  ;;  %v508_v33 = vadd.f32 %v3880_v63, %v444_v15 }
  0xea   :  { %v1342_v30 = vmax.f32 %v1278_v54, 0.0  ;;  %v893_v31 = vadd.f32 %v829_v23, %v505_v16  ;;  %3208 = vmatprep.mubr.bf16.mxu0 %v1400_v8  ;;  %v1344_v11 = vmax.f32 %v1280_v51, 0.0  ;;  %v447_v51 = vmul.f32 %v3856_v4, %v5044_v9 }
  0xeb   :  { %v612_v44 = vpop.permute.xlu0 %611  ;;  %258 = vperm.xlu1 %3311, %v3989_v10   ;;  %v608_v6 = vpop.permute.xlu1 %607  ;;  %328 = vperm.xlu0 %3337, %v3818_v27  }
  0xec   :  { %v1281_v58 = vadd.f32 %v1217_v25, %v893_v31  ;;  %v1402_v49 = vpack.c.bf16 %v1343_v61, %v1342_v30  ;;  %v830_v2 = vmul.f32 %v3872_v34, %v608_v6  ;;  %v831_v13 = vmul.f32 %v3872_v34, %v612_v44 }
  0xee   :  { %3209 = vmatmul.mubr.bf16.gmra.mrb[4].mxu0 %v1401_v59  ;;  %v1345_v37 = vmax.f32 %v1281_v58, 0.0  ;;  %v894_v46 = vadd.f32 %v830_v2, %v506_v21  ;;  %v895_v16 = vadd.f32 %v831_v13, %v507_v62  ;;  %v4064_v21 = vld [vmem:[%s4993_s0 + $0x180] sm:$0xff]  ;;  %v511_v2 = vadd.f32 %v3880_v63, %v447_v51 }
  0xef   :  { %3312 = vset.pattern.permute.xlu1 %v5040_v56  ;;  %3212 = vmatprep.mubr.bf16.mxu0 %v1402_v49  ;;  %v616_v57 = vpop.permute.xlu1 %615  ;;  %v4000_v0 = vpop.permute.xlu0 %623 }
  0xf0   :  { %671 = vperm.xlu1 %3312, %v3586_v22   ;;  %343 = vperm.xlu0 %3337, %v3837_v32   ;;  %v1403_v22 = vpack.c.bf16 %v1345_v37, %v1344_v11  ;;  %v832_v60 = vmul.f32 %v3872_v34, %v616_v57  ;;  %v1282_v29 = vadd.f32 %v1218_v12, %v894_v46  ;;  %v5045_v57 = vld [vmem:[#allocation6_spill] sm:$0xff]  ;;  %v4077_v12 = vld [vmem:[%s4993_s0 + $0x198] sm:$0xff] }
  0xf1   :  { %v834_v46 = vmul.f32 %v3872_v34, %v4000_v0 }
  0xf2   :  { %v896_v8 = vadd.f32 %v832_v60, %v508_v33 }
  0xf3   :  { %v620_v7 = vpop.permute.xlu1 %619  ;;  %v4009_v39 = vpop.permute.xlu0 %635 }
  0xf4   :  { %679 = vperm.xlu1 %3312, %v3989_v10   ;;  %v833_v50 = vmul.f32 %v3872_v34, %v620_v7  ;;  %353 = vperm.xlu0 %3337, %v3852_v42   ;;  %v837_v0 = vmul.f32 %v3872_v34, %v4009_v39 }
  0xf6   :  { %3213 = vmatmul.mubr.bf16.gmra.mrb[8].mxu0 %v1403_v22  ;;  %v897_v28 = vadd.f32 %v833_v50, %v509_v38  ;;  %v5046_v22 = vld [vmem:[#allocation5_spill] sm:$0xff]  ;;  %v5047_v38 = vld [vmem:[#allocation10_spill] sm:$0xff] }
  0xf7   :  { %v4020_v1 = vpop.permute.xlu0 %643  ;;  %v1223_v13 = vmul.f32 %v3896_v18, %v5047_v38 }
  0xf8   :  { %683 = vperm.xlu1 %3312, %v3596_v24   ;;  %v1000_v40 = vpop.permute.xlu1 %999  ;;  %368 = vperm.xlu0 %3337, %v3867_v36   ;;  %v1285_v55 = vadd.f32 %v1221_v52, %v897_v28  ;;  %v1346_v24 = vmax.f32 %v1282_v29, 0.0 }
  0xf9   :  { %v1219_v54 = vmul.f32 %v3896_v18, %v1000_v40 }
  0xfa   :  { %v1349_v6 = vmax.f32 %v1285_v55, 0.0 }
  0xfb   :  { %v1283_v23 = vadd.f32 %v1219_v54, %v895_v16  ;;  %v4032_v26 = vpop.permute.xlu0 %655 }
  0xfc   :  { %3313 = vset.pattern.permute.xlu1 %v5042_v47  ;;  %v1004_v14 = vpop.permute.xlu1 %1003  ;;  %383 = vperm.xlu0 %3337, %v3892_v53  }
  0xfd   :  { %v1347_v3 = vmax.f32 %v1283_v23, 0.0  ;;  %v1220_v61 = vmul.f32 %v3896_v18, %v1004_v14  ;;  %1063 = vperm.xlu1 %3313, %v3677_v41   ;;  %v4042_v41 = vld [vmem:[%s4993_s0 + $0x1e0] sm:$0xff] }
  0xff   :  { %v1284_v25 = vadd.f32 %v1220_v61, %v896_v8  ;;  %v1404_v30 = vpack.c.bf16 %v1347_v3, %v1346_v24  ;;  %v4037_v58 = vpop.permute.xlu0 %667 }
 0x100   :  { %393 = vperm.xlu0 %3337, %v3916_v48   ;;  %v68_v48 = vld [vmem:[%s4993_s0 + $0x110] sm:$0xff] }
 0x101   :  { %v1348_v31 = vmax.f32 %v1284_v25, 0.0  ;;  %1067 = vperm.xlu1 %3313, %v3989_v10   ;;  %3216 = vmatprep.mubr.bf16.mxu0 %v1404_v30  ;;  %v189_v44 = vpop.permute.xlu1 %188  ;;  %v4053_v10 = vld [vmem:[%s4993_s0 + $0x1f8] sm:$0xff] }
 0x102   :  { %v446_v11 = vmul.f32 %v3856_v4, %v189_v44 }
 0x103   :  { %v1405_v19 = vpack.c.bf16 %v1349_v6, %v1348_v31  ;;  %v4055_v49 = vpop.permute.xlu0 %675 }
 0x104   :  { %408 = vperm.xlu0 %3337, %v4042_v41   ;;  %v510_v50 = vadd.f32 %v3880_v63, %v446_v11  ;;  %v5048_v11 = vld [vmem:[#allocation7_spill] sm:$0xff] }
 0x105   :  { %3314 = vset.pattern.permute.xlu1 %v5043_v35  ;;  %3217 = vmatmul.mubr.bf16.gmra.mrb[12].mxu0 %v1405_v19  ;;  %v199_v53 = vpop.permute.xlu1 %198 }
 0x106   :  { %268 = vperm.xlu1 %3314, %v3690_v45   ;;  %v448_v52 = vmul.f32 %v3856_v4, %v199_v53  ;;  %v898_v29 = vadd.f32 %v834_v46, %v510_v50 }
 0x107   :  { %v4067_v43 = vpop.permute.xlu0 %687 }
 0x108   :  { %423 = vperm.xlu0 %3337, %v4053_v10   ;;  %v512_v23 = vadd.f32 %v3880_v63, %v448_v52  ;;  %v5051_v52 = vld [vmem:[#allocation15_spill] sm:$0xff] }
 0x109   :  { %v204_v59 = vpop.permute.xlu1 %203 }
 0x10a   :  { %278 = vperm.xlu1 %3314, %v68_v48   ;;  %v449_v40 = vmul.f32 %v3856_v4, %v204_v59 }
 0x10b   :  { %v4086_v62 = vpop.permute.xlu0 %699 }
 0x10c   :  { %3339 = vset.pattern.permute.xlu0 %v5040_v56  ;;  %v513_v55 = vadd.f32 %v3880_v63, %v449_v40 }
 0x10d   :  { %751 = vperm.xlu0 %3339, %v4064_v21  }
 0x10e   :  { %283 = vperm.xlu1 %3314, %v5045_v57   ;;  %v628_v37 = vpop.permute.xlu1 %627  ;;  %v901_v39 = vadd.f32 %v837_v0, %v513_v55  ;;  %v839_v0 = vmul.f32 %v3872_v34, %v4020_v1 }
 0x10f   :  { %v835_v5 = vmul.f32 %v3872_v34, %v628_v37  ;;  %v4096_v14 = vpop.permute.xlu0 %707 }
 0x111   :  { %763 = vperm.xlu0 %3339, %v4077_v12   ;;  %v899_v15 = vadd.f32 %v835_v5, %v511_v2  ;;  %v4115_v5 = vld [vmem:[%s4993_s0 + $0x1a8] sm:$0xff] }
 0x112   :  { %3316 = vset.pattern.permute.xlu1 %v5040_v56  ;;  %v632_v7 = vpop.permute.xlu1 %631 }
 0x113   :  { %691 = vperm.xlu1 %3316, %v5046_v22   ;;  %v1287_v16 = vadd.f32 %v1223_v13, %v899_v15  ;;  %v836_v54 = vmul.f32 %v3872_v34, %v632_v7  ;;  %v4102_v19 = vpop.permute.xlu0 %719  ;;  %v5049_v22 = vld [vmem:[#allocation14_spill] sm:$0xff]  ;;  %v5050_v15 = vld [vmem:[#allocation12_spill] sm:$0xff] }
 0x114   :  { %v450_v38 = vmul.f32 %v3856_v4, %v5049_v22 }
 0x115   :  { %v1351_v24 = vmax.f32 %v1287_v16, 0.0  ;;  %v900_v25 = vadd.f32 %v836_v54, %v512_v23  ;;  %771 = vperm.xlu0 %3339, %v4115_v5  }
 0x116   :  { %v514_v46 = vadd.f32 %v3880_v63, %v450_v38 }
 0x117   :  { %695 = vperm.xlu1 %3316, %v68_v48   ;;  %v1012_v60 = vpop.permute.xlu1 %1011 }
 0x118   :  { %v1222_v28 = vmul.f32 %v3896_v18, %v1012_v60  ;;  %v453_v60 = vmul.f32 %v3856_v4, %v5051_v52  ;;  %v76_v52 = vld [vmem:[%s4993_s0 + $0x150] sm:$0xff] }
 0x11a   :  { %v1286_v33 = vadd.f32 %v1222_v28, %v898_v29 }
 0x11b   :  { %3317 = vset.pattern.permute.xlu1 %v5042_v47  ;;  %v1020_v8 = vpop.permute.xlu1 %1019 }
 0x11c   :  { %v1350_v3 = vmax.f32 %v1286_v33, 0.0  ;;  %v1224_v61 = vmul.f32 %v3896_v18, %v1020_v8  ;;  %1075 = vperm.xlu1 %3317, %v3690_v45   ;;  %v4105_v45 = vpop.permute.xlu0 %731  ;;  %v517_v33 = vadd.f32 %v3880_v63, %v453_v60 }
 0x11e   :  { %v1406_v30 = vpack.c.bf16 %v1351_v24, %v1350_v3  ;;  %v1288_v44 = vadd.f32 %v1224_v61, %v900_v25 }
 0x11f   :  { %v1024_v31 = vpop.permute.xlu1 %1023 }
 0x120   :  { %v1225_v6 = vmul.f32 %v3896_v18, %v1024_v31  ;;  %1083 = vperm.xlu1 %3317, %v68_v48   ;;  %3220 = vmatprep.mubr.bf16.mxu0 %v1406_v30  ;;  %v1352_v59 = vmax.f32 %v1288_v44, 0.0  ;;  %v72_v48 = vld [vmem:[%s4993_s0 + $0x130] sm:$0xff] }
 0x122   :  { %v1289_v53 = vadd.f32 %v1225_v6, %v901_v39 }
 0x124   :  { %v1353_v9 = vmax.f32 %v1289_v53, 0.0  ;;  %1087 = vperm.xlu1 %3317, %v5045_v57   ;;  %v214_v51 = vpop.permute.xlu1 %213  ;;  %v4117_v57 = vpop.permute.xlu0 %739 }
 0x125   :  { %v451_v40 = vmul.f32 %v3856_v4, %v214_v51 }
 0x126   :  { %v1407_v37 = vpack.c.bf16 %v1353_v9, %v1352_v59 }
 0x127   :  { %v515_v23 = vadd.f32 %v3880_v63, %v451_v40 }
 0x128   :  { %3318 = vset.pattern.permute.xlu1 %v5043_v35  ;;  %3221 = vmatmul.mubr.bf16.gmra.mrb[16].mxu0 %v1407_v37  ;;  %v219_v2 = vpop.permute.xlu1 %218  ;;  %v1028_v16 = vpop.permute.xlu0 %1027 }
 0x129   :  { %293 = vperm.xlu1 %3318, %v5048_v11   ;;  %v1226_v54 = vmul.f32 %v3896_v18, %v1028_v16  ;;  %v452_v3 = vmul.f32 %v3856_v4, %v219_v2  ;;  %v903_v44 = vadd.f32 %v839_v0, %v515_v23  ;;  %v5054_v16 = vld [vmem:[#allocation9_spill] sm:$0xff]  ;;  %v4164_v0 = vld [vmem:[%s4993_s0 + $0x1d8] sm:$0xff] }
 0x12b   :  { %v516_v1 = vadd.f32 %v3880_v63, %v452_v3 }
 0x12c   :  { %v1040_v55 = vpop.permute.xlu0 %1039 }
 0x12d   :  { %298 = vperm.xlu1 %3318, %v72_v48   ;;  %v640_v7 = vpop.permute.xlu1 %639  ;;  %v1229_v24 = vmul.f32 %v3896_v18, %v1040_v55  ;;  %v842_v55 = vmul.f32 %v3872_v34, %v4032_v26  ;;  %v845_v26 = vmul.f32 %v3872_v34, %v4037_v58 }
 0x12e   :  { %v838_v50 = vmul.f32 %v3872_v34, %v640_v7 }
 0x130   :  { %v902_v28 = vadd.f32 %v838_v50, %v514_v46  ;;  %v1048_v23 = vpop.permute.xlu0 %1047 }
 0x131   :  { %3319 = vset.pattern.permute.xlu1 %v5040_v56  ;;  %v648_v13 = vpop.permute.xlu1 %647 }
 0x132   :  { %703 = vperm.xlu1 %3319, %v5050_v15   ;;  %v1290_v61 = vadd.f32 %v1226_v54, %v902_v28  ;;  %v840_v30 = vmul.f32 %v3872_v34, %v648_v13  ;;  %v5052_v15 = vld [vmem:[#allocation8_spill] sm:$0xff] }
 0x134   :  { %v1354_v53 = vmax.f32 %v1290_v61, 0.0  ;;  %v904_v9 = vadd.f32 %v840_v30, %v516_v1 }
 0x135   :  { %v652_v29 = vpop.permute.xlu1 %651 }
 0x136   :  { %711 = vperm.xlu1 %3319, %v72_v48   ;;  %v841_v8 = vmul.f32 %v3872_v34, %v652_v29 }
 0x138   :  { %v905_v31 = vadd.f32 %v841_v8, %v517_v33 }
 0x13a   :  { %715 = vperm.xlu1 %3319, %v3799_v17   ;;  %v1032_v25 = vpop.permute.xlu1 %1031  ;;  %v1293_v51 = vadd.f32 %v1229_v24, %v905_v31  ;;  %v1231_v24 = vmul.f32 %v3896_v18, %v1048_v23  ;;  %v5056_v23 = vld [vmem:[#allocation18_spill] sm:$0xff] }
 0x13b   :  { %v1227_v39 = vmul.f32 %v3896_v18, %v1032_v25 }
 0x13c   :  { %v1357_v22 = vmax.f32 %v1293_v51, 0.0 }
 0x13d   :  { %v1291_v6 = vadd.f32 %v1227_v39, %v903_v44 }
 0x13e   :  { %3320 = vset.pattern.permute.xlu1 %v5042_v47  ;;  %v1036_v59 = vpop.permute.xlu1 %1035 }
 0x13f   :  { %v1355_v37 = vmax.f32 %v1291_v6, 0.0  ;;  %v1228_v2 = vmul.f32 %v3896_v18, %v1036_v59  ;;  %1095 = vperm.xlu1 %3320, %v5048_v11   ;;  %v4152_v11 = vld [vmem:[%s4993_s0 + $0x1c0] sm:$0xff] }
 0x140   :  { %783 = vperm.xlu0 %3339, %v4152_v11  }
 0x141   :  { %v1292_v17 = vadd.f32 %v1228_v2, %v904_v9  ;;  %v1408_v7 = vpack.c.bf16 %v1355_v37, %v1354_v53 }
 0x143   :  { %v1356_v38 = vmax.f32 %v1292_v17, 0.0  ;;  %1099 = vperm.xlu1 %3320, %v72_v48   ;;  %3224 = vmatprep.mubr.bf16.mxu0 %v1408_v7  ;;  %v229_v13 = vpop.permute.xlu1 %228  ;;  %v5053_v48 = vld [vmem:[#allocation17_spill] sm:$0xff] }
 0x144   :  { %v455_v40 = vmul.f32 %v3856_v4, %v5053_v48  ;;  %v454_v54 = vmul.f32 %v3856_v4, %v229_v13  ;;  %795 = vperm.xlu0 %3339, %v4164_v0  }
 0x145   :  { %v1409_v46 = vpack.c.bf16 %v1357_v22, %v1356_v38 }
 0x146   :  { %v519_v28 = vadd.f32 %v3880_v63, %v455_v40  ;;  %v518_v3 = vadd.f32 %v3880_v63, %v454_v54 }
 0x147   :  { %3321 = vset.pattern.permute.xlu1 %v5043_v35  ;;  %3225 = vmatmul.mubr.bf16.gmra.mrb[20].mxu0 %v1409_v46  ;;  %v239_v50 = vpop.permute.xlu1 %238 }
 0x148   :  { %308 = vperm.xlu1 %3321, %v5052_v15   ;;  %v456_v25 = vmul.f32 %v3856_v4, %v239_v50  ;;  %v906_v39 = vadd.f32 %v842_v55, %v518_v3 }
 0x14a   :  { %v520_v53 = vadd.f32 %v3880_v63, %v456_v25  ;;  %v5057_v25 = vld [vmem:[#allocation19_spill] sm:$0xff] }
 0x14b   :  { %v244_v60 = vpop.permute.xlu1 %243 }
 0x14c   :  { %318 = vperm.xlu1 %3321, %v76_v52   ;;  %v457_v31 = vmul.f32 %v3856_v4, %v244_v60 }
 0x14e   :  { %v521_v9 = vadd.f32 %v3880_v63, %v457_v31 }
 0x150   :  { %323 = vperm.xlu1 %3321, %v5054_v16   ;;  %v660_v29 = vpop.permute.xlu1 %659  ;;  %v909_v13 = vadd.f32 %v845_v26, %v521_v9 }
 0x151   :  { %v843_v33 = vmul.f32 %v3872_v34, %v660_v29  ;;  %v4190_v29 = vld [vmem:[%s4993_s0 + $0x1e8] sm:$0xff] }
 0x152   :  { %803 = vperm.xlu0 %3339, %v4190_v29  }
 0x153   :  { %v907_v61 = vadd.f32 %v843_v33, %v519_v28  ;;  %v5055_v28 = vld [vmem:[#allocation11_spill] sm:$0xff] }
 0x154   :  { %3322 = vset.pattern.permute.xlu1 %v5040_v56  ;;  %v664_v8 = vpop.permute.xlu1 %663 }
 0x155   :  { %723 = vperm.xlu1 %3322, %v3808_v20   ;;  %v1295_v44 = vadd.f32 %v1231_v24, %v907_v61  ;;  %v844_v20 = vmul.f32 %v3872_v34, %v664_v8  ;;  %v458_v8 = vmul.f32 %v3856_v4, %v5056_v23 }
 0x156   :  { %3341 = vset.pattern.permute.xlu0 %v5042_v47 }
 0x157   :  { %v1359_v51 = vmax.f32 %v1295_v44, 0.0  ;;  %v908_v17 = vadd.f32 %v844_v20, %v520_v53  ;;  %1187 = vperm.xlu0 %3341, %v4042_v41   ;;  %v522_v61 = vadd.f32 %v3880_v63, %v458_v8 }
 0x159   :  { %727 = vperm.xlu1 %3322, %v76_v52   ;;  %v1044_v30 = vpop.permute.xlu1 %1043 }
 0x15a   :  { %v1230_v1 = vmul.f32 %v3896_v18, %v1044_v30  ;;  %v461_v30 = vmul.f32 %v3856_v4, %v5057_v25 }
 0x15b   :  { %1199 = vperm.xlu0 %3341, %v4053_v10  }
 0x15c   :  { %v1294_v6 = vadd.f32 %v1230_v1, %v906_v39  ;;  %v525_v20 = vadd.f32 %v3880_v63, %v461_v30 }
 0x15d   :  { %3323 = vset.pattern.permute.xlu1 %v5042_v47  ;;  %v1052_v59 = vpop.permute.xlu1 %1051 }
 0x15e   :  { %v1358_v37 = vmax.f32 %v1294_v6, 0.0  ;;  %v1232_v2 = vmul.f32 %v3896_v18, %v1052_v59  ;;  %1107 = vperm.xlu1 %3323, %v5052_v15   ;;  %v847_v6 = vmul.f32 %v3872_v34, %v4055_v49 }
 0x160   :  { %v1410_v7 = vpack.c.bf16 %v1359_v51, %v1358_v37  ;;  %v1296_v38 = vadd.f32 %v1232_v2, %v908_v17 }
 0x161   :  { %v1056_v22 = vpop.permute.xlu1 %1055 }
 0x162   :  { %v1233_v58 = vmul.f32 %v3896_v18, %v1056_v22  ;;  %1115 = vperm.xlu1 %3323, %v76_v52   ;;  %3228 = vmatprep.mubr.bf16.mxu0 %v1410_v7  ;;  %v1360_v50 = vmax.f32 %v1296_v38, 0.0  ;;  %v1060_v52 = vpop.permute.xlu0 %1059 }
 0x163   :  { %v1234_v1 = vmul.f32 %v3896_v18, %v1060_v52 }
 0x164   :  { %v1297_v46 = vadd.f32 %v1233_v58, %v909_v13 }
 0x166   :  { %v1361_v60 = vmax.f32 %v1297_v46, 0.0  ;;  %1119 = vperm.xlu1 %3323, %v5054_v16   ;;  %v254_v48 = vpop.permute.xlu1 %253  ;;  %v80_v16 = vld [vmem:[%s4993_s0 + $0x170] sm:$0xff]  ;;  %v1072_v33 = vpop.permute.xlu0 %1071 }
 0x167   :  { %v459_v31 = vmul.f32 %v3856_v4, %v254_v48  ;;  %v1237_v9 = vmul.f32 %v3896_v18, %v1072_v33 }
 0x168   :  { %v1411_v40 = vpack.c.bf16 %v1361_v60, %v1360_v50 }
 0x169   :  { %v523_v26 = vadd.f32 %v3880_v63, %v459_v31 }
 0x16a   :  { %3324 = vset.pattern.permute.xlu1 %v5043_v35  ;;  %3229 = vmatmul.mubr.bf16.gmra.mrb[24].mxu0 %v1411_v40  ;;  %v259_v15 = vpop.permute.xlu1 %258  ;;  %v4202_v3 = vpop.permute.xlu0 %1079 }
 0x16b   :  { %333 = vperm.xlu1 %3324, %v5055_v28   ;;  %v460_v53 = vmul.f32 %v3856_v4, %v259_v15  ;;  %v911_v17 = vadd.f32 %v847_v6, %v523_v26  ;;  %v850_v6 = vmul.f32 %v3872_v34, %v4067_v43 }
 0x16d   :  { %v524_v7 = vadd.f32 %v3880_v63, %v460_v53 }
 0x16e   :  { %v4217_v10 = vpop.permute.xlu0 %1091 }
 0x16f   :  { %338 = vperm.xlu1 %3324, %v80_v16   ;;  %v672_v54 = vpop.permute.xlu1 %671 }
 0x170   :  { %v846_v24 = vmul.f32 %v3872_v34, %v672_v54 }
 0x172   :  { %v910_v39 = vadd.f32 %v846_v24, %v522_v61  ;;  %v4225_v38 = vpop.permute.xlu0 %1103  ;;  %v5058_v24 = vld [vmem:[#allocation20_spill] sm:$0xff] }
 0x173   :  { %3325 = vset.pattern.permute.xlu1 %v5040_v56  ;;  %v680_v55 = vpop.permute.xlu1 %679  ;;  %v463_v25 = vmul.f32 %v3856_v4, %v5058_v24 }
 0x174   :  { %735 = vperm.xlu1 %3325, %v3818_v27   ;;  %v1298_v59 = vadd.f32 %v1234_v1, %v910_v39  ;;  %v848_v37 = vmul.f32 %v3872_v34, %v680_v55 }
 0x175   :  { %v527_v39 = vadd.f32 %v3880_v63, %v463_v25 }
 0x176   :  { %v1362_v13 = vmax.f32 %v1298_v59, 0.0  ;;  %v912_v46 = vadd.f32 %v848_v37, %v524_v7  ;;  %v4230_v33 = vpop.permute.xlu0 %1111  ;;  %v853_v7 = vmul.f32 %v3872_v34, %v4086_v62 }
 0x177   :  { %v684_v44 = vpop.permute.xlu1 %683 }
 0x178   :  { %743 = vperm.xlu1 %3325, %v80_v16   ;;  %v849_v27 = vmul.f32 %v3872_v34, %v684_v44 }
 0x17a   :  { %v913_v2 = vadd.f32 %v849_v27, %v525_v20  ;;  %v4237_v55 = vpop.permute.xlu0 %1123  ;;  %v1239_v27 = vmul.f32 %v3896_v18, %v4202_v3 }
 0x17c   :  { %747 = vperm.xlu1 %3325, %v3837_v32   ;;  %v1064_v51 = vpop.permute.xlu1 %1063  ;;  %v1301_v50 = vadd.f32 %v1237_v9, %v913_v2 }
 0x17d   :  { %v1235_v49 = vmul.f32 %v3896_v18, %v1064_v51 }
 0x17e   :  { %v1365_v15 = vmax.f32 %v1301_v50, 0.0 }
 0x17f   :  { %v1299_v22 = vadd.f32 %v1235_v49, %v911_v17 }
 0x180   :  { %3327 = vset.pattern.permute.xlu1 %v5042_v47  ;;  %v1068_v58 = vpop.permute.xlu1 %1067 }
 0x181   :  { %v1363_v60 = vmax.f32 %v1299_v22, 0.0  ;;  %v1236_v32 = vmul.f32 %v3896_v18, %v1068_v58  ;;  %1127 = vperm.xlu1 %3327, %v5055_v28   ;;  %v84_v28 = vld [vmem:[%s4993_s0 + $0x190] sm:$0xff] }
 0x183   :  { %v1300_v48 = vadd.f32 %v1236_v32, %v912_v46  ;;  %v1412_v40 = vpack.c.bf16 %v1363_v60, %v1362_v13 }
 0x185   :  { %v1364_v52 = vmax.f32 %v1300_v48, 0.0  ;;  %1131 = vperm.xlu1 %3327, %v80_v16   ;;  %3232 = vmatprep.mubr.bf16.mxu0 %v1412_v40  ;;  %v269_v54 = vpop.permute.xlu1 %268  ;;  %v4239_v16 = vpop.permute.xlu0 %1135 }
 0x186   :  { %v462_v31 = vmul.f32 %v3856_v4, %v269_v54 }
 0x187   :  { %v1413_v23 = vpack.c.bf16 %v1365_v15, %v1364_v52 }
 0x188   :  { %v526_v26 = vadd.f32 %v3880_v63, %v462_v31 }
 0x189   :  { %3328 = vset.pattern.permute.xlu1 %v5043_v35  ;;  %3233 = vmatmul.mubr.bf16.gmra.mrb[28].mxu0 %v1413_v23  ;;  %v279_v8 = vpop.permute.xlu1 %278  ;;  %v4249_v20 = vpop.permute.xlu0 %1143 }
 0x18a   :  { %348 = vperm.xlu1 %3328, %v4064_v21   ;;  %v464_v59 = vmul.f32 %v3856_v4, %v279_v8 }
 0x18c   :  { %v528_v3 = vadd.f32 %v3880_v63, %v464_v59  ;;  %v855_v59 = vmul.f32 %v3872_v34, %v4096_v14 }
 0x18d   :  { %v284_v61 = vpop.permute.xlu1 %283  ;;  %v4259_v17 = vpop.permute.xlu0 %1155 }
 0x18e   :  { %358 = vperm.xlu1 %3328, %v84_v28   ;;  %v465_v51 = vmul.f32 %v3856_v4, %v284_v61 }
 0x190   :  { %v529_v13 = vadd.f32 %v3880_v63, %v465_v51 }
 0x191   :  { %v4269_v40 = vpop.permute.xlu0 %1167 }
 0x192   :  { %363 = vperm.xlu1 %3328, %v4077_v12   ;;  %v692_v30 = vpop.permute.xlu1 %691  ;;  %v917_v62 = vadd.f32 %v853_v7, %v529_v13 }
 0x193   :  { %v851_v44 = vmul.f32 %v3872_v34, %v692_v30 }
 0x195   :  { %v915_v53 = vadd.f32 %v851_v44, %v527_v39 }
 0x196   :  { %3329 = vset.pattern.permute.xlu1 %v5040_v56  ;;  %v696_v1 = vpop.permute.xlu1 %695 }
 0x197   :  { %755 = vperm.xlu1 %3329, %v3852_v42   ;;  %v914_v42 = vadd.f32 %v850_v6, %v526_v26  ;;  %v1303_v2 = vadd.f32 %v1239_v27, %v915_v53  ;;  %v852_v43 = vmul.f32 %v3872_v34, %v696_v1  ;;  %v4293_v53 = vld [vmem:[%s4997_s4] ss:$0 sm:$0xff] }
 0x199   :  { %v1367_v50 = vmax.f32 %v1303_v2, 0.0  ;;  %v916_v60 = vadd.f32 %v852_v43, %v528_v3 }
 0x19b   :  { %759 = vperm.xlu1 %3329, %v84_v28   ;;  %v1076_v9 = vpop.permute.xlu1 %1075 }
 0x19c   :  { %v1238_v37 = vmul.f32 %v3896_v18, %v1076_v9 }
 0x19e   :  { %v1302_v49 = vadd.f32 %v1238_v37, %v914_v42  ;;  %v1242_v42 = vmul.f32 %v3896_v18, %v4217_v10  ;;  %v1245_v10 = vmul.f32 %v3896_v18, %v4225_v38  ;;  %v4318_v38 = vld [vmem:[%s4995_s2] ss:$0 sm:$0xff] }
 0x19f   :  { %3330 = vset.pattern.permute.xlu1 %v5042_v47  ;;  %v1084_v22 = vpop.permute.xlu1 %1083 }
 0x1a0   :  { %v1240_v58 = vmul.f32 %v3896_v18, %v1084_v22  ;;  %1139 = vperm.xlu1 %3330, %v4064_v21   ;;  %v1366_v46 = vmax.f32 %v1302_v49, 0.0  ;;  %v4273_v21 = vpop.permute.xlu0 %1175 }
 0x1a2   :  { %v1414_v32 = vpack.c.bf16 %v1367_v50, %v1366_v46  ;;  %v1304_v15 = vadd.f32 %v1240_v58, %v916_v60 }
 0x1a3   :  { %v1088_v48 = vpop.permute.xlu1 %1087 }
 0x1a4   :  { %v1241_v52 = vmul.f32 %v3896_v18, %v1088_v48  ;;  %1147 = vperm.xlu1 %3330, %v84_v28   ;;  %3236 = vmatprep.mubr.bf16.mxu1 %v1414_v32  ;;  %v1368_v23 = vmax.f32 %v1304_v15, 0.0  ;;  %v4280_v28 = vld [vmem:[%s4993_s0 + $0x1b0] sm:$0xff]  ;;  %v289_v30 = vpop.permute.xlu0 %288  ;;  %v3391_v15 = vld [vmem:[%s4993_s0 + $0x1b8] sm:$0xff] }
 0x1a6   :  { %v1305_v54 = vadd.f32 %v1241_v52, %v917_v62 }
 0x1a8   :  { %v1369_v8 = vmax.f32 %v1305_v54, 0.0  ;;  %1151 = vperm.xlu1 %3330, %v4077_v12   ;;  %v294_v61 = vpop.permute.xlu1 %293  ;;  %v466_v12 = vmul.f32 %v3856_v4, %v289_v30  ;;  %v304_v44 = vpop.permute.xlu0 %303 }
 0x1a9   :  { %v467_v39 = vmul.f32 %v3856_v4, %v294_v61  ;;  %v469_v27 = vmul.f32 %v3856_v4, %v304_v44 }
 0x1aa   :  { %v1415_v24 = vpack.c.bf16 %v1369_v8, %v1368_v23  ;;  %v530_v6 = vadd.f32 %v3880_v63, %v466_v12 }
 0x1ab   :  { %v531_v9 = vadd.f32 %v3880_v63, %v467_v39  ;;  %v533_v49 = vadd.f32 %v3880_v63, %v469_v27 }
 0x1ac   :  { %3331 = vset.pattern.permute.xlu1 %v5043_v35  ;;  %3237 = vmatmul.mubr.bf16.vlgmr.msra.gmra.mrb[0].mxu1 %v1415_v24  ;;  %v299_v25 = vpop.permute.xlu1 %298 }
 0x1ad   :  { %373 = vperm.xlu1 %3331, %v4115_v5   ;;  %v468_v22 = vmul.f32 %v3856_v4, %v299_v25  ;;  %v919_v50 = vadd.f32 %v855_v59, %v531_v9 }
 0x1af   :  { %v532_v61 = vadd.f32 %v4318_v38, %v468_v22 }
 0x1b1   :  { %378 = vperm.xlu1 %3331, %v4280_v28   ;;  %v704_v31 = vpop.permute.xlu1 %703 }
 0x1b2   :  { %v854_v26 = vmul.f32 %v3872_v34, %v704_v31 }
 0x1b4   :  { %v918_v2 = vadd.f32 %v854_v26, %v530_v6 }
 0x1b5   :  { %3332 = vset.pattern.permute.xlu1 %v5040_v56  ;;  %v712_v1 = vpop.permute.xlu1 %711 }
 0x1b6   :  { %767 = vperm.xlu1 %3332, %v3867_v36   ;;  %v1306_v60 = vadd.f32 %v1242_v42, %v918_v2  ;;  %v856_v32 = vmul.f32 %v3872_v34, %v712_v1 }
 0x1b8   :  { %v920_v12 = vadd.f32 %v856_v32, %v532_v61  ;;  %v1370_v6 = vmax.f32 %v1306_v60, 0.0 }
 0x1b9   :  { %v3206_v51 = vpop.f32.mrb[0].mxu0  ;;  %v716_v37 = vpop.permute.xlu1 %715 }
 0x1ba   :  { %v1544_v36 = vadd.f32 %v3206_v51, %v4293_v53  ;;  %v1535_v43 = vpop.f32.mrb[1].mxu0  ;;  %775 = vperm.xlu1 %3332, %v4280_v28   ;;  %v857_v7 = vmul.f32 %v3872_v34, %v716_v37 }
 0x1bb   :  { %v1536_v3 = vadd.f32 %v4293_v53, %v1535_v43  ;;  %v3207_v14 = vpop.f32.mrb[2].mxu0 }
 0x1bc   :  { %v1547_v13 = vadd.f32 %v3207_v14, %v4293_v53  ;;  %v1538_v58 = vpop.f32.mrb[3].mxu0  ;;  %v1792_v63 = vmax.f32 %v1544_v36, 0.0  ;;  %v921_v52 = vadd.f32 %v857_v7, %v533_v49 }
 0x1bd   :  { %v1539_v46 = vadd.f32 %v4293_v53, %v1538_v58  ;;  %v1790_v54 = vmax.f32 %v1536_v3, 0.0 }
 0x1be   :  { %v1793_v48 = vmax.f32 %v1547_v13, 0.0  ;;  %779 = vperm.xlu1 %3332, %v3391_v15   ;;  %v1096_v62 = vpop.permute.xlu1 %1095  ;;  %v1309_v26 = vadd.f32 %v1245_v10, %v921_v52 }
 0x1bf   :  { %v1791_v23 = vmax.f32 %v1539_v46, 0.0  ;;  %v1243_v8 = vmul.f32 %v3896_v18, %v1096_v62 }
 0x1c0   :  { %v4321_v24 = vpack.c.bf16 %v1793_v48, %v1792_v63  ;;  %v1373_v3 = vmax.f32 %v1309_v26, 0.0 }
 0x1c1   :  { %v4323_v25 = vpack.c.bf16 %v1791_v23, %v1790_v54  ;;  %v1307_v30 = vadd.f32 %v1243_v8, %v919_v50  ;;  %v3210_v31 = vpop.f32.mrb[4].mxu0  ;;  %v4346_v54 = vld [vmem:[%s4993_s0 + $0x1d0] sm:$0xff] }
 0x1c2   :  { %v1560_v44 = vadd.f32 %v3210_v31, %v4293_v53  ;;  %v1551_v39 = vpop.f32.mrb[5].mxu0  ;;  %3333 = vset.pattern.permute.xlu1 %v5042_v47  ;;  %v1100_v1 = vpop.permute.xlu1 %1099 }
 0x1c3   :  { %v1371_v27 = vmax.f32 %v1307_v30, 0.0  ;;  %v1552_v59 = vadd.f32 %v4293_v53, %v1551_v39  ;;  %v1244_v9 = vmul.f32 %v3896_v18, %v1100_v1  ;;  %v3211_v51 = vpop.f32.mrb[6].mxu0  ;;  %1159 = vperm.xlu1 %3333, %v4115_v5  }
 0x1c4   :  { %v1563_v37 = vadd.f32 %v3211_v51, %v4293_v53  ;;  %v1554_v42 = vpop.f32.mrb[7].mxu0  ;;  %v1796_v49 = vmax.f32 %v1560_v44, 0.0 }
 0x1c5   :  { %v1308_v2 = vadd.f32 %v1244_v9, %v920_v12  ;;  %v1555_v36 = vadd.f32 %v4293_v53, %v1554_v42  ;;  %v1416_v43 = vpack.c.bf16 %v1371_v27, %v1370_v6  ;;  %v1794_v14 = vmax.f32 %v1552_v59, 0.0  ;;  %v314_v12 = vpop.permute.xlu0 %313  ;;  %v3353_v42 = vld [vmem:[%s4998_s5 + $0x4] ss:$8 sps:$4 sm:$0xff]  }
 0x1c6   :  { %v1797_v7 = vmax.f32 %v1563_v37, 0.0  ;;  %v471_v1 = vmul.f32 %v3856_v4, %v314_v12  ;;  %v3351_v37 = vld [vmem:[%s4998_s5] ss:$8 sps:$4 sm:$0xff]   ;;  %1994 = vmatprep.subr.bf16.mxu1 %v3353_v42  ;;  %v3356_v42 = vld [vmem:[%s4998_s5 + $0x14] ss:$8 sps:$4 sm:$0xff]  }
 0x1c7   :  { %v1372_v22 = vmax.f32 %v1308_v2, 0.0  ;;  %v1795_v13 = vmax.f32 %v1555_v36, 0.0  ;;  %1163 = vperm.xlu1 %3333, %v4280_v28   ;;  %3240 = vmatprep.mubr.bf16.mxu1 %v1416_v43  ;;  %v309_v58 = vpop.permute.xlu1 %308 }
 0x1c8   :  { %v4333_v10 = vpack.c.bf16 %v1797_v7, %v1796_v49  ;;  %v470_v26 = vmul.f32 %v3856_v4, %v309_v58  ;;  %v535_v27 = vadd.f32 %v4318_v38, %v471_v1  ;;  %v3393_v49 = vld [vmem:[%s4993_s0 + $0x1c8] sm:$0xff]  ;;  %v1247_v7 = vmul.f32 %v3896_v18, %v4230_v33  ;;  %1995 = vmatpush1.bf16.msra.mxu1 %v3351_v37  ;;  %v3354_v37 = vld [vmem:[%s4998_s5 + $0x10] ss:$8 sps:$4 sm:$0xff]  }
 0x1c9   :  { %v4335_v5 = vpack.c.bf16 %v1795_v13, %v1794_v14  ;;  %v3214_v46 = vpop.f32.mrb[8].mxu0  ;;  %v1417_v50 = vpack.c.bf16 %v1373_v3, %v1372_v22  ;;  %v858_v13 = vmul.f32 %v3872_v34, %v4102_v19  ;;  %1996 = vmatprep.subr.bf16.mxu1 %v3356_v42 }
 0x1ca   :  { %v1576_v60 = vadd.f32 %v3214_v46, %v4293_v53  ;;  %v1567_v32 = vpop.f32.mrb[9].mxu0  ;;  %v534_v2 = vadd.f32 %v4318_v38, %v470_v26 }
 0x1cb   :  { %v1568_v63 = vadd.f32 %v4293_v53, %v1567_v32  ;;  %v3215_v48 = vpop.f32.mrb[10].mxu0  ;;  %3334 = vset.pattern.permute.xlu1 %v5043_v35  ;;  %3241 = vmatmul.mubr.bf16.gmra.mrb[4].mxu1 %v1417_v50  ;;  %v319_v15 = vpop.permute.xlu1 %318 }
 0x1cc   :  { %v1579_v28 = vadd.f32 %v3215_v48, %v4293_v53  ;;  %v1570_v62 = vpop.f32.mrb[11].mxu0  ;;  %388 = vperm.xlu1 %3334, %v4152_v11   ;;  %v1800_v23 = vmax.f32 %v1576_v60, 0.0  ;;  %v472_v50 = vmul.f32 %v3856_v4, %v319_v15  ;;  %v922_v48 = vadd.f32 %v858_v13, %v534_v2  ;;  %1997 = vmatpush1.bf16.msra.mxu1 %v3354_v37  ;;  %v3359_v13 = vld [vmem:[%s4998_s5 + $0x24] ss:$8 sps:$4 sm:$0xff]  }
 0x1cd   :  { %v1571_v52 = vadd.f32 %v4293_v53, %v1570_v62  ;;  %v1798_v61 = vmax.f32 %v1568_v63, 0.0  ;;  %1998 = vmatprep.subr.bf16.mxu1 %v3359_v13 }
 0x1ce   :  { %v1801_v8 = vmax.f32 %v1579_v28, 0.0 }
 0x1cf   :  { %v1799_v30 = vmax.f32 %v1571_v52, 0.0  ;;  %v324_v31 = vpop.permute.xlu1 %323 }
 0x1d0   :  { %v4348_v44 = vpack.c.bf16 %v1801_v8, %v1800_v23  ;;  %398 = vperm.xlu1 %3334, %v4346_v54   ;;  %v473_v32 = vmul.f32 %v3856_v4, %v324_v31  ;;  %v536_v31 = vadd.f32 %v4318_v38, %v472_v50  ;;  %v3360_v50 = vld [vmem:[%s4998_s5 + $0x30] ss:$8 sps:$4 sm:$0xff]  }
 0x1d1   :  { %v4351_v39 = vpack.c.bf16 %v1799_v30, %v1798_v61 }
 0x1d2   :  { %v537_v1 = vadd.f32 %v4318_v38, %v473_v32 }
 0x1d4   :  { %403 = vperm.xlu1 %3334, %v4164_v0   ;;  %v724_v6 = vpop.permute.xlu1 %723 }
 0x1d5   :  { %v859_v59 = vmul.f32 %v3872_v34, %v724_v6 }
 0x1d7   :  { %v923_v3 = vadd.f32 %v859_v59, %v535_v27  ;;  %v861_v59 = vmul.f32 %v3872_v34, %v4105_v45 }
 0x1d8   :  { %v3218_v9 = vpop.f32.mrb[12].mxu0  ;;  %3335 = vset.pattern.permute.xlu1 %v5040_v56  ;;  %v728_v51 = vpop.permute.xlu1 %727 }
 0x1d9   :  { %v1592_v36 = vadd.f32 %v3218_v9, %v4293_v53  ;;  %v1583_v43 = vpop.f32.mrb[13].mxu0  ;;  %787 = vperm.xlu1 %3335, %v3393_v49   ;;  %v1311_v62 = vadd.f32 %v1247_v7, %v923_v3  ;;  %v860_v61 = vmul.f32 %v3872_v34, %v728_v51 }
 0x1da   :  { %v1584_v14 = vadd.f32 %v4293_v53, %v1583_v43  ;;  %v3219_v22 = vpop.f32.mrb[14].mxu0  ;;  %v925_v43 = vadd.f32 %v861_v59, %v537_v1  ;;  %v1250_v1 = vmul.f32 %v3896_v18, %v4237_v55 }
 0x1db   :  { %v1595_v58 = vadd.f32 %v3219_v22, %v4293_v53  ;;  %v1586_v46 = vpop.f32.mrb[15].mxu0  ;;  %v1804_v63 = vmax.f32 %v1592_v36, 0.0  ;;  %v1375_v6 = vmax.f32 %v1311_v62, 0.0  ;;  %v924_v9 = vadd.f32 %v860_v61, %v536_v31  ;;  %v3357_v22 = vld [vmem:[%s4998_s5 + $0x20] ss:$8 sps:$4 sm:$0xff]  }
 0x1dc   :  { %v1587_v60 = vadd.f32 %v4293_v53, %v1586_v46  ;;  %v1802_v52 = vmax.f32 %v1584_v14, 0.0  ;;  %1999 = vmatpush1.bf16.msra.mxu1 %v3357_v22  ;;  %v3363_v61 = vld [vmem:[%s4998_s5 + $0x40] ss:$8 sps:$4 sm:$0xff]  }
 0x1dd   :  { %v1805_v33 = vmax.f32 %v1595_v58, 0.0  ;;  %791 = vperm.xlu1 %3335, %v4346_v54   ;;  %v1108_v28 = vpop.permute.xlu1 %1107 }
 0x1de   :  { %v1803_v23 = vmax.f32 %v1587_v60, 0.0  ;;  %v1246_v19 = vmul.f32 %v3896_v18, %v1108_v28  ;;  %v3362_v60 = vld [vmem:[%s4998_s5 + $0x34] ss:$8 sps:$4 sm:$0xff]  }
 0x1df   :  { %v4381_v8 = vpack.c.bf16 %v1805_v33, %v1804_v63  ;;  %2000 = vmatprep.subr.bf16.mxu1 %v3362_v60 }
 0x1e0   :  { %v4384_v15 = vpack.c.bf16 %v1803_v23, %v1802_v52  ;;  %v1310_v30 = vadd.f32 %v1246_v19, %v922_v48  ;;  %2001 = vmatpush1.bf16.msra.mxu1 %v3360_v50 }
 0x1e1   :  { %3336 = vset.pattern.permute.xlu1 %v5042_v47  ;;  %v1116_v12 = vpop.permute.xlu1 %1115 }
 0x1e2   :  { %v1374_v26 = vmax.f32 %v1310_v30, 0.0  ;;  %v1248_v27 = vmul.f32 %v3896_v18, %v1116_v12  ;;  %1171 = vperm.xlu1 %3336, %v4152_v11   ;;  %v329_v11 = vpop.permute.xlu0 %328  ;;  %v3365_v30 = vld [vmem:[%s4998_s5 + $0x44] ss:$8 sps:$4 sm:$0xff]  }
 0x1e3   :  { %v474_v33 = vmul.f32 %v3856_v4, %v329_v11  ;;  %2002 = vmatprep.subr.bf16.mxu1 %v3365_v30 }
 0x1e4   :  { %v1418_v51 = vpack.c.bf16 %v1375_v6, %v1374_v26  ;;  %v1312_v36 = vadd.f32 %v1248_v27, %v924_v9  ;;  %v863_v27 = vmul.f32 %v3872_v34, %v4117_v57  ;;  %2003 = vmatpush1.bf16.msra.mxu1 %v3363_v61 }
 0x1e5   :  { %v1120_v2 = vpop.permute.xlu1 %1119  ;;  %v538_v62 = vadd.f32 %v4318_v38, %v474_v33  ;;  %v3366_v33 = vld [vmem:[%s4998_s5 + $0x50] ss:$8 sps:$4 sm:$0xff]  }
 0x1e6   :  { %v1249_v49 = vmul.f32 %v3896_v18, %v1120_v2  ;;  %1179 = vperm.xlu1 %3336, %v4346_v54   ;;  %3244 = vmatprep.mubr.bf16.mxu1 %v1418_v51  ;;  %v1376_v7 = vmax.f32 %v1312_v36, 0.0  ;;  %v344_v54 = vpop.permute.xlu0 %343  ;;  %v1253_v2 = vmul.f32 %v3896_v18, %v4239_v16 }
 0x1e7   :  { %v477_v23 = vmul.f32 %v3856_v4, %v344_v54 }
 0x1e8   :  { %v1313_v45 = vadd.f32 %v1249_v49, %v925_v43 }
 0x1e9   :  { %v541_v59 = vadd.f32 %v4318_v38, %v477_v23 }
 0x1ea   :  { %v1377_v3 = vmax.f32 %v1313_v45, 0.0  ;;  %1183 = vperm.xlu1 %3336, %v4164_v0   ;;  %v334_v14 = vpop.permute.xlu1 %333  ;;  %v4413_v0 = vld [vmem:[%s4993_s0 + $0x1f0] sm:$0xff]  ;;  %v4421_v32 = vpop.permute.xlu0 %353 }
 0x1eb   :  { %v475_v48 = vmul.f32 %v3856_v4, %v334_v14  ;;  %v3394_v14 = vld [vmem:[%s4993_s0 + $0x1f8] sm:$0xff] }
 0x1ec   :  { %v1419_v58 = vpack.c.bf16 %v1377_v3, %v1376_v7 }
 0x1ee   :  { %3338 = vset.pattern.permute.xlu1 %v5043_v35  ;;  %3245 = vmatmul.mubr.bf16.gmra.mrb[8].mxu1 %v1419_v58  ;;  %v339_v46 = vpop.permute.xlu1 %338  ;;  %v4431_v19 = vpop.permute.xlu0 %368 }
 0x1ef   :  { %413 = vperm.xlu1 %3338, %v4190_v29   ;;  %v476_v36 = vmul.f32 %v3856_v4, %v339_v46 }
 0x1f1   :  { %v540_v50 = vadd.f32 %v4318_v38, %v476_v36 }
 0x1f2   :  { %v4453_v43 = vpop.permute.xlu0 %383 }
 0x1f3   :  { %418 = vperm.xlu1 %3338, %v4413_v0   ;;  %v736_v63 = vpop.permute.xlu1 %735 }
 0x1f4   :  { %v862_v52 = vmul.f32 %v3872_v34, %v736_v63 }
 0x1f6   :  { %v4473_v61 = vpop.permute.xlu0 %393 }
 0x1f7   :  { %3340 = vset.pattern.permute.xlu1 %v5040_v56  ;;  %v744_v28 = vpop.permute.xlu1 %743  ;;  %v539_v56 = vadd.f32 %v4318_v38, %v475_v48  ;;  %v3368_v48 = vld [vmem:[%s4998_s5 + $0x54] ss:$8 sps:$4 sm:$0xff]  }
 0x1f8   :  { %799 = vperm.xlu1 %3340, %v4042_v41   ;;  %v926_v41 = vadd.f32 %v862_v52, %v538_v62  ;;  %v864_v45 = vmul.f32 %v3872_v34, %v744_v28  ;;  %2004 = vmatprep.subr.bf16.mxu1 %v3368_v48 }
 0x1f9   :  { %v927_v49 = vadd.f32 %v863_v27, %v539_v56  ;;  %2005 = vmatpush1.bf16.msra.mxu1 %v3366_v33 }
 0x1fa   :  { %v1314_v11 = vadd.f32 %v1250_v1, %v926_v41  ;;  %v928_v52 = vadd.f32 %v864_v45, %v540_v50  ;;  %v4484_v27 = vpop.permute.xlu0 %408  ;;  %v1255_v50 = vmul.f32 %v3896_v18, %v4249_v20 }
 0x1fb   :  { %v3222_v31 = vpop.f32.mrb[16].mxu0  ;;  %v748_v12 = vpop.permute.xlu1 %747 }
 0x1fc   :  { %v1608_v6 = vadd.f32 %v3222_v31, %v4293_v53  ;;  %v1599_v26 = vpop.f32.mrb[17].mxu0  ;;  %807 = vperm.xlu1 %3340, %v4413_v0   ;;  %v865_v9 = vmul.f32 %v3872_v34, %v748_v12  ;;  %v1378_v28 = vmax.f32 %v1314_v11, 0.0 }
 0x1fd   :  { %v1600_v51 = vadd.f32 %v4293_v53, %v1599_v26  ;;  %v3223_v37 = vpop.f32.mrb[18].mxu0  ;;  %v3371_v26 = vld [vmem:[%s4998_s5 + $0x64] ss:$8 sps:$4 sm:$0xff]  }
 0x1fe   :  { %v1611_v55 = vadd.f32 %v3223_v37, %v4293_v53  ;;  %v1602_v42 = vpop.f32.mrb[19].mxu0  ;;  %v1808_v7 = vmax.f32 %v1608_v6, 0.0  ;;  %v929_v13 = vadd.f32 %v865_v9, %v541_v59  ;;  %v3369_v6 = vld [vmem:[%s4998_s5 + $0x60] ss:$8 sps:$4 sm:$0xff]   ;;  %2006 = vmatprep.subr.bf16.mxu1 %v3371_v26  ;;  %v3374_v9 = vld [vmem:[%s4998_s5 + $0x74] ss:$8 sps:$4 sm:$0xff]  }
 0x1ff   :  { %v1603_v57 = vadd.f32 %v4293_v53, %v1602_v42  ;;  %v1806_v16 = vmax.f32 %v1600_v51, 0.0  ;;  %2007 = vmatpush1.bf16.msra.mxu1 %v3369_v6  ;;  %v4492_v51 = vpop.permute.xlu0 %423 }
 0x200   :  { %v1809_v3 = vmax.f32 %v1611_v55, 0.0  ;;  %811 = vperm.xlu1 %3340, %v3394_v14   ;;  %v1128_v22 = vpop.permute.xlu1 %1127  ;;  %v1317_v23 = vadd.f32 %v1253_v2, %v929_v13  ;;  %2008 = vmatprep.subr.bf16.mxu1 %v3374_v9  ;;  %v479_v55 = vmul.f32 %v3856_v4, %v4421_v32 }
 0x201   :  { %v1807_v58 = vmax.f32 %v1603_v57, 0.0  ;;  %v1251_v54 = vmul.f32 %v3896_v18, %v1128_v22 }
 0x202   :  { %v4461_v46 = vpack.c.bf16 %v1809_v3, %v1808_v7  ;;  %v1381_v1 = vmax.f32 %v1317_v23, 0.0  ;;  %v543_v57 = vadd.f32 %v4318_v38, %v479_v55 }
 0x203   :  { %v4464_v60 = vpack.c.bf16 %v1807_v58, %v1806_v16  ;;  %v1315_v63 = vadd.f32 %v1251_v54, %v927_v49  ;;  %v752_v36 = vpop.permute.xlu0 %751 }
 0x204   :  { %3342 = vset.pattern.permute.xlu1 %v5042_v47  ;;  %v1132_v62 = vpop.permute.xlu1 %1131  ;;  %v866_v45 = vmul.f32 %v3872_v34, %v752_v36 }
 0x205   :  { %v1379_v30 = vmax.f32 %v1315_v63, 0.0  ;;  %v1252_v56 = vmul.f32 %v3896_v18, %v1132_v62  ;;  %1191 = vperm.xlu1 %3342, %v4190_v29  }
 0x207   :  { %v1316_v31 = vadd.f32 %v1252_v56, %v928_v52  ;;  %v1420_v12 = vpack.c.bf16 %v1379_v30, %v1378_v28  ;;  %v764_v30 = vpop.permute.xlu0 %763 }
 0x209   :  { %v1380_v41 = vmax.f32 %v1316_v31, 0.0  ;;  %1195 = vperm.xlu1 %3342, %v4413_v0   ;;  %3248 = vmatprep.mubr.bf16.mxu1 %v1420_v12  ;;  %v349_v47 = vpop.permute.xlu1 %348  ;;  %v3372_v0 = vld [vmem:[%s4998_s5 + $0x70] ss:$8 sps:$4 sm:$0xff]  }
 0x20a   :  { %2009 = vmatpush1.bf16.msra.mxu1 %v3372_v0  ;;  %v478_v42 = vmul.f32 %v3856_v4, %v349_v47 }
 0x20b   :  { %v1421_v29 = vpack.c.bf16 %v1381_v1, %v1380_v41 }
 0x20c   :  { %v542_v11 = vadd.f32 %v4318_v38, %v478_v42 }
 0x20d   :  { %3249 = vmatmul.mubr.bf16.gmra.mrb[12].mxu1 %v1421_v29  ;;  %v359_v59 = vpop.permute.xlu1 %358  ;;  %v869_v29 = vmul.f32 %v3872_v34, %v764_v30 }
 0x20e   :  { %v930_v63 = vadd.f32 %v866_v45, %v542_v11  ;;  %v480_v48 = vmul.f32 %v3856_v4, %v359_v59 }
 0x210   :  { %v544_v26 = vadd.f32 %v4318_v38, %v480_v48  ;;  %v485_v48 = vmul.f32 %v3856_v4, %v4453_v43  ;;  %v1258_v43 = vmul.f32 %v3896_v18, %v4259_v17 }
 0x211   :  { %v364_v37 = vpop.permute.xlu1 %363 }
 0x212   :  { %v481_v28 = vmul.f32 %v3856_v4, %v364_v37 }
 0x214   :  { %v545_v0 = vadd.f32 %v4318_v38, %v481_v28 }
 0x216   :  { %v756_v2 = vpop.permute.xlu1 %755 }
 0x217   :  { %v867_v49 = vmul.f32 %v3872_v34, %v756_v2 }
 0x219   :  { %v931_v13 = vadd.f32 %v867_v49, %v543_v57  ;;  %v933_v57 = vadd.f32 %v869_v29, %v545_v0 }
 0x21a   :  { %v3226_v7 = vpop.f32.mrb[20].mxu0  ;;  %v760_v3 = vpop.permute.xlu1 %759 }
 0x21b   :  { %v1624_v14 = vadd.f32 %v3226_v7, %v4293_v53  ;;  %v1615_v22 = vpop.f32.mrb[21].mxu0  ;;  %v1319_v56 = vadd.f32 %v1255_v50, %v931_v13  ;;  %v868_v20 = vmul.f32 %v3872_v34, %v760_v3 }
 0x21c   :  { %v1616_v32 = vadd.f32 %v4293_v53, %v1615_v22  ;;  %v3227_v16 = vpop.f32.mrb[22].mxu0 }
 0x21d   :  { %v1627_v58 = vadd.f32 %v3227_v16, %v4293_v53  ;;  %v1618_v54 = vpop.f32.mrb[23].mxu0  ;;  %v1812_v62 = vmax.f32 %v1624_v14, 0.0  ;;  %v1383_v9 = vmax.f32 %v1319_v56, 0.0  ;;  %v932_v42 = vadd.f32 %v868_v20, %v544_v26 }
 0x21e   :  { %v1619_v33 = vadd.f32 %v4293_v53, %v1618_v54  ;;  %v1810_v31 = vmax.f32 %v1616_v32, 0.0  ;;  %v482_v16 = vmul.f32 %v3856_v4, %v4431_v19 }
 0x21f   :  { %v1813_v52 = vmax.f32 %v1627_v58, 0.0  ;;  %v1140_v23 = vpop.permute.xlu1 %1139 }
 0x220   :  { %v1811_v12 = vmax.f32 %v1619_v33, 0.0  ;;  %v1254_v1 = vmul.f32 %v3896_v18, %v1140_v23  ;;  %v546_v50 = vadd.f32 %v4318_v38, %v482_v16 }
 0x221   :  { %v4510_v41 = vpack.c.bf16 %v1813_v52, %v1812_v62 }
 0x222   :  { %v4513_v47 = vpack.c.bf16 %v1811_v12, %v1810_v31  ;;  %v1318_v6 = vadd.f32 %v1254_v1, %v930_v63  ;;  %v772_v63 = vpop.permute.xlu0 %771  ;;  %v549_v31 = vadd.f32 %v4318_v38, %v485_v48 }
 0x223   :  { %v1148_v59 = vpop.permute.xlu1 %1147  ;;  %v871_v62 = vmul.f32 %v3872_v34, %v772_v63 }
 0x224   :  { %v1382_v37 = vmax.f32 %v1318_v6, 0.0  ;;  %v1256_v55 = vmul.f32 %v3896_v18, %v1148_v59 }
 0x226   :  { %v1422_v2 = vpack.c.bf16 %v1383_v9, %v1382_v37  ;;  %v1320_v49 = vadd.f32 %v1256_v55, %v932_v42 }
 0x227   :  { %v1152_v36 = vpop.permute.xlu1 %1151 }
 0x228   :  { %v1257_v11 = vmul.f32 %v3896_v18, %v1152_v36  ;;  %3252 = vmatprep.mubr.bf16.mxu1 %v1422_v2  ;;  %v1384_v7 = vmax.f32 %v1320_v49, 0.0 }
 0x22a   :  { %v1321_v45 = vadd.f32 %v1257_v11, %v933_v57 }
 0x22c   :  { %v1385_v3 = vmax.f32 %v1321_v45, 0.0  ;;  %v374_v14 = vpop.permute.xlu1 %373  ;;  %v1261_v45 = vmul.f32 %v3896_v18, %v4269_v40 }
 0x22d   :  { %v483_v58 = vmul.f32 %v3856_v4, %v374_v14 }
 0x22e   :  { %v1423_v22 = vpack.c.bf16 %v1385_v3, %v1384_v7 }
 0x22f   :  { %v547_v28 = vadd.f32 %v4318_v38, %v483_v58 }
 0x230   :  { %3253 = vmatmul.mubr.bf16.gmra.mrb[16].mxu1 %v1423_v22  ;;  %v379_v13 = vpop.permute.xlu1 %378 }
 0x231   :  { %v935_v29 = vadd.f32 %v871_v62, %v547_v28  ;;  %v484_v59 = vmul.f32 %v3856_v4, %v379_v13 }
 0x233   :  { %v548_v7 = vadd.f32 %v4318_v38, %v484_v59 }
 0x235   :  { %v768_v32 = vpop.permute.xlu1 %767 }
 0x236   :  { %v870_v33 = vmul.f32 %v3872_v34, %v768_v32 }
 0x238   :  { %v934_v30 = vadd.f32 %v870_v33, %v546_v50 }
 0x239   :  { %v776_v54 = vpop.permute.xlu1 %775 }
 0x23a   :  { %v1322_v9 = vadd.f32 %v1258_v43, %v934_v30  ;;  %v872_v37 = vmul.f32 %v3872_v34, %v776_v54 }
 0x23c   :  { %v1386_v22 = vmax.f32 %v1322_v9, 0.0  ;;  %v936_v32 = vadd.f32 %v872_v37, %v548_v7 }
 0x23d   :  { %v3230_v52 = vpop.f32.mrb[24].mxu0  ;;  %v780_v23 = vpop.permute.xlu1 %779 }
 0x23e   :  { %v1640_v19 = vadd.f32 %v3230_v52, %v4293_v53  ;;  %v1631_v56 = vpop.f32.mrb[25].mxu0  ;;  %v873_v12 = vmul.f32 %v3872_v34, %v780_v23  ;;  %v487_v23 = vmul.f32 %v3856_v4, %v4473_v61 }
 0x23f   :  { %v1632_v1 = vadd.f32 %v4293_v53, %v1631_v56  ;;  %v3231_v20 = vpop.f32.mrb[26].mxu0 }
 0x240   :  { %v1643_v6 = vadd.f32 %v3231_v20, %v4293_v53  ;;  %v1634_v26 = vpop.f32.mrb[27].mxu0  ;;  %v1816_v55 = vmax.f32 %v1640_v19, 0.0  ;;  %v937_v36 = vadd.f32 %v873_v12, %v549_v31  ;;  %v551_v19 = vadd.f32 %v4318_v38, %v487_v23  ;;  %v784_v12 = vpop.permute.xlu0 %783 }
 0x241   :  { %v1635_v0 = vadd.f32 %v4293_v53, %v1634_v26  ;;  %v1814_v57 = vmax.f32 %v1632_v1, 0.0  ;;  %v1263_v1 = vmul.f32 %v3896_v18, %v4273_v21 }
 0x242   :  { %v1817_v42 = vmax.f32 %v1643_v6, 0.0  ;;  %v1160_v2 = vpop.permute.xlu1 %1159  ;;  %v1325_v16 = vadd.f32 %v1261_v45, %v937_v36 }
 0x243   :  { %v1815_v49 = vmax.f32 %v1635_v0, 0.0  ;;  %v1259_v11 = vmul.f32 %v3896_v18, %v1160_v2 }
 0x244   :  { %v4540_v17 = vpack.c.bf16 %v1817_v42, %v1816_v55  ;;  %v1389_v33 = vmax.f32 %v1325_v16, 0.0  ;;  %v796_v7 = vpop.permute.xlu0 %795 }
 0x245   :  { %v4545_v3 = vpack.c.bf16 %v1815_v49, %v1814_v57  ;;  %v1323_v14 = vadd.f32 %v1259_v11, %v935_v29  ;;  %v874_v29 = vmul.f32 %v3872_v34, %v784_v12 }
 0x246   :  { %v1164_v13 = vpop.permute.xlu1 %1163 }
 0x247   :  { %v1387_v58 = vmax.f32 %v1323_v14, 0.0  ;;  %v1260_v54 = vmul.f32 %v3896_v18, %v1164_v13 }
 0x249   :  { %v1324_v50 = vadd.f32 %v1260_v54, %v936_v32  ;;  %v1424_v63 = vpack.c.bf16 %v1387_v58, %v1386_v22 }
 0x24b   :  { %v1388_v48 = vmax.f32 %v1324_v50, 0.0  ;;  %3256 = vmatprep.mubr.bf16.mxu1 %v1424_v63  ;;  %v389_v28 = vpop.permute.xlu1 %388  ;;  %v877_v63 = vmul.f32 %v3872_v34, %v796_v7 }
 0x24c   :  { %v486_v56 = vmul.f32 %v3856_v4, %v389_v28 }
 0x24d   :  { %v1425_v62 = vpack.c.bf16 %v1389_v33, %v1388_v48 }
 0x24e   :  { %v550_v26 = vadd.f32 %v4318_v38, %v486_v56 }
 0x24f   :  { %3257 = vmatmul.mubr.bf16.gmra.mrb[20].mxu1 %v1425_v62  ;;  %v399_v40 = vpop.permute.xlu1 %398 }
 0x250   :  { %v938_v21 = vadd.f32 %v874_v29, %v550_v26  ;;  %v488_v36 = vmul.f32 %v3856_v4, %v399_v40 }
 0x252   :  { %v552_v50 = vadd.f32 %v4318_v38, %v488_v36 }
 0x253   :  { %v404_v52 = vpop.permute.xlu1 %403 }
 0x254   :  { %v489_v45 = vmul.f32 %v3856_v4, %v404_v52 }
 0x256   :  { %v553_v48 = vadd.f32 %v4318_v38, %v489_v45 }
 0x258   :  { %v788_v30 = vpop.permute.xlu1 %787 }
 0x259   :  { %v875_v31 = vmul.f32 %v3872_v34, %v788_v30 }
 0x25b   :  { %v939_v20 = vadd.f32 %v875_v31, %v551_v19  ;;  %v941_v19 = vadd.f32 %v877_v63, %v553_v48 }
 0x25c   :  { %v3234_v43 = vpop.f32.mrb[28].mxu0  ;;  %v792_v6 = vpop.permute.xlu1 %791 }
 0x25d   :  { %v1327_v59 = vadd.f32 %v1263_v1, %v939_v20  ;;  %v1656_v61 = vadd.f32 %v3234_v43, %v4293_v53  ;;  %v1647_v0 = vpop.f32.mrb[29].mxu0  ;;  %v876_v16 = vmul.f32 %v3872_v34, %v792_v6 }
 0x25e   :  { %v1648_v9 = vadd.f32 %v4293_v53, %v1647_v0  ;;  %v3235_v37 = vpop.f32.mrb[30].mxu0 }
 0x25f   :  { %v1659_v55 = vadd.f32 %v3235_v37, %v4293_v53  ;;  %v1650_v42 = vpop.f32.mrb[31].mxu0  ;;  %v1820_v57 = vmax.f32 %v1656_v61, 0.0  ;;  %v1391_v28 = vmax.f32 %v1327_v59, 0.0  ;;  %v940_v52 = vadd.f32 %v876_v16, %v552_v50  ;;  %v804_v59 = vpop.permute.xlu0 %803 }
 0x260   :  { %v1651_v2 = vadd.f32 %v4293_v53, %v1650_v42  ;;  %v1818_v14 = vmax.f32 %v1648_v9, 0.0  ;;  %v490_v61 = vmul.f32 %v3856_v4, %v4484_v27 }
 0x261   :  { %v1821_v49 = vmax.f32 %v1659_v55, 0.0  ;;  %v1172_v11 = vpop.permute.xlu1 %1171 }
 0x262   :  { %v1819_v22 = vmax.f32 %v1651_v2, 0.0  ;;  %v1262_v13 = vmul.f32 %v3896_v18, %v1172_v11  ;;  %v554_v42 = vadd.f32 %v4318_v38, %v490_v61  ;;  %v493_v2 = vmul.f32 %v3856_v4, %v4492_v51 }
 0x263   :  { %v4564_v32 = vpack.c.bf16 %v1821_v49, %v1820_v57  ;;  %v1188_v55 = vpop.permute.xlu0 %1187 }
 0x264   :  { %v4567_v58 = vpack.c.bf16 %v1819_v22, %v1818_v14  ;;  %v1326_v54 = vadd.f32 %v1262_v13, %v938_v21  ;;  %v1266_v11 = vmul.f32 %v3896_v18, %v1188_v55  ;;  %v879_v14 = vmul.f32 %v3872_v34, %v804_v59 }
 0x265   :  { %v1180_v33 = vpop.permute.xlu1 %1179  ;;  %v557_v51 = vadd.f32 %v4318_v38, %v493_v2 }
 0x266   :  { %v1390_v62 = vmax.f32 %v1326_v54, 0.0  ;;  %v1264_v40 = vmul.f32 %v3896_v18, %v1180_v33 }
 0x267   :  { %v1200_v7 = vpop.permute.xlu0 %1199 }
 0x268   :  { %v1426_v23 = vpack.c.bf16 %v1391_v28, %v1390_v62  ;;  %v1328_v56 = vadd.f32 %v1264_v40, %v940_v52  ;;  %v1269_v33 = vmul.f32 %v3896_v18, %v1200_v7 }
 0x269   :  { %v1184_v30 = vpop.permute.xlu1 %1183 }
 0x26a   :  { %v1265_v31 = vmul.f32 %v3896_v18, %v1184_v30  ;;  %3260 = vmatprep.mubr.bf16.mxu1 %v1426_v23  ;;  %v1392_v1 = vmax.f32 %v1328_v56, 0.0 }
 0x26c   :  { %v1329_v12 = vadd.f32 %v1265_v31, %v941_v19 }
 0x26e   :  { %v1393_v20 = vmax.f32 %v1329_v12, 0.0  ;;  %v414_v43 = vpop.permute.xlu1 %413 }
 0x26f   :  { %v491_v0 = vmul.f32 %v3856_v4, %v414_v43 }
 0x270   :  { %v1427_v6 = vpack.c.bf16 %v1393_v20, %v1392_v1 }
 0x271   :  { %v555_v21 = vadd.f32 %v4318_v38, %v491_v0 }
 0x272   :  { %3261 = vmatmul.mubr.bf16.gmra.mrb[24].mxu1 %v1427_v6  ;;  %v419_v26 = vpop.permute.xlu1 %418 }
 0x273   :  { %v492_v63 = vmul.f32 %v3856_v4, %v419_v26  ;;  %v943_v28 = vadd.f32 %v879_v14, %v555_v21 }
 0x275   :  { %v556_v4 = vadd.f32 %v4318_v38, %v492_v63  ;;  %v4641_v63 = vld [vmem:[%s4997_s4] ss:$0 sm:$0xff] }
 0x277   :  { %v800_v29 = vpop.permute.xlu1 %799 }
 0x278   :  { %v878_v37 = vmul.f32 %v3872_v34, %v800_v29 }
 0x27a   :  { %v942_v49 = vadd.f32 %v878_v37, %v554_v42 }
 0x27b   :  { %v808_v9 = vpop.permute.xlu1 %807 }
 0x27c   :  { %v1330_v62 = vadd.f32 %v1266_v11, %v942_v49  ;;  %v880_v40 = vmul.f32 %v3872_v34, %v808_v9 }
 0x27e   :  { %v1394_v6 = vmax.f32 %v1330_v62, 0.0  ;;  %v944_v29 = vadd.f32 %v880_v40, %v556_v4 }
 0x27f   :  { %v3238_v36 = vpop.f32.mrb[0].mxu1  ;;  %v812_v57 = vpop.permute.xlu1 %811 }
 0x280   :  { %v1672_v27 = vadd.f32 %v3238_v36, %v4293_v53  ;;  %v1663_v45 = vpop.f32.mrb[1].mxu1  ;;  %v881_v22 = vmul.f32 %v3872_v34, %v812_v57 }
 0x281   :  { %v1664_v13 = vadd.f32 %v4293_v53, %v1663_v45  ;;  %v3239_v16 = vpop.f32.mrb[2].mxu1 }
 0x282   :  { %v1675_v54 = vadd.f32 %v3239_v16, %v4293_v53  ;;  %v1666_v50 = vpop.f32.mrb[3].mxu1  ;;  %v1824_v52 = vmax.f32 %v1672_v27, 0.0  ;;  %v945_v19 = vadd.f32 %v881_v22, %v557_v51 }
 0x283   :  { %v1667_v48 = vadd.f32 %v4293_v53, %v1666_v50  ;;  %v1822_v56 = vmax.f32 %v1664_v13, 0.0  ;;  %v3376_v13 = vld [vmem:[%s5000_s7 + $0x8] sm:$0xff]  }
 0x284   :  { %v1825_v23 = vmax.f32 %v1675_v54, 0.0  ;;  %v1192_v30 = vpop.permute.xlu1 %1191  ;;  %v1333_v59 = vadd.f32 %v1269_v33, %v945_v19  ;;  %v3380_v19 = vld [vmem:[%s5000_s7 + $0x28] sm:$0xff]  }
 0x285   :  { %v1823_v31 = vmax.f32 %v1667_v48, 0.0  ;;  %v1267_v12 = vmul.f32 %v3896_v18, %v1192_v30 }
 0x286   :  { %v4594_v1 = vpack.c.bf16 %v1825_v23, %v1824_v52  ;;  %v1397_v37 = vmax.f32 %v1333_v59, 0.0 }
 0x287   :  { %v4597_v20 = vpack.c.bf16 %v1823_v31, %v1822_v56  ;;  %v1331_v43 = vadd.f32 %v1267_v12, %v943_v28  ;;  %v3381_v56 = vld [vmem:[%s5000_s7 + $0x30] sm:$0xff]   ;;  %v3383_v31 = vld [vmem:[%s5000_s7 + $0x40] sm:$0xff]  }
 0x288   :  { %v1196_v26 = vpop.permute.xlu1 %1195  ;;  %v3385_v12 = vld [vmem:[%s5000_s7 + $0x50] sm:$0xff]  }
 0x289   :  { %v1395_v34 = vmax.f32 %v1331_v43, 0.0  ;;  %v1268_v61 = vmul.f32 %v3896_v18, %v1196_v26 }
 0x28b   :  { %v1332_v0 = vadd.f32 %v1268_v61, %v944_v29  ;;  %v1428_v9 = vpack.c.bf16 %v1395_v34, %v1394_v6  ;;  %v3386_v6 = vld [vmem:[%s5000_s7 + $0x58] sm:$0xff]  }
 0x28d   :  { %v1396_v55 = vmax.f32 %v1332_v0, 0.0  ;;  %3264 = vmatprep.mubr.bf16.mxu1 %v1428_v9 }
 0x28f   :  { %v1429_v42 = vpack.c.bf16 %v1397_v37, %v1396_v55  ;;  %v3387_v55 = vld [vmem:[%s5000_s7 + $0x60] sm:$0xff]  }
 0x291   :  { %3265 = vmatmul.mubr.bf16.gmra.mrb[28].mxu1 %v1429_v42 }
 0x292   :  { %2026 = vmatprep.mubr.bf16.mxu1 %v5043_v35 }
 0x299   :  { %2027 = vmatmul.mubr.bf16.vlgmr.msra.gmra.mrb[32].mxu1 %v4323_v25 }
 0x29a   :  { %2036 = vmatprep.mubr.bf16.mxu1 %v5043_v35 }
 0x29e   :  { %v3242_v38 = vpop.f32.mrb[4].mxu1 }
 0x29f   :  { %v1688_v2 = vadd.f32 %v3242_v38, %v4293_v53  ;;  %v1679_v21 = vpop.f32.mrb[5].mxu1 }
 0x2a0   :  { %v1680_v36 = vadd.f32 %v4293_v53, %v1679_v21  ;;  %v3243_v18 = vpop.f32.mrb[6].mxu1  ;;  %v3389_v21 = vld [vmem:[%s5000_s7 + $0x70] sm:$0xff]  }
 0x2a1   :  { %v1691_v57 = vadd.f32 %v3243_v18, %v4293_v53  ;;  %v1682_v49 = vpop.f32.mrb[7].mxu1  ;;  %2037 = vmatmul.mubr.bf16.gmra.mrb[36].mxu1 %v4321_v24  ;;  %v1828_v27 = vmax.f32 %v1688_v2, 0.0  ;;  %v3375_v24 = vld [vmem:[%s5000_s7] sm:$0xff]   ;;  %v3388_v2 = vld [vmem:[%s5000_s7 + $0x68] sm:$0xff]  }
 0x2a2   :  { %v1683_v11 = vadd.f32 %v4293_v53, %v1682_v49  ;;  %2046 = vmatprep.mubr.bf16.mxu1 %v5043_v35  ;;  %v1826_v45 = vmax.f32 %v1680_v36, 0.0  ;;  %2675 = vmatpush1.bf16.msra.mxu0 %v3375_v24 }
 0x2a3   :  { %v1829_v25 = vmax.f32 %v1691_v57, 0.0  ;;  %2676 = vmatprep.subr.bf16.mxu0 %v5043_v35 }
 0x2a4   :  { %v1827_v7 = vmax.f32 %v1683_v11, 0.0 }
 0x2a5   :  { %v4609_v14 = vpack.c.bf16 %v1829_v25, %v1828_v27 }
 0x2a6   :  { %v4611_v22 = vpack.c.bf16 %v1827_v7, %v1826_v45  ;;  %2677 = vmatpush1.bf16.msra.mxu0 %v3376_v13 }
 0x2a7   :  { %2678 = vmatprep.subr.bf16.mxu0 %v5043_v35 }
 0x2a9   :  { %2047 = vmatmul.mubr.bf16.gmra.mrb[40].mxu1 %v4335_v5 }
 0x2aa   :  { %2056 = vmatprep.mubr.bf16.mxu1 %v5043_v35 }
 0x2b1   :  { %2057 = vmatmul.mubr.bf16.gmra.mrb[44].mxu1 %v4333_v10  ;;  %v3377_v10 = vld [vmem:[%s5000_s7 + $0x10] sm:$0xff]  }
 0x2b2   :  { %2066 = vmatprep.mubr.bf16.mxu1 %v5043_v35  ;;  %2679 = vmatpush1.bf16.msra.mxu0 %v3377_v10 }
 0x2b3   :  { %2680 = vmatprep.subr.bf16.mxu0 %v5043_v35 }
 0x2b9   :  { %2067 = vmatmul.mubr.bf16.gmra.mrb[48].mxu1 %v4351_v39  ;;  %v3378_v39 = vld [vmem:[%s5000_s7 + $0x18] sm:$0xff]  }
 0x2ba   :  { %2076 = vmatprep.mubr.bf16.mxu1 %v5043_v35  ;;  %2681 = vmatpush1.bf16.msra.mxu0 %v3378_v39 }
 0x2bb   :  { %2682 = vmatprep.subr.bf16.mxu0 %v5043_v35 }
 0x2c1   :  { %v3246_v5 = vpop.f32.mrb[8].mxu1  ;;  %2077 = vmatmul.mubr.bf16.gmra.mrb[52].mxu1 %v4348_v44 }
 0x2c2   :  { %v1704_v16 = vadd.f32 %v3246_v5, %v4293_v53  ;;  %v1695_v51 = vpop.f32.mrb[9].mxu1  ;;  %2086 = vmatprep.mubr.bf16.mxu1 %v5043_v35 }
 0x2c3   :  { %v1696_v54 = vadd.f32 %v4293_v53, %v1695_v51  ;;  %v3247_v50 = vpop.f32.mrb[10].mxu1  ;;  %v3379_v53 = vld [vmem:[%s5000_s7 + $0x20] sm:$0xff]  }
 0x2c4   :  { %v1707_v44 = vadd.f32 %v4641_v63, %v3247_v50  ;;  %v1698_v33 = vpop.f32.mrb[11].mxu1  ;;  %v1832_v28 = vmax.f32 %v1704_v16, 0.0  ;;  %2683 = vmatpush1.bf16.msra.mxu0 %v3379_v53 }
 0x2c5   :  { %v1699_v48 = vadd.f32 %v4641_v63, %v1698_v33  ;;  %v1830_v40 = vmax.f32 %v1696_v54, 0.0  ;;  %2684 = vmatprep.subr.bf16.mxu0 %v5043_v35 }
 0x2c6   :  { %v1833_v62 = vmax.f32 %v1707_v44, 0.0 }
 0x2c7   :  { %v1831_v52 = vmax.f32 %v1699_v48, 0.0 }
 0x2c8   :  { %v4649_v23 = vpack.c.bf16 %v1833_v62, %v1832_v28  ;;  %2685 = vmatpush1.bf16.msra.mxu0 %v3380_v19 }
 0x2c9   :  { %v4651_v30 = vpack.c.bf16 %v1831_v52, %v1830_v40  ;;  %2087 = vmatmul.mubr.bf16.gmra.mrb[56].mxu1 %v4384_v15  ;;  %2686 = vmatprep.subr.bf16.mxu0 %v5043_v35  ;;  %v3382_v15 = vld [vmem:[%s5000_s7 + $0x38] sm:$0xff]  }
 0x2ca   :  { %2096 = vmatprep.mubr.bf16.mxu1 %v5043_v35 }
 0x2cc   :  { %2687 = vmatpush1.bf16.msra.mxu0 %v3381_v56 }
 0x2cd   :  { %2688 = vmatprep.subr.bf16.mxu0 %v5043_v35 }
 0x2d0   :  { %2689 = vmatpush1.bf16.msra.mxu0 %v3382_v15 }
 0x2d1   :  { %2097 = vmatmul.mubr.bf16.gmra.mrb[60].mxu1 %v4381_v8  ;;  %2690 = vmatprep.subr.bf16.mxu0 %v5043_v35  ;;  %v3384_v8 = vld [vmem:[%s5000_s7 + $0x48] sm:$0xff]  }
 0x2d2   :  { %2106 = vmatprep.mubr.bf16.mxu1 %v5043_v35 }
 0x2d4   :  { %2691 = vmatpush1.bf16.msra.mxu0 %v3383_v31 }
 0x2d5   :  { %2692 = vmatprep.subr.bf16.mxu0 %v5043_v35 }
 0x2d8   :  { %2693 = vmatpush1.bf16.msra.mxu0 %v3384_v8 }
 0x2d9   :  { %2107 = vmatmul.mubr.bf16.gmra.mrb[64].mxu1 %v4464_v60  ;;  %2694 = vmatprep.subr.bf16.mxu0 %v5043_v35 }
 0x2da   :  { %2116 = vmatprep.mubr.bf16.mxu1 %v5043_v35 }
 0x2dc   :  { %2695 = vmatpush1.bf16.msra.mxu0 %v3385_v12 }
 0x2dd   :  { %2696 = vmatprep.subr.bf16.mxu0 %v5043_v35 }
 0x2e0   :  { %v3250_v4 = vpop.f32.mrb[12].mxu1  ;;  %2697 = vmatpush1.bf16.msra.mxu0 %v3386_v6 }
 0x2e1   :  { %v1720_v43 = vadd.f32 %v4641_v63, %v3250_v4  ;;  %v1711_v60 = vpop.f32.mrb[13].mxu1  ;;  %2117 = vmatmul.mubr.bf16.gmra.mrb[68].mxu1 %v4461_v46  ;;  %2698 = vmatprep.subr.bf16.mxu0 %v5043_v35 }
 0x2e2   :  { %v1712_v26 = vadd.f32 %v4641_v63, %v1711_v60  ;;  %v3251_v29 = vpop.f32.mrb[14].mxu1  ;;  %2126 = vmatprep.mubr.bf16.mxu1 %v5043_v35 }
 0x2e3   :  { %v1723_v59 = vadd.f32 %v4641_v63, %v3251_v29  ;;  %v1714_v34 = vpop.f32.mrb[15].mxu1  ;;  %v1836_v0 = vmax.f32 %v1720_v43, 0.0 }
 0x2e4   :  { %v1715_v61 = vadd.f32 %v4641_v63, %v1714_v34  ;;  %v1834_v46 = vmax.f32 %v1712_v26, 0.0  ;;  %2699 = vmatpush1.bf16.msra.mxu0 %v3387_v55  ;;  %v1902_v26 = vld [vmem:[%s4999_s6] sm:$0x3] }
 0x2e5   :  { %v1837_v9 = vmax.f32 %v1723_v59, 0.0  ;;  %2700 = vmatprep.subr.bf16.mxu0 %v5043_v35 }
 0x2e6   :  { %v1835_v37 = vmax.f32 %v1715_v61, 0.0 }
 0x2e7   :  { %v4697_v42 = vpack.c.bf16 %v1837_v9, %v1836_v0  ;;  %v5059_v9 = vld [vmem:[#allocation16_spill] sm:$0xff] }
 0x2e8   :  { %v4699_v38 = vpack.c.bf16 %v1835_v37, %v1834_v46  ;;  %2701 = vmatpush1.bf16.msra.mxu0 %v3388_v2  ;;  %v5060_v46 = vsub.s32 0, %v5059_v9 }
 0x2e9   :  { %2127 = vmatmul.mubr.bf16.gmra.mrb[72].mxu1 %v4513_v47  ;;  %2702 = vmatprep.subr.bf16.mxu0 %v5043_v35  ;;  %v3390_v47 = vld [vmem:[%s5000_s7 + $0x78] sm:$0xff]  }
 0x2ea   :  { %2136 = vmatprep.mubr.bf16.mxu1 %v5043_v35  ;;  %v4766_v37 = vrot.slane %v1902_v26, %v5060_v46 }
 0x2ec   :  { %2703 = vmatpush1.bf16.msra.mxu0 %v3389_v21 }
 0x2ed   :  { %2704 = vmatprep.subr.bf16.mxu0 %v5043_v35 }
 0x2f0   :  { %2705 = vmatpush1.bf16.msra.mxu0 %v3390_v47 }
 0x2f1   :  { %2137 = vmatmul.mubr.bf16.gmra.mrb[76].mxu1 %v4510_v41 }
 0x2f2   :  { %2146 = vmatprep.mubr.bf16.mxu1 %v5043_v35 }
 0x2f9   :  { %2147 = vmatmul.mubr.bf16.gmra.mrb[80].mxu1 %v4545_v3 }
 0x2fa   :  { %2156 = vmatprep.mubr.bf16.mxu1 %v5043_v35 }
 0x301   :  { %2157 = vmatmul.mubr.bf16.gmra.mrb[84].mxu1 %v4540_v17 }
 0x302   :  { %2166 = vmatprep.mubr.bf16.mxu1 %v5043_v35 }
 0x303   :  { %v3254_v36 = vpop.f32.mrb[16].mxu1 }
 0x304   :  { %v1736_v41 = vadd.f32 %v4641_v63, %v3254_v36  ;;  %v1727_v18 = vpop.f32.mrb[17].mxu1 }
 0x305   :  { %v1728_v57 = vadd.f32 %v4641_v63, %v1727_v18  ;;  %v3255_v49 = vpop.f32.mrb[18].mxu1 }
 0x306   :  { %v1739_v11 = vadd.f32 %v4641_v63, %v3255_v49  ;;  %v1730_v27 = vpop.f32.mrb[19].mxu1  ;;  %v1840_v45 = vmax.f32 %v1736_v41, 0.0 }
 0x307   :  { %v1731_v25 = vadd.f32 %v4641_v63, %v1730_v27  ;;  %v1838_v7 = vmax.f32 %v1728_v57, 0.0 }
 0x308   :  { %v1841_v3 = vmax.f32 %v1739_v11, 0.0 }
 0x309   :  { %v1839_v24 = vmax.f32 %v1731_v25, 0.0  ;;  %2167 = vmatmul.mubr.bf16.gmra.mrb[88].mxu1 %v4567_v58 }
 0x30a   :  { %v1879_v17 = vpack.c.bf16 %v1841_v3, %v1840_v45  ;;  %2176 = vmatprep.mubr.bf16.mxu1 %v5043_v35 }
 0x30b   :  { %v1878_v13 = vpack.c.bf16 %v1839_v24, %v1838_v7 }
 0x311   :  { %2177 = vmatmul.mubr.bf16.gmra.mrb[92].mxu1 %v4564_v32 }
 0x312   :  { %2186 = vmatprep.mubr.bf16.mxu1 %v5043_v35 }
 0x319   :  { %2187 = vmatmul.mubr.bf16.gmra.mrb[96].mxu1 %v4597_v20 }
 0x31a   :  { %2196 = vmatprep.mubr.bf16.mxu1 %v5043_v35 }
 0x321   :  { %2197 = vmatmul.mubr.bf16.gmra.mrb[100].mxu1 %v4594_v1 }
 0x322   :  { %v3258_v10 = vpop.f32.mrb[20].mxu1  ;;  %2206 = vmatprep.mubr.bf16.mxu1 %v5043_v35 }
 0x323   :  { %v1752_v5 = vadd.f32 %v4641_v63, %v3258_v10  ;;  %v1743_v58 = vpop.f32.mrb[21].mxu1 }
 0x324   :  { %v1744_v39 = vadd.f32 %v4641_v63, %v1743_v58  ;;  %v3259_v16 = vpop.f32.mrb[22].mxu1 }
 0x325   :  { %v1755_v51 = vadd.f32 %v4641_v63, %v3259_v16  ;;  %v1746_v32 = vpop.f32.mrb[23].mxu1  ;;  %v1844_v50 = vmax.f32 %v1752_v5, 0.0 }
 0x326   :  { %v1747_v54 = vadd.f32 %v4641_v63, %v1746_v32  ;;  %v1842_v44 = vmax.f32 %v1744_v39, 0.0 }
 0x327   :  { %v1845_v20 = vmax.f32 %v1755_v51, 0.0 }
 0x328   :  { %v1843_v33 = vmax.f32 %v1747_v54, 0.0 }
 0x329   :  { %v1881_v48 = vpack.c.bf16 %v1845_v20, %v1844_v50  ;;  %2207 = vmatmul.mubr.bf16.gmra.mrb[104].mxu1 %v4611_v22 }
 0x32a   :  { %v1880_v1 = vpack.c.bf16 %v1843_v33, %v1842_v44  ;;  %2216 = vmatprep.mubr.bf16.mxu1 %v5043_v35 }
 0x331   :  { %2217 = vmatmul.mubr.bf16.gmra.mrb[108].mxu1 %v4609_v14 }
 0x332   :  { %2226 = vmatprep.mubr.bf16.mxu1 %v5043_v35 }
 0x339   :  { %2227 = vmatmul.mubr.bf16.gmra.mrb[112].mxu1 %v4651_v30 }
 0x33a   :  { %2236 = vmatprep.mubr.bf16.mxu1 %v5043_v35 }
 0x341   :  { %2237 = vmatmul.mubr.bf16.gmra.mrb[116].mxu1 %v4649_v23 }
 0x342   :  { %2246 = vmatprep.mubr.bf16.mxu1 %v5043_v35 }
 0x345   :  { %v3262_v28 = vpop.f32.mrb[24].mxu1 }
 0x346   :  { %v1768_v62 = vadd.f32 %v4641_v63, %v3262_v28  ;;  %v1759_v53 = vpop.f32.mrb[25].mxu1 }
 0x347   :  { %v1760_v22 = vadd.f32 %v4641_v63, %v1759_v53  ;;  %v3263_v40 = vpop.f32.mrb[26].mxu1 }
 0x348   :  { %v1771_v52 = vadd.f32 %v4641_v63, %v3263_v40  ;;  %v1762_v14 = vpop.f32.mrb[27].mxu1  ;;  %v1848_v30 = vmax.f32 %v1768_v62, 0.0 }
 0x349   :  { %v1763_v19 = vadd.f32 %v4641_v63, %v1762_v14  ;;  %2247 = vmatmul.mubr.bf16.gmra.mrb[120].mxu1 %v4699_v38  ;;  %v1846_v23 = vmax.f32 %v1760_v22, 0.0  ;;  %v5061_v38 = vsub.s32 1, %v5059_v9 }
 0x34a   :  { %v1849_v56 = vmax.f32 %v1771_v52, 0.0  ;;  %2256 = vmatprep.mubr.bf16.mxu1 %v5043_v35 }
 0x34b   :  { %v1847_v15 = vmax.f32 %v1763_v19, 0.0  ;;  %v4770_v2 = vrot.slane %v1902_v26, %v5061_v38 }
 0x34c   :  { %v4751_v31 = vpack.c.bf16 %v1849_v56, %v1848_v30 }
 0x34d   :  { %v1882_v8 = vpack.c.bf16 %v1847_v15, %v1846_v23 }
 0x351   :  { %2257 = vmatmul.mubr.bf16.gmra.mrb[124].mxu1 %v4697_v42 }
 0x352   :  { %2266 = vmatprep.mubr.bf16.mxu1 %v5043_v35 }
 0x359   :  { %2267 = vmatmul.mubr.bf16.gmra.mrb[128].mxu1 %v1878_v13 }
 0x35a   :  { %2276 = vmatprep.mubr.bf16.mxu1 %v5043_v35 }
 0x361   :  { %2277 = vmatmul.mubr.bf16.gmra.mrb[132].mxu1 %v1879_v17 }
 0x362   :  { %2286 = vmatprep.mubr.bf16.mxu1 %v5043_v35 }
 0x364   :  { %v3266_v12 = vpop.f32.mrb[28].mxu1 }
 0x365   :  { %v1784_v4 = vadd.f32 %v4641_v63, %v3266_v12  ;;  %v1775_v43 = vpop.f32.mrb[29].mxu1 }
 0x366   :  { %v1776_v60 = vadd.f32 %v4641_v63, %v1775_v43  ;;  %v3267_v6 = vpop.f32.mrb[30].mxu1 }
 0x367   :  { %v1787_v29 = vadd.f32 %v4641_v63, %v3267_v6  ;;  %v1778_v59 = vpop.f32.mrb[31].mxu1  ;;  %v1852_v61 = vmax.f32 %v1784_v4, 0.0 }
 0x368   :  { %v1779_v34 = vadd.f32 %v4641_v63, %v1778_v59  ;;  %v1850_v55 = vmax.f32 %v1776_v60, 0.0 }
 0x369   :  { %v1853_v0 = vmax.f32 %v1787_v29, 0.0  ;;  %2287 = vmatmul.mubr.bf16.gmra.mrb[136].mxu1 %v1880_v1 }
 0x36a   :  { %v1851_v42 = vmax.f32 %v1779_v34, 0.0  ;;  %2296 = vmatprep.mubr.bf16.mxu1 %v5043_v35 }
 0x36b   :  { %v4773_v21 = vpack.c.bf16 %v1853_v0, %v1852_v61 }
 0x36c   :  { %v4775_v47 = vpack.c.bf16 %v1851_v42, %v1850_v55  ;;  %v2028_v63 = vpop.f32.mrb[32].mxu1 }
 0x36d   :  { %v2029_v36 = vadd.f32 %v2028_v63, %v4766_v37  ;;  %v2030_v41 = vpop.f32.mrb[33].mxu1 }
 0x36e   :  { %v2031_v18 = vadd.f32 %v2030_v41, %v4770_v2  ;;  %v2032_v57 = vpop.f32.mrb[34].mxu1 }
 0x36f   :  { %v2033_v49 = vadd.f32 %v2032_v57, %v4766_v37  ;;  %v2034_v11 = vpop.f32.mrb[35].mxu1  ;;  %v2347_v25 = vmax.f32 %v2029_v36, 0.0 }
 0x370   :  { %v2035_v27 = vadd.f32 %v2034_v11, %v4770_v2  ;;  %v2348_v3 = vmax.f32 %v2031_v18, 0.0 }
 0x371   :  { %v2349_v45 = vmax.f32 %v2033_v49, 0.0  ;;  %2297 = vmatmul.mubr.bf16.gmra.mrb[140].mxu1 %v1881_v48 }
 0x372   :  { %v2350_v7 = vmax.f32 %v2035_v27, 0.0  ;;  %2306 = vmatprep.mubr.bf16.mxu1 %v5043_v35 }
 0x373   :  { %v2475_v24 = vpack.c.bf16 %v2349_v45, %v2347_v25 }
 0x374   :  { %v2476_v17 = vpack.c.bf16 %v2350_v7, %v2348_v3  ;;  %v2038_v13 = vpop.f32.mrb[36].mxu1 }
 0x375   :  { %v2039_v10 = vadd.f32 %v2038_v13, %v4766_v37  ;;  %v2040_v5 = vpop.f32.mrb[37].mxu1 }
 0x376   :  { %v2041_v58 = vadd.f32 %v2040_v5, %v4770_v2  ;;  %v2042_v39 = vpop.f32.mrb[38].mxu1  ;;  %2706 = vmatprep.mubr.bf16.mxu0 %v2476_v17 }
 0x377   :  { %v2043_v16 = vadd.f32 %v2042_v39, %v4766_v37  ;;  %v2044_v51 = vpop.f32.mrb[39].mxu1  ;;  %2707 = vmatmul.mubr.bf16.vlgmr.msra.gmra.mrb[32].mxu0 %v2475_v24  ;;  %v2351_v54 = vmax.f32 %v2039_v10, 0.0 }
 0x378   :  { %v2045_v32 = vadd.f32 %v2044_v51, %v4770_v2  ;;  %v2352_v20 = vmax.f32 %v2041_v58, 0.0 }
 0x379   :  { %v2353_v50 = vmax.f32 %v2043_v16, 0.0  ;;  %2307 = vmatmul.mubr.bf16.gmra.mrb[144].mxu1 %v1882_v8 }
 0x37a   :  { %v2354_v44 = vmax.f32 %v2045_v32, 0.0  ;;  %2316 = vmatprep.mubr.bf16.mxu1 %v5043_v35 }
 0x37b   :  { %v2477_v33 = vpack.c.bf16 %v2353_v50, %v2351_v54 }
 0x37c   :  { %v2478_v48 = vpack.c.bf16 %v2354_v44, %v2352_v20  ;;  %v2048_v1 = vpop.f32.mrb[40].mxu1 }
 0x37d   :  { %v2049_v28 = vadd.f32 %v2048_v1, %v4766_v37  ;;  %v2050_v62 = vpop.f32.mrb[41].mxu1 }
 0x37e   :  { %v2051_v53 = vadd.f32 %v2050_v62, %v4770_v2  ;;  %v2052_v22 = vpop.f32.mrb[42].mxu1  ;;  %2714 = vmatprep.mubr.bf16.mxu0 %v2478_v48 }
 0x37f   :  { %v2053_v40 = vadd.f32 %v2052_v22, %v4766_v37  ;;  %v2054_v52 = vpop.f32.mrb[43].mxu1  ;;  %2715 = vmatmul.mubr.bf16.gmra.mrb[36].mxu0 %v2477_v33  ;;  %v2355_v19 = vmax.f32 %v2049_v28, 0.0 }
 0x380   :  { %v2055_v14 = vadd.f32 %v2054_v52, %v4770_v2  ;;  %v2356_v56 = vmax.f32 %v2051_v53, 0.0 }
 0x381   :  { %v2357_v30 = vmax.f32 %v2053_v40, 0.0  ;;  %2317 = vmatmul.mubr.bf16.gmra.mrb[148].mxu1 %v4751_v31 }
 0x382   :  { %v2358_v23 = vmax.f32 %v2055_v14, 0.0  ;;  %2326 = vmatprep.mubr.bf16.mxu1 %v5043_v35 }
 0x383   :  { %v2479_v15 = vpack.c.bf16 %v2357_v30, %v2355_v19 }
 0x384   :  { %v2480_v8 = vpack.c.bf16 %v2358_v23, %v2356_v56  ;;  %v2058_v12 = vpop.f32.mrb[44].mxu1 }
 0x385   :  { %v2059_v4 = vadd.f32 %v2058_v12, %v4766_v37  ;;  %v2060_v43 = vpop.f32.mrb[45].mxu1 }
 0x386   :  { %v2061_v60 = vadd.f32 %v2060_v43, %v4770_v2  ;;  %v2062_v6 = vpop.f32.mrb[46].mxu1  ;;  %2722 = vmatprep.mubr.bf16.mxu0 %v2480_v8 }
 0x387   :  { %v2063_v26 = vadd.f32 %v2062_v6, %v4766_v37  ;;  %v2064_v29 = vpop.f32.mrb[47].mxu1  ;;  %2723 = vmatmul.mubr.bf16.gmra.mrb[40].mxu0 %v2479_v15  ;;  %v2359_v59 = vmax.f32 %v2059_v4, 0.0 }
 0x388   :  { %v2065_v31 = vadd.f32 %v2064_v29, %v4770_v2  ;;  %v2360_v61 = vmax.f32 %v2061_v60, 0.0 }
 0x389   :  { %v2361_v34 = vmax.f32 %v2063_v26, 0.0  ;;  %2327 = vmatmul.mubr.bf16.gmra.mrb[152].mxu1 %v4775_v47 }
 0x38a   :  { %v2362_v0 = vmax.f32 %v2065_v31, 0.0  ;;  %2336 = vmatprep.mubr.bf16.mxu1 %v5043_v35 }
 0x38b   :  { %v2481_v9 = vpack.c.bf16 %v2361_v34, %v2359_v59 }
 0x38c   :  { %v2482_v46 = vpack.c.bf16 %v2362_v0, %v2360_v61  ;;  %v2068_v55 = vpop.f32.mrb[48].mxu1 }
 0x38d   :  { %v2069_v42 = vadd.f32 %v2068_v55, %v4766_v37  ;;  %v2070_v38 = vpop.f32.mrb[49].mxu1 }
 0x38e   :  { %v2071_v63 = vadd.f32 %v2070_v38, %v4770_v2  ;;  %v2072_v36 = vpop.f32.mrb[50].mxu1  ;;  %2730 = vmatprep.mubr.bf16.mxu0 %v2482_v46 }
 0x38f   :  { %v2073_v41 = vadd.f32 %v2072_v36, %v4766_v37  ;;  %v2074_v18 = vpop.f32.mrb[51].mxu1  ;;  %2731 = vmatmul.mubr.bf16.gmra.mrb[44].mxu0 %v2481_v9  ;;  %v2363_v57 = vmax.f32 %v2069_v42, 0.0 }
 0x390   :  { %v2075_v47 = vadd.f32 %v2074_v18, %v4770_v2  ;;  %v2364_v35 = vmax.f32 %v2071_v63, 0.0 }
 0x391   :  { %v2365_v49 = vmax.f32 %v2073_v41, 0.0  ;;  %2337 = vmatmul.mubr.bf16.gmra.mrb[156].mxu1 %v4773_v21 }
 0x392   :  { %v2366_v11 = vmax.f32 %v2075_v47, 0.0 }
 0x393   :  { %v2483_v27 = vpack.c.bf16 %v2365_v49, %v2363_v57 }
 0x394   :  { %v2484_v25 = vpack.c.bf16 %v2366_v11, %v2364_v35  ;;  %v2078_v45 = vpop.f32.mrb[52].mxu1 }
 0x395   :  { %v2079_v3 = vadd.f32 %v2078_v45, %v4766_v37  ;;  %v2080_v7 = vpop.f32.mrb[53].mxu1 }
 0x396   :  { %v2081_v24 = vadd.f32 %v2080_v7, %v4770_v2  ;;  %v2082_v17 = vpop.f32.mrb[54].mxu1  ;;  %2738 = vmatprep.mubr.bf16.mxu0 %v2484_v25 }
 0x397   :  { %v2083_v13 = vadd.f32 %v2082_v17, %v4766_v37  ;;  %v2084_v10 = vpop.f32.mrb[55].mxu1  ;;  %2739 = vmatmul.mubr.bf16.gmra.mrb[48].mxu0 %v2483_v27  ;;  %v2367_v58 = vmax.f32 %v2079_v3, 0.0 }
 0x398   :  { %v2085_v5 = vadd.f32 %v2084_v10, %v4770_v2  ;;  %v2368_v39 = vmax.f32 %v2081_v24, 0.0 }
 0x399   :  { %v2369_v21 = vmax.f32 %v2083_v13, 0.0 }
 0x39a   :  { %v2370_v16 = vmax.f32 %v2085_v5, 0.0 }
 0x39b   :  { %v2485_v51 = vpack.c.bf16 %v2369_v21, %v2367_v58 }
 0x39c   :  { %v2486_v32 = vpack.c.bf16 %v2370_v16, %v2368_v39  ;;  %v2088_v54 = vpop.f32.mrb[56].mxu1 }
 0x39d   :  { %v2089_v50 = vadd.f32 %v2088_v54, %v4766_v37  ;;  %v2090_v20 = vpop.f32.mrb[57].mxu1 }
 0x39e   :  { %v2091_v44 = vadd.f32 %v2090_v20, %v4770_v2  ;;  %v2092_v33 = vpop.f32.mrb[58].mxu1  ;;  %2746 = vmatprep.mubr.bf16.mxu0 %v2486_v32 }
 0x39f   :  { %v2093_v48 = vadd.f32 %v2092_v33, %v4766_v37  ;;  %v2094_v1 = vpop.f32.mrb[59].mxu1  ;;  %2747 = vmatmul.mubr.bf16.gmra.mrb[52].mxu0 %v2485_v51  ;;  %v2371_v62 = vmax.f32 %v2089_v50, 0.0 }
 0x3a0   :  { %v2095_v28 = vadd.f32 %v2094_v1, %v4770_v2  ;;  %v2372_v22 = vmax.f32 %v2091_v44, 0.0 }
 0x3a1   :  { %v2373_v53 = vmax.f32 %v2093_v48, 0.0 }
 0x3a2   :  { %v2374_v40 = vmax.f32 %v2095_v28, 0.0 }
 0x3a3   :  { %v2487_v52 = vpack.c.bf16 %v2373_v53, %v2371_v62 }
 0x3a4   :  { %v2488_v14 = vpack.c.bf16 %v2374_v40, %v2372_v22  ;;  %v2098_v19 = vpop.f32.mrb[60].mxu1 }
 0x3a5   :  { %v2099_v30 = vadd.f32 %v2098_v19, %v4766_v37  ;;  %v2100_v56 = vpop.f32.mrb[61].mxu1 }
 0x3a6   :  { %v2101_v23 = vadd.f32 %v2100_v56, %v4770_v2  ;;  %v2102_v15 = vpop.f32.mrb[62].mxu1  ;;  %2754 = vmatprep.mubr.bf16.mxu0 %v2488_v14 }
 0x3a7   :  { %v2103_v8 = vadd.f32 %v2102_v15, %v4766_v37  ;;  %v2104_v12 = vpop.f32.mrb[63].mxu1  ;;  %2755 = vmatmul.mubr.bf16.gmra.mrb[56].mxu0 %v2487_v52  ;;  %v2375_v43 = vmax.f32 %v2099_v30, 0.0 }
 0x3a8   :  { %v2105_v4 = vadd.f32 %v2104_v12, %v4770_v2  ;;  %v2376_v6 = vmax.f32 %v2101_v23, 0.0 }
 0x3a9   :  { %v2377_v60 = vmax.f32 %v2103_v8, 0.0 }
 0x3aa   :  { %v2378_v26 = vmax.f32 %v2105_v4, 0.0 }
 0x3ab   :  { %v2489_v29 = vpack.c.bf16 %v2377_v60, %v2375_v43 }
 0x3ac   :  { %v2490_v31 = vpack.c.bf16 %v2378_v26, %v2376_v6  ;;  %v2108_v59 = vpop.f32.mrb[64].mxu1 }
 0x3ad   :  { %v2109_v34 = vadd.f32 %v2108_v59, %v4766_v37  ;;  %v2110_v61 = vpop.f32.mrb[65].mxu1 }
 0x3ae   :  { %v2111_v0 = vadd.f32 %v2110_v61, %v4770_v2  ;;  %v2112_v9 = vpop.f32.mrb[66].mxu1  ;;  %2762 = vmatprep.mubr.bf16.mxu0 %v2490_v31 }
 0x3af   :  { %v2113_v46 = vadd.f32 %v2112_v9, %v4766_v37  ;;  %v2114_v55 = vpop.f32.mrb[67].mxu1  ;;  %2763 = vmatmul.mubr.bf16.gmra.mrb[60].mxu0 %v2489_v29  ;;  %v2379_v38 = vmax.f32 %v2109_v34, 0.0 }
 0x3b0   :  { %v2115_v42 = vadd.f32 %v2114_v55, %v4770_v2  ;;  %v2380_v36 = vmax.f32 %v2111_v0, 0.0 }
 0x3b1   :  { %v2381_v63 = vmax.f32 %v2113_v46, 0.0 }
 0x3b2   :  { %v2382_v41 = vmax.f32 %v2115_v42, 0.0 }
 0x3b3   :  { %v2491_v18 = vpack.c.bf16 %v2381_v63, %v2379_v38 }
 0x3b4   :  { %v2492_v47 = vpack.c.bf16 %v2382_v41, %v2380_v36  ;;  %v2118_v57 = vpop.f32.mrb[68].mxu1 }
 0x3b5   :  { %v2119_v49 = vadd.f32 %v2118_v57, %v4766_v37  ;;  %v2120_v35 = vpop.f32.mrb[69].mxu1 }
 0x3b6   :  { %v2121_v11 = vadd.f32 %v2120_v35, %v4770_v2  ;;  %v2122_v27 = vpop.f32.mrb[70].mxu1  ;;  %2770 = vmatprep.mubr.bf16.mxu0 %v2492_v47 }
 0x3b7   :  { %v2123_v25 = vadd.f32 %v2122_v27, %v4766_v37  ;;  %v2124_v45 = vpop.f32.mrb[71].mxu1  ;;  %2771 = vmatmul.mubr.bf16.gmra.mrb[64].mxu0 %v2491_v18  ;;  %v2383_v7 = vmax.f32 %v2119_v49, 0.0 }
 0x3b8   :  { %v2125_v3 = vadd.f32 %v2124_v45, %v4770_v2  ;;  %v2384_v17 = vmax.f32 %v2121_v11, 0.0 }
 0x3b9   :  { %v2385_v24 = vmax.f32 %v2123_v25, 0.0 }
 0x3ba   :  { %v2386_v13 = vmax.f32 %v2125_v3, 0.0 }
 0x3bb   :  { %v2493_v10 = vpack.c.bf16 %v2385_v24, %v2383_v7 }
 0x3bc   :  { %v2494_v5 = vpack.c.bf16 %v2386_v13, %v2384_v17  ;;  %v2128_v58 = vpop.f32.mrb[72].mxu1 }
 0x3bd   :  { %v2129_v21 = vadd.f32 %v2128_v58, %v4766_v37  ;;  %v2130_v39 = vpop.f32.mrb[73].mxu1 }
 0x3be   :  { %v2131_v16 = vadd.f32 %v2130_v39, %v4770_v2  ;;  %v2132_v51 = vpop.f32.mrb[74].mxu1  ;;  %2778 = vmatprep.mubr.bf16.mxu0 %v2494_v5 }
 0x3bf   :  { %v2133_v32 = vadd.f32 %v2132_v51, %v4766_v37  ;;  %v2134_v54 = vpop.f32.mrb[75].mxu1  ;;  %2779 = vmatmul.mubr.bf16.gmra.mrb[68].mxu0 %v2493_v10  ;;  %v2387_v20 = vmax.f32 %v2129_v21, 0.0 }
 0x3c0   :  { %v2135_v50 = vadd.f32 %v2134_v54, %v4770_v2  ;;  %v2388_v33 = vmax.f32 %v2131_v16, 0.0 }
 0x3c1   :  { %v2389_v44 = vmax.f32 %v2133_v32, 0.0 }
 0x3c2   :  { %v2390_v48 = vmax.f32 %v2135_v50, 0.0 }
 0x3c3   :  { %v2495_v1 = vpack.c.bf16 %v2389_v44, %v2387_v20 }
 0x3c4   :  { %v2496_v28 = vpack.c.bf16 %v2390_v48, %v2388_v33  ;;  %v2138_v62 = vpop.f32.mrb[76].mxu1 }
 0x3c5   :  { %v2139_v53 = vadd.f32 %v2138_v62, %v4766_v37  ;;  %v2140_v22 = vpop.f32.mrb[77].mxu1 }
 0x3c6   :  { %v2141_v40 = vadd.f32 %v2140_v22, %v4770_v2  ;;  %v2142_v52 = vpop.f32.mrb[78].mxu1  ;;  %2786 = vmatprep.mubr.bf16.mxu0 %v2496_v28 }
 0x3c7   :  { %v2143_v14 = vadd.f32 %v2142_v52, %v4766_v37  ;;  %v2144_v19 = vpop.f32.mrb[79].mxu1  ;;  %2787 = vmatmul.mubr.bf16.gmra.mrb[72].mxu0 %v2495_v1  ;;  %v2391_v56 = vmax.f32 %v2139_v53, 0.0 }
 0x3c8   :  { %v2145_v30 = vadd.f32 %v2144_v19, %v4770_v2  ;;  %v2392_v15 = vmax.f32 %v2141_v40, 0.0 }
 0x3c9   :  { %v2393_v23 = vmax.f32 %v2143_v14, 0.0 }
 0x3ca   :  { %v2394_v8 = vmax.f32 %v2145_v30, 0.0 }
 0x3cb   :  { %v2497_v12 = vpack.c.bf16 %v2393_v23, %v2391_v56 }
 0x3cc   :  { %v2498_v4 = vpack.c.bf16 %v2394_v8, %v2392_v15  ;;  %v2148_v43 = vpop.f32.mrb[80].mxu1 }
 0x3cd   :  { %v2149_v60 = vadd.f32 %v2148_v43, %v4766_v37  ;;  %v2150_v6 = vpop.f32.mrb[81].mxu1 }
 0x3ce   :  { %v2151_v26 = vadd.f32 %v2150_v6, %v4770_v2  ;;  %v2152_v29 = vpop.f32.mrb[82].mxu1  ;;  %2794 = vmatprep.mubr.bf16.mxu0 %v2498_v4 }
 0x3cf   :  { %v2153_v31 = vadd.f32 %v2152_v29, %v4766_v37  ;;  %v2154_v59 = vpop.f32.mrb[83].mxu1  ;;  %2795 = vmatmul.mubr.bf16.gmra.mrb[76].mxu0 %v2497_v12  ;;  %v2395_v61 = vmax.f32 %v2149_v60, 0.0 }
 0x3d0   :  { %v2155_v34 = vadd.f32 %v2154_v59, %v4770_v2  ;;  %v2396_v9 = vmax.f32 %v2151_v26, 0.0 }
 0x3d1   :  { %v2397_v0 = vmax.f32 %v2153_v31, 0.0 }
 0x3d2   :  { %v2398_v46 = vmax.f32 %v2155_v34, 0.0 }
 0x3d3   :  { %v2499_v55 = vpack.c.bf16 %v2397_v0, %v2395_v61 }
 0x3d4   :  { %v2500_v42 = vpack.c.bf16 %v2398_v46, %v2396_v9  ;;  %v2158_v38 = vpop.f32.mrb[84].mxu1 }
 0x3d5   :  { %v2159_v63 = vadd.f32 %v2158_v38, %v4766_v37  ;;  %v2160_v36 = vpop.f32.mrb[85].mxu1 }
 0x3d6   :  { %v2161_v41 = vadd.f32 %v2160_v36, %v4770_v2  ;;  %v2162_v18 = vpop.f32.mrb[86].mxu1  ;;  %2802 = vmatprep.mubr.bf16.mxu0 %v2500_v42 }
 0x3d7   :  { %v2163_v47 = vadd.f32 %v2162_v18, %v4766_v37  ;;  %v2164_v57 = vpop.f32.mrb[87].mxu1  ;;  %2803 = vmatmul.mubr.bf16.gmra.mrb[80].mxu0 %v2499_v55  ;;  %v2399_v35 = vmax.f32 %v2159_v63, 0.0 }
 0x3d8   :  { %v2165_v49 = vadd.f32 %v2164_v57, %v4770_v2  ;;  %v2400_v27 = vmax.f32 %v2161_v41, 0.0 }
 0x3d9   :  { %v2401_v11 = vmax.f32 %v2163_v47, 0.0 }
 0x3da   :  { %v2402_v25 = vmax.f32 %v2165_v49, 0.0 }
 0x3db   :  { %v2501_v45 = vpack.c.bf16 %v2401_v11, %v2399_v35 }
 0x3dc   :  { %v2502_v3 = vpack.c.bf16 %v2402_v25, %v2400_v27  ;;  %v2168_v7 = vpop.f32.mrb[88].mxu1 }
 0x3dd   :  { %v2169_v24 = vadd.f32 %v2168_v7, %v4766_v37  ;;  %v2170_v17 = vpop.f32.mrb[89].mxu1 }
 0x3de   :  { %v2171_v13 = vadd.f32 %v2170_v17, %v4770_v2  ;;  %v2172_v10 = vpop.f32.mrb[90].mxu1  ;;  %2810 = vmatprep.mubr.bf16.mxu0 %v2502_v3 }
 0x3df   :  { %v2173_v5 = vadd.f32 %v2172_v10, %v4766_v37  ;;  %v2174_v58 = vpop.f32.mrb[91].mxu1  ;;  %2811 = vmatmul.mubr.bf16.gmra.mrb[84].mxu0 %v2501_v45  ;;  %v2403_v39 = vmax.f32 %v2169_v24, 0.0 }
 0x3e0   :  { %v2175_v21 = vadd.f32 %v2174_v58, %v4770_v2  ;;  %v2404_v51 = vmax.f32 %v2171_v13, 0.0 }
 0x3e1   :  { %v2405_v16 = vmax.f32 %v2173_v5, 0.0 }
 0x3e2   :  { %v2406_v32 = vmax.f32 %v2175_v21, 0.0 }
 0x3e3   :  { %v2503_v54 = vpack.c.bf16 %v2405_v16, %v2403_v39 }
 0x3e4   :  { %v2504_v50 = vpack.c.bf16 %v2406_v32, %v2404_v51  ;;  %v2178_v20 = vpop.f32.mrb[92].mxu1 }
 0x3e5   :  { %v2179_v44 = vadd.f32 %v2178_v20, %v4766_v37  ;;  %v2180_v33 = vpop.f32.mrb[93].mxu1 }
 0x3e6   :  { %v2181_v48 = vadd.f32 %v2180_v33, %v4770_v2  ;;  %v2182_v1 = vpop.f32.mrb[94].mxu1  ;;  %2818 = vmatprep.mubr.bf16.mxu0 %v2504_v50 }
 0x3e7   :  { %v2183_v28 = vadd.f32 %v2182_v1, %v4766_v37  ;;  %v2184_v62 = vpop.f32.mrb[95].mxu1  ;;  %2819 = vmatmul.mubr.bf16.gmra.mrb[88].mxu0 %v2503_v54  ;;  %v2407_v22 = vmax.f32 %v2179_v44, 0.0 }
 0x3e8   :  { %v2185_v53 = vadd.f32 %v2184_v62, %v4770_v2  ;;  %v2408_v52 = vmax.f32 %v2181_v48, 0.0 }
 0x3e9   :  { %v2409_v40 = vmax.f32 %v2183_v28, 0.0 }
 0x3ea   :  { %v2410_v14 = vmax.f32 %v2185_v53, 0.0 }
 0x3eb   :  { %v2505_v19 = vpack.c.bf16 %v2409_v40, %v2407_v22 }
 0x3ec   :  { %v2506_v30 = vpack.c.bf16 %v2410_v14, %v2408_v52  ;;  %v2188_v56 = vpop.f32.mrb[96].mxu1 }
 0x3ed   :  { %v2189_v23 = vadd.f32 %v2188_v56, %v4766_v37  ;;  %v2190_v15 = vpop.f32.mrb[97].mxu1 }
 0x3ee   :  { %v2191_v8 = vadd.f32 %v2190_v15, %v4770_v2  ;;  %v2192_v12 = vpop.f32.mrb[98].mxu1  ;;  %2826 = vmatprep.mubr.bf16.mxu0 %v2506_v30 }
 0x3ef   :  { %v2193_v4 = vadd.f32 %v2192_v12, %v4766_v37  ;;  %v2194_v43 = vpop.f32.mrb[99].mxu1  ;;  %2827 = vmatmul.mubr.bf16.gmra.mrb[92].mxu0 %v2505_v19  ;;  %v2411_v6 = vmax.f32 %v2189_v23, 0.0 }
 0x3f0   :  { %v2195_v60 = vadd.f32 %v2194_v43, %v4770_v2  ;;  %v2412_v29 = vmax.f32 %v2191_v8, 0.0 }
 0x3f1   :  { %v2413_v26 = vmax.f32 %v2193_v4, 0.0 }
 0x3f2   :  { %v2414_v31 = vmax.f32 %v2195_v60, 0.0 }
 0x3f3   :  { %v2507_v59 = vpack.c.bf16 %v2413_v26, %v2411_v6 }
 0x3f4   :  { %v2508_v34 = vpack.c.bf16 %v2414_v31, %v2412_v29  ;;  %v2198_v61 = vpop.f32.mrb[100].mxu1 }
 0x3f5   :  { %v2199_v0 = vadd.f32 %v2198_v61, %v4766_v37  ;;  %v2200_v9 = vpop.f32.mrb[101].mxu1 }
 0x3f6   :  { %v2201_v46 = vadd.f32 %v2200_v9, %v4770_v2  ;;  %v2202_v55 = vpop.f32.mrb[102].mxu1  ;;  %2834 = vmatprep.mubr.bf16.mxu0 %v2508_v34 }
 0x3f7   :  { %v2203_v42 = vadd.f32 %v2202_v55, %v4766_v37  ;;  %v2204_v38 = vpop.f32.mrb[103].mxu1  ;;  %2835 = vmatmul.mubr.bf16.gmra.mrb[96].mxu0 %v2507_v59  ;;  %v2415_v36 = vmax.f32 %v2199_v0, 0.0 }
 0x3f8   :  { %v2205_v63 = vadd.f32 %v2204_v38, %v4770_v2  ;;  %v2416_v18 = vmax.f32 %v2201_v46, 0.0 }
 0x3f9   :  { %v2417_v41 = vmax.f32 %v2203_v42, 0.0 }
 0x3fa   :  { %v2418_v47 = vmax.f32 %v2205_v63, 0.0 }
 0x3fb   :  { %v2509_v57 = vpack.c.bf16 %v2417_v41, %v2415_v36 }
 0x3fc   :  { %v2510_v49 = vpack.c.bf16 %v2418_v47, %v2416_v18  ;;  %v2208_v35 = vpop.f32.mrb[104].mxu1 }
 0x3fd   :  { %v2209_v11 = vadd.f32 %v2208_v35, %v4766_v37  ;;  %v2210_v27 = vpop.f32.mrb[105].mxu1 }
 0x3fe   :  { %v2211_v25 = vadd.f32 %v2210_v27, %v4770_v2  ;;  %v2212_v45 = vpop.f32.mrb[106].mxu1  ;;  %2842 = vmatprep.mubr.bf16.mxu0 %v2510_v49 }
 0x3ff   :  { %v2213_v3 = vadd.f32 %v2212_v45, %v4766_v37  ;;  %v2214_v7 = vpop.f32.mrb[107].mxu1  ;;  %2843 = vmatmul.mubr.bf16.gmra.mrb[100].mxu0 %v2509_v57  ;;  %v2419_v17 = vmax.f32 %v2209_v11, 0.0 }
 0x400   :  { %v2215_v24 = vadd.f32 %v2214_v7, %v4770_v2  ;;  %v2420_v10 = vmax.f32 %v2211_v25, 0.0 }
 0x401   :  { %v2421_v13 = vmax.f32 %v2213_v3, 0.0 }
 0x402   :  { %v2422_v5 = vmax.f32 %v2215_v24, 0.0 }
 0x403   :  { %v2511_v58 = vpack.c.bf16 %v2421_v13, %v2419_v17 }
 0x404   :  { %v2512_v21 = vpack.c.bf16 %v2422_v5, %v2420_v10  ;;  %v2218_v39 = vpop.f32.mrb[108].mxu1 }
 0x405   :  { %v2219_v16 = vadd.f32 %v2218_v39, %v4766_v37  ;;  %v2220_v51 = vpop.f32.mrb[109].mxu1 }
 0x406   :  { %v2221_v32 = vadd.f32 %v2220_v51, %v4770_v2  ;;  %v2222_v54 = vpop.f32.mrb[110].mxu1  ;;  %2850 = vmatprep.mubr.bf16.mxu0 %v2512_v21 }
 0x407   :  { %v2223_v50 = vadd.f32 %v2222_v54, %v4766_v37  ;;  %v2224_v20 = vpop.f32.mrb[111].mxu1  ;;  %2851 = vmatmul.mubr.bf16.gmra.mrb[104].mxu0 %v2511_v58  ;;  %v2423_v33 = vmax.f32 %v2219_v16, 0.0 }
 0x408   :  { %v2225_v44 = vadd.f32 %v2224_v20, %v4770_v2  ;;  %v2424_v1 = vmax.f32 %v2221_v32, 0.0 }
 0x409   :  { %v2425_v48 = vmax.f32 %v2223_v50, 0.0 }
 0x40a   :  { %v2426_v28 = vmax.f32 %v2225_v44, 0.0 }
 0x40b   :  { %v2513_v62 = vpack.c.bf16 %v2425_v48, %v2423_v33 }
 0x40c   :  { %v2514_v53 = vpack.c.bf16 %v2426_v28, %v2424_v1  ;;  %v2228_v22 = vpop.f32.mrb[112].mxu1 }
 0x40d   :  { %v2229_v40 = vadd.f32 %v2228_v22, %v4766_v37  ;;  %v2230_v52 = vpop.f32.mrb[113].mxu1 }
 0x40e   :  { %v2231_v14 = vadd.f32 %v2230_v52, %v4770_v2  ;;  %v2232_v19 = vpop.f32.mrb[114].mxu1  ;;  %2858 = vmatprep.mubr.bf16.mxu0 %v2514_v53 }
 0x40f   :  { %v2233_v30 = vadd.f32 %v2232_v19, %v4766_v37  ;;  %v2234_v56 = vpop.f32.mrb[115].mxu1  ;;  %2859 = vmatmul.mubr.bf16.gmra.mrb[108].mxu0 %v2513_v62  ;;  %v2427_v15 = vmax.f32 %v2229_v40, 0.0 }
 0x410   :  { %v2235_v23 = vadd.f32 %v2234_v56, %v4770_v2  ;;  %v2428_v12 = vmax.f32 %v2231_v14, 0.0 }
 0x411   :  { %v2429_v8 = vmax.f32 %v2233_v30, 0.0 }
 0x412   :  { %v2430_v4 = vmax.f32 %v2235_v23, 0.0 }
 0x413   :  { %v2515_v43 = vpack.c.bf16 %v2429_v8, %v2427_v15 }
 0x414   :  { %v2516_v60 = vpack.c.bf16 %v2430_v4, %v2428_v12  ;;  %v2238_v6 = vpop.f32.mrb[116].mxu1 }
 0x415   :  { %v2239_v26 = vadd.f32 %v2238_v6, %v4766_v37  ;;  %v2240_v29 = vpop.f32.mrb[117].mxu1 }
 0x416   :  { %v2241_v31 = vadd.f32 %v2240_v29, %v4770_v2  ;;  %v2242_v59 = vpop.f32.mrb[118].mxu1  ;;  %2866 = vmatprep.mubr.bf16.mxu0 %v2516_v60 }
 0x417   :  { %v2243_v34 = vadd.f32 %v2242_v59, %v4766_v37  ;;  %v2244_v61 = vpop.f32.mrb[119].mxu1  ;;  %2867 = vmatmul.mubr.bf16.gmra.mrb[112].mxu0 %v2515_v43  ;;  %v2431_v9 = vmax.f32 %v2239_v26, 0.0 }
 0x418   :  { %v2245_v0 = vadd.f32 %v2244_v61, %v4770_v2  ;;  %v2432_v55 = vmax.f32 %v2241_v31, 0.0 }
 0x419   :  { %v2433_v46 = vmax.f32 %v2243_v34, 0.0 }
 0x41a   :  { %v2434_v42 = vmax.f32 %v2245_v0, 0.0 }
 0x41b   :  { %v2517_v38 = vpack.c.bf16 %v2433_v46, %v2431_v9 }
 0x41c   :  { %v2518_v63 = vpack.c.bf16 %v2434_v42, %v2432_v55  ;;  %v2248_v36 = vpop.f32.mrb[120].mxu1 }
 0x41d   :  { %v2249_v41 = vadd.f32 %v2248_v36, %v4766_v37  ;;  %v2250_v18 = vpop.f32.mrb[121].mxu1 }
 0x41e   :  { %v2251_v47 = vadd.f32 %v2250_v18, %v4770_v2  ;;  %v2252_v57 = vpop.f32.mrb[122].mxu1  ;;  %2874 = vmatprep.mubr.bf16.mxu0 %v2518_v63 }
 0x41f   :  { %v2253_v49 = vadd.f32 %v2252_v57, %v4766_v37  ;;  %v2254_v35 = vpop.f32.mrb[123].mxu1  ;;  %2875 = vmatmul.mubr.bf16.gmra.mrb[116].mxu0 %v2517_v38  ;;  %v2435_v27 = vmax.f32 %v2249_v41, 0.0 }
 0x420   :  { %v2255_v11 = vadd.f32 %v2254_v35, %v4770_v2  ;;  %v2436_v45 = vmax.f32 %v2251_v47, 0.0 }
 0x421   :  { %v2437_v25 = vmax.f32 %v2253_v49, 0.0 }
 0x422   :  { %v2438_v3 = vmax.f32 %v2255_v11, 0.0 }
 0x423   :  { %v2519_v7 = vpack.c.bf16 %v2437_v25, %v2435_v27 }
 0x424   :  { %v2520_v24 = vpack.c.bf16 %v2438_v3, %v2436_v45  ;;  %v2258_v17 = vpop.f32.mrb[124].mxu1 }
 0x425   :  { %v2259_v13 = vadd.f32 %v2258_v17, %v4766_v37  ;;  %v2260_v10 = vpop.f32.mrb[125].mxu1 }
 0x426   :  { %v2261_v5 = vadd.f32 %v2260_v10, %v4770_v2  ;;  %v2262_v58 = vpop.f32.mrb[126].mxu1  ;;  %2882 = vmatprep.mubr.bf16.mxu0 %v2520_v24 }
 0x427   :  { %v2263_v21 = vadd.f32 %v2262_v58, %v4766_v37  ;;  %v2264_v39 = vpop.f32.mrb[127].mxu1  ;;  %2883 = vmatmul.mubr.bf16.gmra.mrb[120].mxu0 %v2519_v7  ;;  %v2439_v51 = vmax.f32 %v2259_v13, 0.0 }
 0x428   :  { %v2265_v16 = vadd.f32 %v2264_v39, %v4770_v2  ;;  %v2440_v54 = vmax.f32 %v2261_v5, 0.0  ;;  %v4899_v39 = vld [vmem:[%s5001_s8] ss:$0 sm:$0xff]  ;;  %s3423_s8 = smov [#allocation2]  }
 0x429   :  { %v2441_v32 = vmax.f32 %v2263_v21, 0.0  ;;  %s3097_s26 = sshll.u32 %s3423_s8, 4  ;;  %s3098_s26 = int_to_ptr.vmem [resolvable:$true] %s3097_s26 }
 0x42a   :  { %v2442_v50 = vmax.f32 %v2265_v16, 0.0  ;;  %s3396_s2 = scalar_lea.vmem %s3098_s26, 128  ;;  %p3401_p1 = scmp.lt.s32.totalorder %s3098_s26, %s3098_s26 }
 0x42b   :  { %v2521_v20 = vpack.c.bf16 %v2441_v32, %v2439_v51  ;;  %p3397_p0 = scmp.ne.s32.totalorder %s3098_s26, %s3396_s2  ;;  %p3402_p2 = scmp.lt.s32.totalorder %s3396_s2, %s3396_s2 }
 0x42c   :  { %v2522_v44 = vpack.c.bf16 %v2442_v50, %v2440_v54  ;;  %v2268_v33 = vpop.f32.mrb[128].mxu1 }
 0x42d   :  { %v2269_v48 = vadd.f32 %v2268_v33, %v4766_v37  ;;  %v2270_v1 = vpop.f32.mrb[129].mxu1  ;;  %p3403_p3 = por %p3402_p2, %p3401_p1 }
 0x42e   :  { %v2271_v28 = vadd.f32 %v2270_v1, %v4770_v2  ;;  %v2272_v62 = vpop.f32.mrb[130].mxu1  ;;  %2890 = vmatprep.mubr.bf16.mxu0 %v2522_v44 }
 0x42f   :  { %v2273_v53 = vadd.f32 %v2272_v62, %v4766_v37  ;;  %v2274_v22 = vpop.f32.mrb[131].mxu1  ;;  %2891 = vmatmul.mubr.bf16.gmra.mrb[124].mxu0 %v2521_v20  ;;  %v2443_v52 = vmax.f32 %v2269_v48, 0.0  ;;  %p3404_p4 = pnand %p3403_p3, %p3397_p0 }
 0x430   :  { %v2275_v40 = vadd.f32 %v2274_v22, %v4770_v2  ;;  %v2444_v19 = vmax.f32 %v2271_v28, 0.0 }
 0x431   :  { %v2445_v14 = vmax.f32 %v2273_v53, 0.0 }
 0x432   :  { %v2446_v30 = vmax.f32 %v2275_v40, 0.0 }
 0x433   :  { %v2523_v56 = vpack.c.bf16 %v2445_v14, %v2443_v52 }
 0x434   :  { %v2524_v23 = vpack.c.bf16 %v2446_v30, %v2444_v19  ;;  %v2278_v15 = vpop.f32.mrb[132].mxu1 }
 0x435   :  { %v2279_v8 = vadd.f32 %v2278_v15, %v4766_v37  ;;  %v2280_v12 = vpop.f32.mrb[133].mxu1 }
 0x436   :  { %v2281_v4 = vadd.f32 %v2280_v12, %v4770_v2  ;;  %v2282_v43 = vpop.f32.mrb[134].mxu1  ;;  %2898 = vmatprep.mubr.bf16.mxu0 %v2524_v23 }
 0x437   :  { %v2283_v60 = vadd.f32 %v2282_v43, %v4766_v37  ;;  %v2284_v6 = vpop.f32.mrb[135].mxu1  ;;  %2899 = vmatmul.mubr.bf16.gmra.mrb[128].mxu0 %v2523_v56  ;;  %v2447_v29 = vmax.f32 %v2279_v8, 0.0 }
 0x438   :  { %v2285_v26 = vadd.f32 %v2284_v6, %v4770_v2  ;;  %v2448_v59 = vmax.f32 %v2281_v4, 0.0 }
 0x439   :  { %v2449_v31 = vmax.f32 %v2283_v60, 0.0 }
 0x43a   :  { %v2450_v34 = vmax.f32 %v2285_v26, 0.0 }
 0x43b   :  { %v2525_v61 = vpack.c.bf16 %v2449_v31, %v2447_v29 }
 0x43c   :  { %v2526_v0 = vpack.c.bf16 %v2450_v34, %v2448_v59  ;;  %v2288_v9 = vpop.f32.mrb[136].mxu1 }
 0x43d   :  { %v2289_v46 = vadd.f32 %v2288_v9, %v4766_v37  ;;  %v2290_v55 = vpop.f32.mrb[137].mxu1 }
 0x43e   :  { %v2291_v42 = vadd.f32 %v2290_v55, %v4770_v2  ;;  %v2292_v38 = vpop.f32.mrb[138].mxu1  ;;  %2906 = vmatprep.mubr.bf16.mxu0 %v2526_v0 }
 0x43f   :  { %v2293_v63 = vadd.f32 %v2292_v38, %v4766_v37  ;;  %v2294_v36 = vpop.f32.mrb[139].mxu1  ;;  %2907 = vmatmul.mubr.bf16.gmra.mrb[132].mxu0 %v2525_v61  ;;  %v2451_v18 = vmax.f32 %v2289_v46, 0.0 }
 0x440   :  { %v2295_v41 = vadd.f32 %v2294_v36, %v4770_v2  ;;  %v2452_v57 = vmax.f32 %v2291_v42, 0.0 }
 0x441   :  { %v2453_v47 = vmax.f32 %v2293_v63, 0.0 }
 0x442   :  { %v2454_v49 = vmax.f32 %v2295_v41, 0.0 }
 0x443   :  { %v2527_v35 = vpack.c.bf16 %v2453_v47, %v2451_v18 }
 0x444   :  { %v2528_v11 = vpack.c.bf16 %v2454_v49, %v2452_v57  ;;  %v2298_v27 = vpop.f32.mrb[140].mxu1 }
 0x445   :  { %v2299_v25 = vadd.f32 %v2298_v27, %v4766_v37  ;;  %v2300_v45 = vpop.f32.mrb[141].mxu1 }
 0x446   :  { %v2301_v3 = vadd.f32 %v2300_v45, %v4770_v2  ;;  %v2302_v7 = vpop.f32.mrb[142].mxu1  ;;  %2914 = vmatprep.mubr.bf16.mxu0 %v2528_v11 }
 0x447   :  { %v2303_v24 = vadd.f32 %v2302_v7, %v4766_v37  ;;  %v2304_v17 = vpop.f32.mrb[143].mxu1  ;;  %2915 = vmatmul.mubr.bf16.gmra.mrb[136].mxu0 %v2527_v35  ;;  %v2455_v10 = vmax.f32 %v2299_v25, 0.0 }
 0x448   :  { %v2305_v13 = vadd.f32 %v2304_v17, %v4770_v2  ;;  %v2456_v58 = vmax.f32 %v2301_v3, 0.0 }
 0x449   :  { %v2457_v5 = vmax.f32 %v2303_v24, 0.0 }
 0x44a   :  { %v2458_v21 = vmax.f32 %v2305_v13, 0.0  ;;  %v2708_v16 = vpop.f32.mrb[32].mxu0 }
 0x44b   :  { %v2529_v51 = vpack.c.bf16 %v2457_v5, %v2455_v10  ;;  %v2710_v32 = vpop.f32.mrb[33].mxu0  ;;  %v2709_v44 = vadd.f32 %v4899_v39, %v2708_v16 }
 0x44c   :  { %v2530_v54 = vpack.c.bf16 %v2458_v21, %v2456_v58  ;;  %v2308_v50 = vpop.f32.mrb[144].mxu1  ;;  %v2711_v20 = vpop.f32.mrb[34].mxu0 }
 0x44d   :  { %v2309_v33 = vadd.f32 %v2308_v50, %v4766_v37  ;;  %v2712_v48 = vadd.f32 %v4899_v39, %v2711_v20  ;;  %v2310_v1 = vpop.f32.mrb[145].mxu1  ;;  %v2713_v28 = vpop.f32.mrb[35].mxu0 }
 0x44e   :  { %v2311_v62 = vadd.f32 %v2310_v1, %v4770_v2  ;;  %v2312_v53 = vpop.f32.mrb[146].mxu1  ;;  %2922 = vmatprep.mubr.bf16.mxu0 %v2530_v54 }
 0x44f   :  { %v2963_v22 = vmax.f32 %v2709_v44, %v2712_v48  ;;  %v2313_v40 = vadd.f32 %v2312_v53, %v4766_v37  ;;  %v2314_v52 = vpop.f32.mrb[147].mxu1  ;;  %2923 = vmatmul.mubr.bf16.gmra.mrb[140].mxu0 %v2529_v51  ;;  %v2459_v19 = vmax.f32 %v2309_v33, 0.0 }
 0x450   :  { %v2315_v14 = vadd.f32 %v2314_v52, %v4770_v2  ;;  %v2460_v56 = vmax.f32 %v2311_v62, 0.0 }
 0x451   :  { %v2461_v30 = vmax.f32 %v2313_v40, 0.0 }
 0x452   :  { %v2462_v23 = vmax.f32 %v2315_v14, 0.0  ;;  %v2716_v15 = vpop.f32.mrb[36].mxu0 }
 0x453   :  { %v2531_v8 = vpack.c.bf16 %v2461_v30, %v2459_v19  ;;  %v2717_v12 = vadd.f32 %v4899_v39, %v2716_v15  ;;  %v2718_v4 = vpop.f32.mrb[37].mxu0 }
 0x454   :  { %v2532_v43 = vpack.c.bf16 %v2462_v23, %v2460_v56  ;;  %v2318_v60 = vpop.f32.mrb[148].mxu1  ;;  %v2719_v6 = vpop.f32.mrb[38].mxu0 }
 0x455   :  { %v2964_v26 = vmax.f32 %v2963_v22, %v2717_v12  ;;  %v2319_v29 = vadd.f32 %v2318_v60, %v4766_v37  ;;  %v2720_v31 = vadd.f32 %v4899_v39, %v2719_v6  ;;  %v2320_v59 = vpop.f32.mrb[149].mxu1  ;;  %v2721_v34 = vpop.f32.mrb[39].mxu0 }
 0x456   :  { %v2321_v61 = vadd.f32 %v2320_v59, %v4770_v2  ;;  %v2322_v0 = vpop.f32.mrb[150].mxu1  ;;  %2930 = vmatprep.mubr.bf16.mxu0 %v2532_v43 }
 0x457   :  { %v2965_v9 = vmax.f32 %v2964_v26, %v2720_v31  ;;  %v2323_v46 = vadd.f32 %v2322_v0, %v4766_v37  ;;  %v2324_v55 = vpop.f32.mrb[151].mxu1  ;;  %2931 = vmatmul.mubr.bf16.gmra.mrb[144].mxu0 %v2531_v8  ;;  %v2463_v38 = vmax.f32 %v2319_v29, 0.0 }
 0x458   :  { %v2325_v42 = vadd.f32 %v2324_v55, %v4770_v2  ;;  %v2464_v36 = vmax.f32 %v2321_v61, 0.0 }
 0x459   :  { %v2465_v63 = vmax.f32 %v2323_v46, 0.0 }
 0x45a   :  { %v2466_v41 = vmax.f32 %v2325_v42, 0.0  ;;  %v2724_v18 = vpop.f32.mrb[40].mxu0 }
 0x45b   :  { %v2533_v47 = vpack.c.bf16 %v2465_v63, %v2463_v38  ;;  %v2725_v57 = vadd.f32 %v4899_v39, %v2724_v18  ;;  %v2726_v49 = vpop.f32.mrb[41].mxu0 }
 0x45c   :  { %v2534_v35 = vpack.c.bf16 %v2466_v41, %v2464_v36  ;;  %v2328_v11 = vpop.f32.mrb[152].mxu1  ;;  %v2727_v27 = vpop.f32.mrb[42].mxu0 }
 0x45d   :  { %v2966_v25 = vmax.f32 %v2965_v9, %v2725_v57  ;;  %v2329_v45 = vadd.f32 %v2328_v11, %v4766_v37  ;;  %v2728_v3 = vadd.f32 %v4899_v39, %v2727_v27  ;;  %v2330_v7 = vpop.f32.mrb[153].mxu1  ;;  %v2729_v24 = vpop.f32.mrb[43].mxu0 }
 0x45e   :  { %v2331_v17 = vadd.f32 %v2330_v7, %v4770_v2  ;;  %v2332_v13 = vpop.f32.mrb[154].mxu1  ;;  %2938 = vmatprep.mubr.bf16.mxu0 %v2534_v35 }
 0x45f   :  { %v2967_v10 = vmax.f32 %v2966_v25, %v2728_v3  ;;  %v2333_v5 = vadd.f32 %v2332_v13, %v4766_v37  ;;  %v2334_v58 = vpop.f32.mrb[155].mxu1  ;;  %2939 = vmatmul.mubr.bf16.gmra.mrb[148].mxu0 %v2533_v47  ;;  %v2467_v16 = vmax.f32 %v2329_v45, 0.0 }
 0x460   :  { %v2335_v21 = vadd.f32 %v2334_v58, %v4770_v2  ;;  %v2468_v32 = vmax.f32 %v2331_v17, 0.0 }
 0x461   :  { %v2469_v51 = vmax.f32 %v2333_v5, 0.0 }
 0x462   :  { %v2470_v54 = vmax.f32 %v2335_v21, 0.0  ;;  %v2732_v50 = vpop.f32.mrb[44].mxu0 }
 0x463   :  { %v2535_v20 = vpack.c.bf16 %v2469_v51, %v2467_v16  ;;  %v2733_v44 = vadd.f32 %v4899_v39, %v2732_v50  ;;  %v2734_v33 = vpop.f32.mrb[45].mxu0 }
 0x464   :  { %v2536_v48 = vpack.c.bf16 %v2470_v54, %v2468_v32  ;;  %v2338_v1 = vpop.f32.mrb[156].mxu1  ;;  %v2735_v28 = vpop.f32.mrb[46].mxu0 }
 0x465   :  { %v2968_v62 = vmax.f32 %v2967_v10, %v2733_v44  ;;  %v2339_v53 = vadd.f32 %v2338_v1, %v4766_v37  ;;  %v2736_v22 = vadd.f32 %v4899_v39, %v2735_v28  ;;  %v2340_v40 = vpop.f32.mrb[157].mxu1  ;;  %v2737_v52 = vpop.f32.mrb[47].mxu0 }
 0x466   :  { %v2341_v14 = vadd.f32 %v2340_v40, %v4770_v2  ;;  %v2342_v19 = vpop.f32.mrb[158].mxu1  ;;  %2946 = vmatprep.mubr.bf16.mxu0 %v2536_v48 }
 0x467   :  { %v2969_v30 = vmax.f32 %v2968_v62, %v2736_v22  ;;  %v2343_v56 = vadd.f32 %v2342_v19, %v4766_v37  ;;  %v2344_v23 = vpop.f32.mrb[159].mxu1  ;;  %2947 = vmatmul.mubr.bf16.gmra.mrb[152].mxu0 %v2535_v20  ;;  %v2471_v8 = vmax.f32 %v2339_v53, 0.0 }
 0x468   :  { %v2345_v15 = vadd.f32 %v2344_v23, %v4770_v2  ;;  %v2472_v4 = vmax.f32 %v2341_v14, 0.0 }
 0x469   :  { %v2473_v12 = vmax.f32 %v2343_v56, 0.0  ;;  %v2970_v11 = vrot.slane %v2969_v30, 4 }
 0x46a   :  { %v2474_v43 = vmax.f32 %v2345_v15, 0.0  ;;  %v2740_v60 = vpop.f32.mrb[48].mxu0 }
 0x46b   :  { %v2537_v6 = vpack.c.bf16 %v2473_v12, %v2471_v8  ;;  %v2742_v26 = vpop.f32.mrb[49].mxu0  ;;  %v2741_v59 = vadd.f32 %v4899_v39, %v2740_v60  ;;  %v2971_v45 = vmax.f32 %v2969_v30, %v2970_v11 }
 0x46c   :  { %v2538_v29 = vpack.c.bf16 %v2474_v43, %v2472_v4  ;;  %v2743_v31 = vpop.f32.mrb[50].mxu0 }
 0x46d   :  { %v2744_v34 = vadd.f32 %v4899_v39, %v2743_v31  ;;  %v2745_v61 = vpop.f32.mrb[51].mxu0  ;;  %v2972_v5 = vrot.slane %v2971_v45, 2 }
 0x46e   :  { %2954 = vmatprep.mubr.bf16.mxu0 %v2538_v29 }
 0x46f   :  { %v2976_v37 = vmax.f32 %v2741_v59, %v2744_v34  ;;  %2955 = vmatmul.mubr.bf16.gmra.mrb[156].mxu0 %v2537_v6  ;;  %v2973_v51 = vmax.f32 %v2971_v45, %v2972_v5 }
 0x471   :  { %v2974_v1 = vrot.slane %v2973_v51, 1 }
 0x472   :  { %v2748_v0 = vpop.f32.mrb[52].mxu0 }
 0x473   :  { %v2749_v2 = vadd.f32 %v4899_v39, %v2748_v0  ;;  %v2750_v9 = vpop.f32.mrb[53].mxu0  ;;  %v2975_v40 = vmax.f32 %v2973_v51, %v2974_v1 }
 0x474   :  { %v2751_v46 = vpop.f32.mrb[54].mxu0 }
 0x475   :  { %v2977_v55 = vmax.f32 %v2976_v37, %v2749_v2  ;;  %v2752_v42 = vadd.f32 %v4899_v39, %v2751_v46  ;;  %v2753_v38 = vpop.f32.mrb[55].mxu0 }
 0x477   :  { %v2978_v63 = vmax.f32 %v2977_v55, %v2752_v42 }
 0x47a   :  { %v2756_v36 = vpop.f32.mrb[56].mxu0 }
 0x47b   :  { %v2757_v41 = vadd.f32 %v4899_v39, %v2756_v36  ;;  %v2758_v18 = vpop.f32.mrb[57].mxu0 }
 0x47c   :  { %v2759_v47 = vpop.f32.mrb[58].mxu0 }
 0x47d   :  { %v2979_v57 = vmax.f32 %v2978_v63, %v2757_v41  ;;  %v2760_v49 = vadd.f32 %v4899_v39, %v2759_v47  ;;  %v2761_v35 = vpop.f32.mrb[59].mxu0 }
 0x47f   :  { %v2980_v27 = vmax.f32 %v2979_v57, %v2760_v49 }
 0x482   :  { %v2764_v25 = vpop.f32.mrb[60].mxu0 }
 0x483   :  { %v2765_v3 = vadd.f32 %v4899_v39, %v2764_v25  ;;  %v2766_v7 = vpop.f32.mrb[61].mxu0 }
 0x484   :  { %v2767_v24 = vpop.f32.mrb[62].mxu0 }
 0x485   :  { %v2981_v17 = vmax.f32 %v2980_v27, %v2765_v3  ;;  %v2768_v13 = vadd.f32 %v4899_v39, %v2767_v24  ;;  %v2769_v10 = vpop.f32.mrb[63].mxu0 }
 0x487   :  { %v2982_v58 = vmax.f32 %v2981_v17, %v2768_v13 }
 0x489   :  { %v2983_v21 = vrot.slane %v2982_v58, 4 }
 0x48a   :  { %v2772_v16 = vpop.f32.mrb[64].mxu0 }
 0x48b   :  { %v2984_v32 = vmax.f32 %v2982_v58, %v2983_v21  ;;  %v2774_v54 = vpop.f32.mrb[65].mxu0  ;;  %v2773_v44 = vadd.f32 %v4899_v39, %v2772_v16 }
 0x48c   :  { %v2775_v50 = vpop.f32.mrb[66].mxu0 }
 0x48d   :  { %v2985_v20 = vrot.slane %v2984_v32, 2  ;;  %v2776_v33 = vadd.f32 %v4899_v39, %v2775_v50  ;;  %v2777_v48 = vpop.f32.mrb[67].mxu0 }
 0x48f   :  { %v2986_v28 = vmax.f32 %v2984_v32, %v2985_v20  ;;  %v2989_v62 = vmax.f32 %v2773_v44, %v2776_v33 }
 0x491   :  { %v2987_v53 = vrot.slane %v2986_v28, 1 }
 0x492   :  { %v2780_v22 = vpop.f32.mrb[68].mxu0 }
 0x493   :  { %v2988_v52 = vmax.f32 %v2986_v28, %v2987_v53  ;;  %v2781_v14 = vadd.f32 %v4899_v39, %v2780_v22  ;;  %v2782_v19 = vpop.f32.mrb[69].mxu0 }
 0x494   :  { %v2783_v30 = vpop.f32.mrb[70].mxu0 }
 0x495   :  { %v3076_v56 = vsel %vm3075_vm0, %v2988_v52, %v2975_v40  ;;  %v2990_v23 = vmax.f32 %v2989_v62, %v2781_v14  ;;  %v2784_v15 = vadd.f32 %v4899_v39, %v2783_v30  ;;  %v2785_v8 = vpop.f32.mrb[71].mxu0 }
 0x497   :  { %v2991_v12 = vmax.f32 %v2990_v23, %v2784_v15 }
 0x49a   :  { %v2788_v4 = vpop.f32.mrb[72].mxu0 }
 0x49b   :  { %v2789_v43 = vadd.f32 %v4899_v39, %v2788_v4  ;;  %v2790_v60 = vpop.f32.mrb[73].mxu0 }
 0x49c   :  { %v2791_v6 = vpop.f32.mrb[74].mxu0 }
 0x49d   :  { %v2992_v26 = vmax.f32 %v2991_v12, %v2789_v43  ;;  %v2792_v29 = vadd.f32 %v4899_v39, %v2791_v6  ;;  %v2793_v31 = vpop.f32.mrb[75].mxu0 }
 0x49f   :  { %v2993_v59 = vmax.f32 %v2992_v26, %v2792_v29 }
 0x4a2   :  { %v2796_v34 = vpop.f32.mrb[76].mxu0 }
 0x4a3   :  { %v2797_v61 = vadd.f32 %v4899_v39, %v2796_v34  ;;  %v2798_v37 = vpop.f32.mrb[77].mxu0 }
 0x4a4   :  { %v2799_v0 = vpop.f32.mrb[78].mxu0 }
 0x4a5   :  { %v2994_v2 = vmax.f32 %v2993_v59, %v2797_v61  ;;  %v2800_v9 = vadd.f32 %v4899_v39, %v2799_v0  ;;  %v2801_v46 = vpop.f32.mrb[79].mxu0 }
 0x4a7   :  { %v2995_v55 = vmax.f32 %v2994_v2, %v2800_v9 }
 0x4a9   :  { %v2996_v42 = vrot.slane %v2995_v55, 4 }
 0x4aa   :  { %v2804_v38 = vpop.f32.mrb[80].mxu0 }
 0x4ab   :  { %v2997_v63 = vmax.f32 %v2995_v55, %v2996_v42  ;;  %v2806_v36 = vpop.f32.mrb[81].mxu0  ;;  %v2805_v47 = vadd.f32 %v4899_v39, %v2804_v38 }
 0x4ac   :  { %v2807_v41 = vpop.f32.mrb[82].mxu0 }
 0x4ad   :  { %v2998_v18 = vrot.slane %v2997_v63, 2  ;;  %v2808_v57 = vadd.f32 %v4899_v39, %v2807_v41  ;;  %v2809_v49 = vpop.f32.mrb[83].mxu0 }
 0x4af   :  { %v2999_v35 = vmax.f32 %v2997_v63, %v2998_v18  ;;  %v3002_v11 = vmax.f32 %v2805_v47, %v2808_v57 }
 0x4b1   :  { %v3000_v27 = vrot.slane %v2999_v35, 1 }
 0x4b2   :  { %v2812_v25 = vpop.f32.mrb[84].mxu0 }
 0x4b3   :  { %v3001_v45 = vmax.f32 %v2999_v35, %v3000_v27  ;;  %v2813_v3 = vadd.f32 %v4899_v39, %v2812_v25  ;;  %v2814_v7 = vpop.f32.mrb[85].mxu0 }
 0x4b4   :  { %v2815_v24 = vpop.f32.mrb[86].mxu0 }
 0x4b5   :  { %v3078_v17 = vsel %vm3077_vm1, %v3001_v45, %v3076_v56  ;;  %v3003_v13 = vmax.f32 %v3002_v11, %v2813_v3  ;;  %v2816_v10 = vadd.f32 %v4899_v39, %v2815_v24  ;;  %v2817_v5 = vpop.f32.mrb[87].mxu0 }
 0x4b7   :  { %v3004_v58 = vmax.f32 %v3003_v13, %v2816_v10 }
 0x4ba   :  { %v2820_v21 = vpop.f32.mrb[88].mxu0 }
 0x4bb   :  { %v2821_v16 = vadd.f32 %v4899_v39, %v2820_v21  ;;  %v2822_v51 = vpop.f32.mrb[89].mxu0 }
 0x4bc   :  { %v2823_v32 = vpop.f32.mrb[90].mxu0 }
 0x4bd   :  { %v3005_v54 = vmax.f32 %v3004_v58, %v2821_v16  ;;  %v2824_v50 = vadd.f32 %v4899_v39, %v2823_v32  ;;  %v2825_v20 = vpop.f32.mrb[91].mxu0 }
 0x4bf   :  { %v3006_v44 = vmax.f32 %v3005_v54, %v2824_v50 }
 0x4c2   :  { %v2828_v33 = vpop.f32.mrb[92].mxu0 }
 0x4c3   :  { %v2829_v48 = vadd.f32 %v4899_v39, %v2828_v33  ;;  %v2830_v1 = vpop.f32.mrb[93].mxu0 }
 0x4c4   :  { %v2831_v28 = vpop.f32.mrb[94].mxu0 }
 0x4c5   :  { %v3007_v62 = vmax.f32 %v3006_v44, %v2829_v48  ;;  %v2832_v53 = vadd.f32 %v4899_v39, %v2831_v28  ;;  %v2833_v22 = vpop.f32.mrb[95].mxu0 }
 0x4c7   :  { %v3008_v40 = vmax.f32 %v3007_v62, %v2832_v53 }
 0x4c9   :  { %v3009_v52 = vrot.slane %v3008_v40, 4 }
 0x4ca   :  { %v2836_v14 = vpop.f32.mrb[96].mxu0 }
 0x4cb   :  { %v3010_v19 = vmax.f32 %v3008_v40, %v3009_v52  ;;  %v2838_v30 = vpop.f32.mrb[97].mxu0  ;;  %v2837_v15 = vadd.f32 %v4899_v39, %v2836_v14 }
 0x4cc   :  { %v2839_v56 = vpop.f32.mrb[98].mxu0 }
 0x4cd   :  { %v3011_v23 = vrot.slane %v3010_v19, 2  ;;  %v2840_v8 = vadd.f32 %v4899_v39, %v2839_v56  ;;  %v2841_v12 = vpop.f32.mrb[99].mxu0 }
 0x4cf   :  { %v3012_v4 = vmax.f32 %v3010_v19, %v3011_v23  ;;  %v3015_v43 = vmax.f32 %v2837_v15, %v2840_v8 }
 0x4d1   :  { %v3013_v60 = vrot.slane %v3012_v4, 1 }
 0x4d2   :  { %v2844_v6 = vpop.f32.mrb[100].mxu0 }
 0x4d3   :  { %v3014_v26 = vmax.f32 %v3012_v4, %v3013_v60  ;;  %v2845_v29 = vadd.f32 %v4899_v39, %v2844_v6  ;;  %v2846_v31 = vpop.f32.mrb[101].mxu0 }
 0x4d4   :  { %v2847_v59 = vpop.f32.mrb[102].mxu0 }
 0x4d5   :  { %v3016_v34 = vmax.f32 %v3015_v43, %v2845_v29  ;;  %v2848_v61 = vadd.f32 %v4899_v39, %v2847_v59  ;;  %v2849_v37 = vpop.f32.mrb[103].mxu0  ;;  %v3080_v0 = vsel %vm3079_vm2, %v3014_v26, %v3078_v17 }
 0x4d7   :  { %v3017_v2 = vmax.f32 %v3016_v34, %v2848_v61 }
 0x4da   :  { %v2852_v9 = vpop.f32.mrb[104].mxu0 }
 0x4db   :  { %v2853_v46 = vadd.f32 %v4899_v39, %v2852_v9  ;;  %v2854_v55 = vpop.f32.mrb[105].mxu0 }
 0x4dc   :  { %v2855_v42 = vpop.f32.mrb[106].mxu0 }
 0x4dd   :  { %v3018_v38 = vmax.f32 %v3017_v2, %v2853_v46  ;;  %v2856_v63 = vadd.f32 %v4899_v39, %v2855_v42  ;;  %v2857_v36 = vpop.f32.mrb[107].mxu0 }
 0x4df   :  { %v3019_v41 = vmax.f32 %v3018_v38, %v2856_v63 }
 0x4e2   :  { %v2860_v18 = vpop.f32.mrb[108].mxu0 }
 0x4e3   :  { %v2861_v47 = vadd.f32 %v4899_v39, %v2860_v18  ;;  %v2862_v57 = vpop.f32.mrb[109].mxu0 }
 0x4e4   :  { %v2863_v49 = vpop.f32.mrb[110].mxu0 }
 0x4e5   :  { %v3020_v35 = vmax.f32 %v3019_v41, %v2861_v47  ;;  %v2864_v11 = vadd.f32 %v4899_v39, %v2863_v49  ;;  %v2865_v27 = vpop.f32.mrb[111].mxu0 }
 0x4e7   :  { %v3021_v25 = vmax.f32 %v3020_v35, %v2864_v11 }
 0x4e9   :  { %v3022_v45 = vrot.slane %v3021_v25, 4 }
 0x4ea   :  { %v2868_v3 = vpop.f32.mrb[112].mxu0 }
 0x4eb   :  { %v3023_v7 = vmax.f32 %v3021_v25, %v3022_v45  ;;  %v2870_v24 = vpop.f32.mrb[113].mxu0  ;;  %v2869_v10 = vadd.f32 %v4899_v39, %v2868_v3 }
 0x4ec   :  { %v2871_v17 = vpop.f32.mrb[114].mxu0 }
 0x4ed   :  { %v3024_v13 = vrot.slane %v3023_v7, 2  ;;  %v2872_v5 = vadd.f32 %v4899_v39, %v2871_v17  ;;  %v2873_v58 = vpop.f32.mrb[115].mxu0 }
 0x4ef   :  { %v3025_v21 = vmax.f32 %v3023_v7, %v3024_v13  ;;  %v3028_v16 = vmax.f32 %v2869_v10, %v2872_v5 }
 0x4f1   :  { %v3026_v51 = vrot.slane %v3025_v21, 1 }
 0x4f2   :  { %v2876_v32 = vpop.f32.mrb[116].mxu0 }
 0x4f3   :  { %v3027_v54 = vmax.f32 %v3025_v21, %v3026_v51  ;;  %v2877_v50 = vadd.f32 %v4899_v39, %v2876_v32  ;;  %v2878_v20 = vpop.f32.mrb[117].mxu0 }
 0x4f4   :  { %v2879_v44 = vpop.f32.mrb[118].mxu0 }
 0x4f5   :  { %v3029_v33 = vmax.f32 %v3028_v16, %v2877_v50  ;;  %v2880_v48 = vadd.f32 %v4899_v39, %v2879_v44  ;;  %v2881_v1 = vpop.f32.mrb[119].mxu0  ;;  %v3082_v28 = vsel %vm3081_vm3, %v3027_v54, %v3080_v0 }
 0x4f7   :  { %v3030_v62 = vmax.f32 %v3029_v33, %v2880_v48 }
 0x4fa   :  { %v2884_v53 = vpop.f32.mrb[120].mxu0 }
 0x4fb   :  { %v2885_v22 = vadd.f32 %v4899_v39, %v2884_v53  ;;  %v2886_v40 = vpop.f32.mrb[121].mxu0 }
 0x4fc   :  { %v2887_v52 = vpop.f32.mrb[122].mxu0 }
 0x4fd   :  { %v3031_v14 = vmax.f32 %v3030_v62, %v2885_v22  ;;  %v2888_v19 = vadd.f32 %v4899_v39, %v2887_v52  ;;  %v2889_v30 = vpop.f32.mrb[123].mxu0 }
 0x4ff   :  { %v3032_v56 = vmax.f32 %v3031_v14, %v2888_v19 }
 0x502   :  { %v2892_v23 = vpop.f32.mrb[124].mxu0 }
 0x503   :  { %v2893_v15 = vadd.f32 %v4899_v39, %v2892_v23  ;;  %v2894_v8 = vpop.f32.mrb[125].mxu0 }
 0x504   :  { %v2895_v12 = vpop.f32.mrb[126].mxu0 }
 0x505   :  { %v3033_v4 = vmax.f32 %v3032_v56, %v2893_v15  ;;  %v2896_v43 = vadd.f32 %v4899_v39, %v2895_v12  ;;  %v2897_v60 = vpop.f32.mrb[127].mxu0 }
 0x507   :  { %v3034_v6 = vmax.f32 %v3033_v4, %v2896_v43 }
 0x509   :  { %v3035_v26 = vrot.slane %v3034_v6, 4 }
 0x50a   :  { %v2900_v29 = vpop.f32.mrb[128].mxu0 }
 0x50b   :  { %v3036_v31 = vmax.f32 %v3034_v6, %v3035_v26  ;;  %v2902_v59 = vpop.f32.mrb[129].mxu0  ;;  %v2901_v37 = vadd.f32 %v4899_v39, %v2900_v29 }
 0x50c   :  { %v2903_v34 = vpop.f32.mrb[130].mxu0 }
 0x50d   :  { %v3037_v61 = vrot.slane %v3036_v31, 2  ;;  %v2904_v0 = vadd.f32 %v4899_v39, %v2903_v34  ;;  %v2905_v2 = vpop.f32.mrb[131].mxu0 }
 0x50f   :  { %v3038_v9 = vmax.f32 %v3036_v31, %v3037_v61  ;;  %v3041_v46 = vmax.f32 %v2901_v37, %v2904_v0 }
 0x511   :  { %v3039_v55 = vrot.slane %v3038_v9, 1 }
 0x512   :  { %v2908_v42 = vpop.f32.mrb[132].mxu0 }
 0x513   :  { %v3040_v38 = vmax.f32 %v3038_v9, %v3039_v55  ;;  %v2909_v63 = vadd.f32 %v4899_v39, %v2908_v42  ;;  %v2910_v36 = vpop.f32.mrb[133].mxu0 }
 0x514   :  { %v2911_v41 = vpop.f32.mrb[134].mxu0 }
 0x515   :  { %v3042_v18 = vmax.f32 %v3041_v46, %v2909_v63  ;;  %v2912_v47 = vadd.f32 %v4899_v39, %v2911_v41  ;;  %v2913_v57 = vpop.f32.mrb[135].mxu0  ;;  %v3084_v49 = vsel %vm3083_vm4, %v3040_v38, %v3082_v28 }
 0x517   :  { %v3043_v35 = vmax.f32 %v3042_v18, %v2912_v47 }
 0x51a   :  { %v2916_v11 = vpop.f32.mrb[136].mxu0 }
 0x51b   :  { %v2917_v27 = vadd.f32 %v4899_v39, %v2916_v11  ;;  %v2918_v25 = vpop.f32.mrb[137].mxu0 }
 0x51c   :  { %v2919_v45 = vpop.f32.mrb[138].mxu0 }
 0x51d   :  { %v3044_v3 = vmax.f32 %v3043_v35, %v2917_v27  ;;  %v2920_v7 = vadd.f32 %v4899_v39, %v2919_v45  ;;  %v2921_v24 = vpop.f32.mrb[139].mxu0 }
 0x51f   :  { %v3045_v17 = vmax.f32 %v3044_v3, %v2920_v7 }
 0x522   :  { %v2924_v13 = vpop.f32.mrb[140].mxu0 }
 0x523   :  { %v2925_v10 = vadd.f32 %v4899_v39, %v2924_v13  ;;  %v2926_v5 = vpop.f32.mrb[141].mxu0 }
 0x524   :  { %v2927_v58 = vpop.f32.mrb[142].mxu0 }
 0x525   :  { %v3046_v21 = vmax.f32 %v3045_v17, %v2925_v10  ;;  %v2928_v16 = vadd.f32 %v4899_v39, %v2927_v58  ;;  %v2929_v51 = vpop.f32.mrb[143].mxu0 }
 0x527   :  { %v3047_v32 = vmax.f32 %v3046_v21, %v2928_v16 }
 0x529   :  { %v3048_v54 = vrot.slane %v3047_v32, 4 }
 0x52a   :  { %v2932_v50 = vpop.f32.mrb[144].mxu0 }
 0x52b   :  { %v3049_v20 = vmax.f32 %v3047_v32, %v3048_v54  ;;  %v2934_v44 = vpop.f32.mrb[145].mxu0  ;;  %v2933_v1 = vadd.f32 %v4899_v39, %v2932_v50 }
 0x52c   :  { %v2935_v33 = vpop.f32.mrb[146].mxu0 }
 0x52d   :  { %v3050_v48 = vrot.slane %v3049_v20, 2  ;;  %v2936_v28 = vadd.f32 %v4899_v39, %v2935_v33  ;;  %v2937_v62 = vpop.f32.mrb[147].mxu0 }
 0x52f   :  { %v3051_v53 = vmax.f32 %v3049_v20, %v3050_v48  ;;  %v3054_v22 = vmax.f32 %v2933_v1, %v2936_v28 }
 0x531   :  { %v3052_v40 = vrot.slane %v3051_v53, 1 }
 0x532   :  { %v2940_v52 = vpop.f32.mrb[148].mxu0 }
 0x533   :  { %v3053_v14 = vmax.f32 %v3051_v53, %v3052_v40  ;;  %v2941_v19 = vadd.f32 %v4899_v39, %v2940_v52  ;;  %v2942_v30 = vpop.f32.mrb[149].mxu0 }
 0x534   :  { %v2943_v56 = vpop.f32.mrb[150].mxu0 }
 0x535   :  { %v3055_v23 = vmax.f32 %v3054_v22, %v2941_v19  ;;  %v2944_v15 = vadd.f32 %v4899_v39, %v2943_v56  ;;  %v2945_v8 = vpop.f32.mrb[151].mxu0  ;;  %v3086_v12 = vsel %vm3085_vm5, %v3053_v14, %v3084_v49 }
 0x537   :  { %v3056_v4 = vmax.f32 %v3055_v23, %v2944_v15 }
 0x53a   :  { %v2948_v43 = vpop.f32.mrb[152].mxu0 }
 0x53b   :  { %v2949_v60 = vadd.f32 %v4899_v39, %v2948_v43  ;;  %v2950_v6 = vpop.f32.mrb[153].mxu0 }
 0x53c   :  { %v2951_v26 = vpop.f32.mrb[154].mxu0 }
 0x53d   :  { %v3057_v29 = vmax.f32 %v3056_v4, %v2949_v60  ;;  %v2952_v31 = vadd.f32 %v4899_v39, %v2951_v26  ;;  %v2953_v59 = vpop.f32.mrb[155].mxu0 }
 0x53f   :  { %v3058_v34 = vmax.f32 %v3057_v29, %v2952_v31 }
 0x542   :  { %v2956_v61 = vpop.f32.mrb[156].mxu0 }
 0x543   :  { %v2957_v37 = vadd.f32 %v4899_v39, %v2956_v61  ;;  %v2958_v0 = vpop.f32.mrb[157].mxu0 }
 0x544   :  { %v2959_v2 = vpop.f32.mrb[158].mxu0 }
 0x545   :  { %v3059_v9 = vmax.f32 %v3058_v34, %v2957_v37  ;;  %v2960_v46 = vadd.f32 %v4899_v39, %v2959_v2  ;;  %v2961_v55 = vpop.f32.mrb[159].mxu0 }
 0x547   :  { %v3060_v42 = vmax.f32 %v3059_v9, %v2960_v46 }
 0x549   :  { %v3061_v38 = vrot.slane %v3060_v42, 4 }
 0x54b   :  { %v3062_v63 = vmax.f32 %v3060_v42, %v3061_v38 }
 0x54d   :  { %v3063_v36 = vrot.slane %v3062_v63, 2 }
 0x54f   :  { %v3064_v41 = vmax.f32 %v3062_v63, %v3063_v36 }
 0x551   :  { %v3065_v18 = vrot.slane %v3064_v41, 1 }
 0x553   :  { %v3066_v47 = vmax.f32 %v3064_v41, %v3065_v18 }
 0x555   :  { %v3088_v57 = vsel %vm3087_vm6, %v3066_v47, %v3086_v12 }
 0x556   :  { %3090 = vst [vmem:[#allocation2] sm:$0xff] %v3088_v57 }
 0x557   :  { %3407 = shalt.err (!%p3404_p4)
}
 0x558   :  { %s3408_s28 = scalar_lea.hbm %s5002_s9, 128 }
 0x559   :  { %p3409_p5 = scmp.ne.s32.totalorder %s5002_s9, %s3408_s28  ;;  %p3412_p6 = scmp.lt.u32.totalorder %s3408_s28, %s5002_s9 }
 0x55b   :  { %p3414_p7 = pnand %p3412_p6, %p3409_p5 }
 0x55d   :  { %3417 = shalt.err (!%p3414_p7)
}
 0x55e   :  { %3100 = dma.vmem_to_hbm [thread:$0]  %s3098_s26, 128, %s5002_s9, [#allocation3]  }
 0x55f   :  { %3418 = dma.done.wait [#allocation3], 128  }
 0x560   :  { %3419 = vsyncadd [#allocation3], 4294967168 }
 0x561   :  { %3104 = vsyncpa [#allocation3], 1 }

</bundles_post_ra>
